<compile_context>
chip_gen: v7x
topology: tpu7x:2x2x1
jax: 0.10.0
libtpu: 0.0.40
codegen_flags: <defaults>
</compile_context>

<pallas_src>
import numpy as np
import jax
import jax.numpy as jnp
from jax import lax
from jax.experimental import pallas as pl
from jax.experimental.pallas import tpu as pltpu

# ----------------------------------------------------------------------------
# Small (but structurally faithful) hyperparameters
# ----------------------------------------------------------------------------
FEATURES = 8
FRAME_SPLICING = 3
IN_FEATURES = FEATURES * FRAME_SPLICING      # 24
NUM_CLASSES = 29                             # len(labels)
ENC_N_HIDDEN = 32
ENC_PRE_LAYERS = 2
ENC_POST_LAYERS = 3
ENC_STACK_FACTOR = 2
PRED_N_HIDDEN = 32
PRED_LAYERS = 2
JOINT_N_HIDDEN = 64
FORGET_GATE_BIAS = 1.0
DROPOUT = 0.0                                # dropout=0 -> no-op

B = 2
T = 8                                        # time frames after preprocessing
U = 4                                        # label length

LANE = 128                                   # TPU lane width
VOCAB_PAD = ((NUM_CLASSES + LANE - 1) // LANE) * LANE   # 128 (lane-dense logits)

HIGH = jax.lax.Precision.HIGHEST             # reference-path matmul precision


# ----------------------------------------------------------------------------
# The single fused Pallas kernel: enc_pre -> stack_time -> enc_post -> embed ->
# pred -> joint.  Everything is traced values; only x / y / weights are read
# from refs and only the padded logits are written.
# ----------------------------------------------------------------------------
def _make_fused_kernel(Tn, Bn, Un):
    factor = ENC_STACK_FACTOR
    Tp = -(-Tn // factor)                      # ceil(T / factor)
    n_pre, n_post, n_pred = ENC_PRE_LAYERS, ENC_POST_LAYERS, PRED_LAYERS

    def kernel(*refs):
        x_ref, y_ref, embed_ref = refs[0], refs[1], refs[2]
        pos = [3]

        def take(n):
            layers = []
            for _ in range(n):
                i = pos[0]
                layers.append((refs[i][...], refs[i + 1][...], refs[i + 2][...]))
                pos[0] += 3
            return layers

        enc_pre_w = take(n_pre)
        enc_post_w = take(n_post)
        pred_w = take(n_pred)
        i = pos[0]
        w1f, w1g, b1 = refs[i][...], refs[i + 1][...], refs[i + 2][...]
        w2, b2 = refs[i + 3][...], refs[i + 4][...]
        out_ref = refs[i + 5]

        # -------- multi-layer LSTM stack on 2-D (steps*B, F) values ----------
        def lstm_stack(src, steps, layers):
            outs = None
            for (wih, whh, bias) in layers:          # static unroll over layers
                H = whh.shape[0]
                # Hoisted input projection (one matmul per layer, off the
                # serial path); kept as a value (no scratch store/reload).
                gx = jnp.dot(src, wih, preferred_element_type=jnp.float32) + bias
                h = jnp.zeros((Bn, H), jnp.float32)
                c = jnp.zeros((Bn, H), jnp.float32)
                outs = []
                for t in range(steps):               # static unroll over time
                    gates = gx[t * Bn:(t + 1) * Bn, :]
                    if t > 0:                        # h0 == 0 -> skip first dot
                        gates = gates + jnp.dot(
                            h, whh, preferred_element_type=jnp.float32)
                    # Full-vreg activations: 1 sigmoid + 1 tanh pass per step.
                    s_all = jax.nn.sigmoid(gates)
                    t_all = jnp.tanh(gates)
                    ig = s_all[:, 0:H]
                    fg = s_all[:, H:2 * H]
                    gg = t_all[:, 2 * H:3 * H]
                    og = s_all[:, 3 * H:4 * H]
                    c = fg * c + ig * gg
                    h = og * jnp.tanh(c)
                    outs.append(h)                   # (B, H) per timestep
                src = jnp.concatenate(outs, axis=0)  # (steps*B, H) time-major
            return src, outs

        # ------------------------------ encoder ------------------------------
        x2d = x_ref[...]                             # (T*B, IN_FEATURES)
        xpre, _ = lstm_stack(x2d, Tn, enc_pre_w)     # (T*B, H)
        Hpre = enc_pre_w[-1][1].shape[0]
        pad = Tp * factor - Tn
        if pad:
            xpre = jnp.concatenate(
                [xpre, jnp.zeros((pad * Bn, Hpre), jnp.float32)], axis=0)
        # StackTime via static slices: out[(t',b)] = concat_k x[(t'*f+k, b)]
        st_rows = []
        for tp in range(Tp):
            pieces = [xpre[(tp * factor + k) * Bn:(tp * factor + k + 1) * Bn, :]
                      for k in range(factor)]
            st_rows.append(jnp.concatenate(pieces, axis=1))   # (B, f*H)
        xst = jnp.concatenate(st_rows, axis=0)                # (T'*B, f*H)
        _, enc_outs = lstm_stack(xst, Tp, enc_post_w)         # list of (B, He)

        # ----------------------------- prediction ----------------------------
        embed = embed_ref[...]                       # (NUM_CLASSES-1, Hp)
        ncm1 = embed.shape[0]
        iota = lax.broadcasted_iota(jnp.int32, (1, ncm1), 1)
        oh_rows = []
        for u in range(Un):                          # time-major (u, b) order
            for b in range(Bn):
                oh_rows.append((iota == y_ref[b, u]).astype(jnp.float32))
        onehot = jnp.concatenate(oh_rows, axis=0)    # (U*B, NUM_CLASSES-1)
        emb = jnp.dot(onehot, embed, preferred_element_type=jnp.float32)
        _, pred_outs = lstm_stack(emb, Un, pred_w)   # list of (B, Hp)

        # --------- time-major -> batch-major relayout (static slices) --------
        enc_bm = jnp.concatenate(
            [enc_outs[t][b:b + 1, :] for b in range(Bn) for t in range(Tp)],
            axis=0)                                  # (B*T', He)
        pred_bm = jnp.concatenate(
            [pred_outs[u][b:b + 1, :] for b in range(Bn) for u in range(Un)],
            axis=0)                                  # (B*U, Hp)

        # -------------------------------- joint -------------------------------
        J = w1f.shape[1]
        Vp = w2.shape[1]
        fw = jnp.dot(enc_bm, w1f, preferred_element_type=jnp.float32)
        gw = jnp.dot(pred_bm, w1g, preferred_element_type=jnp.float32)
        hj = jnp.maximum(fw.reshape(Bn, Tp, 1, J) + gw.reshape(Bn, 1, Un, J)
                         + b1.reshape(1, 1, 1, J), 0.0)
        logits = jnp.dot(hj.reshape(Bn * Tp * Un, J), w2,
                         preferred_element_type=jnp.float32) + b2
        out_ref[...] = logits.reshape(Bn, Tp, Un, Vp)

    return kernel


# ----------------------------------------------------------------------------
# Wrapper: one pallas_call for the whole forward.
# ----------------------------------------------------------------------------
def rnnt_forward(params, x_feat, x_lens, y):
    """Training-mode forward (== Rnnt._train minus the mel preprocessor).
    x_feat: (B, in_features, T) features; y: (B, U) int labels.
    Returns (padded logits (B, T', U, VOCAB_PAD), encoder output lengths)."""
    Bn, F, Tn = x_feat.shape
    Un = y.shape[1]
    Tp = -(-Tn // ENC_STACK_FACTOR)

    # (B, F, T) -> time-major flattened (T*B, F): one small XLA relayout.
    x2d = jnp.transpose(x_feat, (2, 0, 1)).reshape(Tn * Bn, F)

    flat_w = []
    for name in ("enc_pre", "enc_post", "pred"):
        for (wih, whh, bias) in params[name]:
            flat_w.extend([wih, whh, bias])
    w1f, w1g, b1, w2p, b2p = params["joint"]

    vmem = pl.BlockSpec(memory_space=pltpu.MemorySpace.VMEM)
    smem = pl.BlockSpec(memory_space=pltpu.MemorySpace.SMEM)
    in_specs = [vmem, smem] + [vmem] * (1 + len(flat_w) + 5)

    logits_padded = pl.pallas_call(
        _make_fused_kernel(Tn, Bn, Un),
        out_shape=jax.ShapeDtypeStruct((Bn, Tp, Un, w2p.shape[1]), jnp.float32),
        in_specs=in_specs,
        out_specs=vmem,
    )(x2d, y, params["embed"], *flat_w, w1f, w1g, b1, w2p, b2p)

    x_lens_out = jnp.ceil(
        x_lens.astype(jnp.float32) / ENC_STACK_FACTOR).astype(jnp.int32)
    return logits_padded, x_lens_out


# ----------------------------------------------------------------------------
# Pure-JAX reference (for correctness check; HIGHEST-precision matmuls)
# ----------------------------------------------------------------------------
def lstm_layer_ref(x, wih, whh, bias):
    Tn, Bn, _ = x.shape
    H = whh.shape[0]

    def step(carry, xt):
        h, c = carry
        gates = (jnp.dot(xt, wih, precision=HIGH)
                 + jnp.dot(h, whh, precision=HIGH) + bias)
        i = jax.nn.sigmoid(gates[:, :H])
        f = jax.nn.sigmoid(gates[:, H:2 * H])
        g = jnp.tanh(gates[:, 2 * H:3 * H])
        o = jax.nn.sigmoid(gates[:, 3 * H:])
        c = f * c + i * g
        h = o * jnp.tanh(c)
        return (h, c), h

    init = (jnp.zeros((Bn, H), jnp.float32), jnp.zeros((Bn, H), jnp.float32))
    _, ys = lax.scan(step, init, x)
    return ys


def stack_time_ref(x, x_lens, factor):
    r = jnp.transpose(x, (1, 0, 2))
    Bn, Tn, H = r.shape
    pad = (-Tn) % factor
    r = jnp.concatenate([r, jnp.zeros((Bn, pad, H), r.dtype)], axis=1)
    r = r.reshape(Bn, (Tn + pad) // factor, H * factor)
    rt = jnp.transpose(r, (1, 0, 2))
    x_lens = jnp.ceil(x_lens.astype(jnp.float32) / factor).astype(jnp.int32)
    return rt, x_lens


def rnnt_forward_ref(params, x_feat, x_lens, y):
    x = jnp.transpose(x_feat, (2, 0, 1))
    for p_ in params["enc_pre"]:
        x = lstm_layer_ref(x, *p_)
    x, x_lens = stack_time_ref(x, x_lens, ENC_STACK_FACTOR)
    for p_ in params["enc_post"]:
        x = lstm_layer_ref(x, *p_)
    enc = jnp.transpose(x, (1, 0, 2))
    emb = params["embed"][y]
    g = jnp.transpose(emb, (1, 0, 2))
    for p_ in params["pred"]:
        g = lstm_layer_ref(g, *p_)
    g = jnp.transpose(g, (1, 0, 2))
    w1f, w1g, b1, w2p, b2p = params["joint"]
    w2 = w2p[:, :NUM_CLASSES]
    b2 = b2p[:, :NUM_CLASSES]
    fw = jnp.einsum("bth,hj->btj", enc, w1f, precision=HIGH)
    gw = jnp.einsum("buh,hj->buj", g, w1g, precision=HIGH)
    h = jax.nn.relu(fw[:, :, None, :] + gw[:, None, :, :]
                    + b1[None, None, :, :])
    logits = jnp.einsum("btuj,jv->btuv", h, w2, precision=HIGH) \
        + b2[None, None, :, :]
    return logits, x_lens


# ----------------------------------------------------------------------------
# Deterministic parameter init (matches torch module's shapes / forget-bias rule)
# ----------------------------------------------------------------------------
def _uniform(key, shape, scale):
    return jax.random.uniform(key, shape, jnp.float32, -scale, scale)


def make_lstm_params(key, num_layers, input_size, hidden, forget_bias):
    params = []
    s = 1.0 / np.sqrt(hidden)
    for l in range(num_layers):
        isz = input_size if l == 0 else hidden
        key, k1, k2, k3, k4 = jax.random.split(key, 5)
        wih = _uniform(k1, (isz, 4 * hidden), s)          # stored transposed
        whh = _uniform(k2, (hidden, 4 * hidden), s)
        bih = _uniform(k3, (1, 4 * hidden), s)
        bhh = _uniform(k4, (1, 4 * hidden), s)
        # LstmDrop forget-gate bias initialization
        bih = bih.at[:, hidden:2 * hidden].set(forget_bias)
        bhh = bhh.at[:, hidden:2 * hidden].set(0.0)
        # torch adds bias_ih + bias_hh every step -> fold into one bias.
        params.append((wih, whh, bih + bhh))
    return params, key


def make_params(key):
    p = {}
    p["enc_pre"], key = make_lstm_params(key, ENC_PRE_LAYERS, IN_FEATURES,
                                         ENC_N_HIDDEN, FORGET_GATE_BIAS)
    p["enc_post"], key = make_lstm_params(key, ENC_POST_LAYERS,
                                          ENC_STACK_FACTOR * ENC_N_HIDDEN,
                                          ENC_N_HIDDEN, FORGET_GATE_BIAS)
    p["pred"], key = make_lstm_params(key, PRED_LAYERS, PRED_N_HIDDEN,
                                      PRED_N_HIDDEN, FORGET_GATE_BIAS)
    key, ke = jax.random.split(key)
    p["embed"] = jax.random.normal(ke, (NUM_CLASSES - 1, PRED_N_HIDDEN),
                                   jnp.float32)
    # Joint: Linear(He+Hp -> J), ReLU, Dropout(0), Linear(J -> V)
    sj1 = 1.0 / np.sqrt(ENC_N_HIDDEN + PRED_N_HIDDEN)
    sj2 = 1.0 / np.sqrt(JOINT_N_HIDDEN)
    key, k1, k2, k3, k4 = jax.random.split(key, 5)
    w1f = _uniform(k1, (ENC_N_HIDDEN, JOINT_N_HIDDEN), sj1)   # f slice of W1^T
    w1g = _uniform(k2, (PRED_N_HIDDEN, JOINT_N_HIDDEN), sj1)  # g slice of W1^T
    b1 = _uniform(k3, (1, JOINT_N_HIDDEN), sj1)
    w2 = _uniform(k4, (JOINT_N_HIDDEN, NUM_CLASSES), sj2)
    key, k5 = jax.random.split(key)
    b2 = _uniform(k5, (1, NUM_CLASSES), sj2)
    # Pre-pad vocab to a lane-dense 128 once (no per-call pad / slice).
    w2p = jnp.pad(w2, ((0, 0), (0, VOCAB_PAD - NUM_CLASSES)))
    b2p = jnp.pad(b2, ((0, 0), (0, VOCAB_PAD - NUM_CLASSES)))
    p["joint"] = (w1f, w1g, b1, w2p, b2p)
    return p


# ----------------------------------------------------------------------------
if __name__ == "__main__":
    key = jax.random.PRNGKey(0)
    key, kx, ky = jax.random.split(key, 3)
    params = make_params(key)

    x_feat = jax.random.normal(kx, (B, IN_FEATURES, T), jnp.float32)
    x_lens = jnp.array([T, T - 2], dtype=jnp.int32)
    y = jax.random.randint(ky, (B, U), 0, NUM_CLASSES - 1, dtype=jnp.int32)

    fwd = jax.jit(rnnt_forward)
    logits_padded, out_lens = fwd(params, x_feat, x_lens, y)
    jax.block_until_ready(logits_padded)

    # Consumer-side slice of the lane-dense padded vocab (pad columns are 0).
    logits = np.asarray(logits_padded)[..., :NUM_CLASSES]
    assert logits.shape == (B, T // ENC_STACK_FACTOR, U, NUM_CLASSES), logits.shape

    ref_logits, ref_lens = rnnt_forward_ref(params, x_feat, x_lens, y)
    np.testing.assert_allclose(logits, np.asarray(ref_logits),
                               rtol=1e-4, atol=1e-4)
    np.testing.assert_array_equal(np.asarray(out_lens), np.asarray(ref_lens))

    print("KERNEL_OK")
</pallas_src>

<mosaic_0001>
module attributes {stable_mosaic.version = 11 : i64} {
  func.func @kernel(%arg0: memref<16x24xf32, #tpu.memory_space<vmem>>, %arg1: memref<2x4xi32, #tpu.memory_space<smem>>, %arg2: memref<28x32xf32, #tpu.memory_space<vmem>>, %arg3: memref<24x128xf32, #tpu.memory_space<vmem>>, %arg4: memref<32x128xf32, #tpu.memory_space<vmem>>, %arg5: memref<1x128xf32, #tpu.memory_space<vmem>>, %arg6: memref<32x128xf32, #tpu.memory_space<vmem>>, %arg7: memref<32x128xf32, #tpu.memory_space<vmem>>, %arg8: memref<1x128xf32, #tpu.memory_space<vmem>>, %arg9: memref<64x128xf32, #tpu.memory_space<vmem>>, %arg10: memref<32x128xf32, #tpu.memory_space<vmem>>, %arg11: memref<1x128xf32, #tpu.memory_space<vmem>>, %arg12: memref<32x128xf32, #tpu.memory_space<vmem>>, %arg13: memref<32x128xf32, #tpu.memory_space<vmem>>, %arg14: memref<1x128xf32, #tpu.memory_space<vmem>>, %arg15: memref<32x128xf32, #tpu.memory_space<vmem>>, %arg16: memref<32x128xf32, #tpu.memory_space<vmem>>, %arg17: memref<1x128xf32, #tpu.memory_space<vmem>>, %arg18: memref<32x128xf32, #tpu.memory_space<vmem>>, %arg19: memref<32x128xf32, #tpu.memory_space<vmem>>, %arg20: memref<1x128xf32, #tpu.memory_space<vmem>>, %arg21: memref<32x128xf32, #tpu.memory_space<vmem>>, %arg22: memref<32x128xf32, #tpu.memory_space<vmem>>, %arg23: memref<1x128xf32, #tpu.memory_space<vmem>>, %arg24: memref<32x64xf32, #tpu.memory_space<vmem>>, %arg25: memref<32x64xf32, #tpu.memory_space<vmem>>, %arg26: memref<1x64xf32, #tpu.memory_space<vmem>>, %arg27: memref<64x128xf32, #tpu.memory_space<vmem>>, %arg28: memref<1x128xf32, #tpu.memory_space<vmem>>, %arg29: memref<2x4x4x128xf32, #tpu.memory_space<vmem>>) attributes {dimension_semantics = [], scalar_prefetch = 0 : i64, scratch_operands = 0 : i64, tpu.core_type = #tpu.core_type<tc>} {
    %c0 = arith.constant 0 : index
    %c0_0 = arith.constant 0 : index
    %0 = vector.load %arg3[%c0, %c0_0] : memref<24x128xf32, #tpu.memory_space<vmem>>, vector<24x128xf32>
    %c0_1 = arith.constant 0 : index
    %c0_2 = arith.constant 0 : index
    %1 = vector.load %arg4[%c0_1, %c0_2] : memref<32x128xf32, #tpu.memory_space<vmem>>, vector<32x128xf32>
    %c0_3 = arith.constant 0 : index
    %c0_4 = arith.constant 0 : index
    %2 = vector.load %arg5[%c0_3, %c0_4] : memref<1x128xf32, #tpu.memory_space<vmem>>, vector<1x128xf32>
    %c0_5 = arith.constant 0 : index
    %c0_6 = arith.constant 0 : index
    %3 = vector.load %arg6[%c0_5, %c0_6] : memref<32x128xf32, #tpu.memory_space<vmem>>, vector<32x128xf32>
    %c0_7 = arith.constant 0 : index
    %c0_8 = arith.constant 0 : index
    %4 = vector.load %arg7[%c0_7, %c0_8] : memref<32x128xf32, #tpu.memory_space<vmem>>, vector<32x128xf32>
    %c0_9 = arith.constant 0 : index
    %c0_10 = arith.constant 0 : index
    %5 = vector.load %arg8[%c0_9, %c0_10] : memref<1x128xf32, #tpu.memory_space<vmem>>, vector<1x128xf32>
    %c0_11 = arith.constant 0 : index
    %c0_12 = arith.constant 0 : index
    %6 = vector.load %arg9[%c0_11, %c0_12] : memref<64x128xf32, #tpu.memory_space<vmem>>, vector<64x128xf32>
    %c0_13 = arith.constant 0 : index
    %c0_14 = arith.constant 0 : index
    %7 = vector.load %arg10[%c0_13, %c0_14] : memref<32x128xf32, #tpu.memory_space<vmem>>, vector<32x128xf32>
    %c0_15 = arith.constant 0 : index
    %c0_16 = arith.constant 0 : index
    %8 = vector.load %arg11[%c0_15, %c0_16] : memref<1x128xf32, #tpu.memory_space<vmem>>, vector<1x128xf32>
    %c0_17 = arith.constant 0 : index
    %c0_18 = arith.constant 0 : index
    %9 = vector.load %arg12[%c0_17, %c0_18] : memref<32x128xf32, #tpu.memory_space<vmem>>, vector<32x128xf32>
    %c0_19 = arith.constant 0 : index
    %c0_20 = arith.constant 0 : index
    %10 = vector.load %arg13[%c0_19, %c0_20] : memref<32x128xf32, #tpu.memory_space<vmem>>, vector<32x128xf32>
    %c0_21 = arith.constant 0 : index
    %c0_22 = arith.constant 0 : index
    %11 = vector.load %arg14[%c0_21, %c0_22] : memref<1x128xf32, #tpu.memory_space<vmem>>, vector<1x128xf32>
    %c0_23 = arith.constant 0 : index
    %c0_24 = arith.constant 0 : index
    %12 = vector.load %arg15[%c0_23, %c0_24] : memref<32x128xf32, #tpu.memory_space<vmem>>, vector<32x128xf32>
    %c0_25 = arith.constant 0 : index
    %c0_26 = arith.constant 0 : index
    %13 = vector.load %arg16[%c0_25, %c0_26] : memref<32x128xf32, #tpu.memory_space<vmem>>, vector<32x128xf32>
    %c0_27 = arith.constant 0 : index
    %c0_28 = arith.constant 0 : index
    %14 = vector.load %arg17[%c0_27, %c0_28] : memref<1x128xf32, #tpu.memory_space<vmem>>, vector<1x128xf32>
    %c0_29 = arith.constant 0 : index
    %c0_30 = arith.constant 0 : index
    %15 = vector.load %arg18[%c0_29, %c0_30] : memref<32x128xf32, #tpu.memory_space<vmem>>, vector<32x128xf32>
    %c0_31 = arith.constant 0 : index
    %c0_32 = arith.constant 0 : index
    %16 = vector.load %arg19[%c0_31, %c0_32] : memref<32x128xf32, #tpu.memory_space<vmem>>, vector<32x128xf32>
    %c0_33 = arith.constant 0 : index
    %c0_34 = arith.constant 0 : index
    %17 = vector.load %arg20[%c0_33, %c0_34] : memref<1x128xf32, #tpu.memory_space<vmem>>, vector<1x128xf32>
    %c0_35 = arith.constant 0 : index
    %c0_36 = arith.constant 0 : index
    %18 = vector.load %arg21[%c0_35, %c0_36] : memref<32x128xf32, #tpu.memory_space<vmem>>, vector<32x128xf32>
    %c0_37 = arith.constant 0 : index
    %c0_38 = arith.constant 0 : index
    %19 = vector.load %arg22[%c0_37, %c0_38] : memref<32x128xf32, #tpu.memory_space<vmem>>, vector<32x128xf32>
    %c0_39 = arith.constant 0 : index
    %c0_40 = arith.constant 0 : index
    %20 = vector.load %arg23[%c0_39, %c0_40] : memref<1x128xf32, #tpu.memory_space<vmem>>, vector<1x128xf32>
    %c0_41 = arith.constant 0 : index
    %c0_42 = arith.constant 0 : index
    %21 = vector.load %arg24[%c0_41, %c0_42] : memref<32x64xf32, #tpu.memory_space<vmem>>, vector<32x64xf32>
    %c0_43 = arith.constant 0 : index
    %c0_44 = arith.constant 0 : index
    %22 = vector.load %arg25[%c0_43, %c0_44] : memref<32x64xf32, #tpu.memory_space<vmem>>, vector<32x64xf32>
    %c0_45 = arith.constant 0 : index
    %c0_46 = arith.constant 0 : index
    %23 = vector.load %arg26[%c0_45, %c0_46] : memref<1x64xf32, #tpu.memory_space<vmem>>, vector<1x64xf32>
    %c0_47 = arith.constant 0 : index
    %c0_48 = arith.constant 0 : index
    %24 = vector.load %arg27[%c0_47, %c0_48] : memref<64x128xf32, #tpu.memory_space<vmem>>, vector<64x128xf32>
    %c0_49 = arith.constant 0 : index
    %c0_50 = arith.constant 0 : index
    %25 = vector.load %arg28[%c0_49, %c0_50] : memref<1x128xf32, #tpu.memory_space<vmem>>, vector<1x128xf32>
    %c0_51 = arith.constant 0 : index
    %c0_52 = arith.constant 0 : index
    %26 = vector.load %arg0[%c0_51, %c0_52] : memref<16x24xf32, #tpu.memory_space<vmem>>, vector<16x24xf32>
    %cst = arith.constant dense<0.000000e+00> : vector<16x128xf32>
    %27 = tpu.matmul %26, %0, %cst {dimension_numbers = #tpu.dot_dimension_numbers<[1], [0], [0], [1], [0, 0, 1, 1], [], []>} : vector<16x24xf32>, vector<24x128xf32>, vector<16x128xf32> -> vector<16x128xf32>
    %28 = vector.broadcast %2 : vector<1x128xf32> to vector<16x128xf32>
    %29 = arith.addf %27, %28 : vector<16x128xf32>
    %cst_53 = arith.constant 0.000000e+00 : f32
    %30 = vector.broadcast %cst_53 : f32 to vector<2x32xf32>
    %31 = vector.extract_strided_slice %29 {offsets = [0, 0], sizes = [2, 128], strides = [1, 1]} : vector<16x128xf32> to vector<2x128xf32>
    %32 = arith.negf %31 : vector<2x128xf32>
    %33 = math.exp %32 : vector<2x128xf32>
    %cst_54 = arith.constant 1.000000e+00 : f32
    %34 = vector.broadcast %cst_54 : f32 to vector<2x128xf32>
    %35 = arith.addf %34, %33 : vector<2x128xf32>
    %36 = arith.divf %34, %35 : vector<2x128xf32>
    %37 = math.tanh %31 : vector<2x128xf32>
    %38 = vector.extract_strided_slice %36 {offsets = [0, 0], sizes = [2, 32], strides = [1, 1]} : vector<2x128xf32> to vector<2x32xf32>
    %39 = vector.extract_strided_slice %36 {offsets = [0, 32], sizes = [2, 32], strides = [1, 1]} : vector<2x128xf32> to vector<2x32xf32>
    %40 = vector.extract_strided_slice %37 {offsets = [0, 64], sizes = [2, 32], strides = [1, 1]} : vector<2x128xf32> to vector<2x32xf32>
    %41 = vector.extract_strided_slice %36 {offsets = [0, 96], sizes = [2, 32], strides = [1, 1]} : vector<2x128xf32> to vector<2x32xf32>
    %42 = arith.mulf %39, %30 : vector<2x32xf32>
    %43 = arith.mulf %38, %40 : vector<2x32xf32>
    %44 = arith.addf %42, %43 : vector<2x32xf32>
    %45 = math.tanh %44 : vector<2x32xf32>
    %46 = arith.mulf %41, %45 : vector<2x32xf32>
    %47 = vector.extract_strided_slice %29 {offsets = [2, 0], sizes = [2, 128], strides = [1, 1]} : vector<16x128xf32> to vector<2x128xf32>
    %cst_55 = arith.constant dense<0.000000e+00> : vector<2x128xf32>
    %48 = tpu.matmul %46, %1, %cst_55 {dimension_numbers = #tpu.dot_dimension_numbers<[1], [0], [0], [1], [0, 0, 1, 1], [], []>} : vector<2x32xf32>, vector<32x128xf32>, vector<2x128xf32> -> vector<2x128xf32>
    %49 = arith.addf %47, %48 : vector<2x128xf32>
    %50 = arith.negf %49 : vector<2x128xf32>
    %51 = math.exp %50 : vector<2x128xf32>
    %cst_56 = arith.constant 1.000000e+00 : f32
    %52 = vector.broadcast %cst_56 : f32 to vector<2x128xf32>
    %53 = arith.addf %52, %51 : vector<2x128xf32>
    %54 = arith.divf %52, %53 : vector<2x128xf32>
    %55 = math.tanh %49 : vector<2x128xf32>
    %56 = vector.extract_strided_slice %54 {offsets = [0, 0], sizes = [2, 32], strides = [1, 1]} : vector<2x128xf32> to vector<2x32xf32>
    %57 = vector.extract_strided_slice %54 {offsets = [0, 32], sizes = [2, 32], strides = [1, 1]} : vector<2x128xf32> to vector<2x32xf32>
    %58 = vector.extract_strided_slice %55 {offsets = [0, 64], sizes = [2, 32], strides = [1, 1]} : vector<2x128xf32> to vector<2x32xf32>
    %59 = vector.extract_strided_slice %54 {offsets = [0, 96], sizes = [2, 32], strides = [1, 1]} : vector<2x128xf32> to vector<2x32xf32>
    %60 = arith.mulf %57, %44 : vector<2x32xf32>
    %61 = arith.mulf %56, %58 : vector<2x32xf32>
    %62 = arith.addf %60, %61 : vector<2x32xf32>
    %63 = math.tanh %62 : vector<2x32xf32>
    %64 = arith.mulf %59, %63 : vector<2x32xf32>
    %65 = vector.extract_strided_slice %29 {offsets = [4, 0], sizes = [2, 128], strides = [1, 1]} : vector<16x128xf32> to vector<2x128xf32>
    %cst_57 = arith.constant dense<0.000000e+00> : vector<2x128xf32>
    %66 = tpu.matmul %64, %1, %cst_57 {dimension_numbers = #tpu.dot_dimension_numbers<[1], [0], [0], [1], [0, 0, 1, 1], [], []>} : vector<2x32xf32>, vector<32x128xf32>, vector<2x128xf32> -> vector<2x128xf32>
    %67 = arith.addf %65, %66 : vector<2x128xf32>
    %68 = arith.negf %67 : vector<2x128xf32>
    %69 = math.exp %68 : vector<2x128xf32>
    %cst_58 = arith.constant 1.000000e+00 : f32
    %70 = vector.broadcast %cst_58 : f32 to vector<2x128xf32>
    %71 = arith.addf %70, %69 : vector<2x128xf32>
    %72 = arith.divf %70, %71 : vector<2x128xf32>
    %73 = math.tanh %67 : vector<2x128xf32>
    %74 = vector.extract_strided_slice %72 {offsets = [0, 0], sizes = [2, 32], strides = [1, 1]} : vector<2x128xf32> to vector<2x32xf32>
    %75 = vector.extract_strided_slice %72 {offsets = [0, 32], sizes = [2, 32], strides = [1, 1]} : vector<2x128xf32> to vector<2x32xf32>
    %76 = vector.extract_strided_slice %73 {offsets = [0, 64], sizes = [2, 32], strides = [1, 1]} : vector<2x128xf32> to vector<2x32xf32>
    %77 = vector.extract_strided_slice %72 {offsets = [0, 96], sizes = [2, 32], strides = [1, 1]} : vector<2x128xf32> to vector<2x32xf32>
    %78 = arith.mulf %75, %62 : vector<2x32xf32>
    %79 = arith.mulf %74, %76 : vector<2x32xf32>
    %80 = arith.addf %78, %79 : vector<2x32xf32>
    %81 = math.tanh %80 : vector<2x32xf32>
    %82 = arith.mulf %77, %81 : vector<2x32xf32>
    %83 = vector.extract_strided_slice %29 {offsets = [6, 0], sizes = [2, 128], strides = [1, 1]} : vector<16x128xf32> to vector<2x128xf32>
    %cst_59 = arith.constant dense<0.000000e+00> : vector<2x128xf32>
    %84 = tpu.matmul %82, %1, %cst_59 {dimension_numbers = #tpu.dot_dimension_numbers<[1], [0], [0], [1], [0, 0, 1, 1], [], []>} : vector<2x32xf32>, vector<32x128xf32>, vector<2x128xf32> -> vector<2x128xf32>
    %85 = arith.addf %83, %84 : vector<2x128xf32>
    %86 = arith.negf %85 : vector<2x128xf32>
    %87 = math.exp %86 : vector<2x128xf32>
    %cst_60 = arith.constant 1.000000e+00 : f32
    %88 = vector.broadcast %cst_60 : f32 to vector<2x128xf32>
    %89 = arith.addf %88, %87 : vector<2x128xf32>
    %90 = arith.divf %88, %89 : vector<2x128xf32>
    %91 = math.tanh %85 : vector<2x128xf32>
    %92 = vector.extract_strided_slice %90 {offsets = [0, 0], sizes = [2, 32], strides = [1, 1]} : vector<2x128xf32> to vector<2x32xf32>
    %93 = vector.extract_strided_slice %90 {offsets = [0, 32], sizes = [2, 32], strides = [1, 1]} : vector<2x128xf32> to vector<2x32xf32>
    %94 = vector.extract_strided_slice %91 {offsets = [0, 64], sizes = [2, 32], strides = [1, 1]} : vector<2x128xf32> to vector<2x32xf32>
    %95 = vector.extract_strided_slice %90 {offsets = [0, 96], sizes = [2, 32], strides = [1, 1]} : vector<2x128xf32> to vector<2x32xf32>
    %96 = arith.mulf %93, %80 : vector<2x32xf32>
    %97 = arith.mulf %92, %94 : vector<2x32xf32>
    %98 = arith.addf %96, %97 : vector<2x32xf32>
    %99 = math.tanh %98 : vector<2x32xf32>
    %100 = arith.mulf %95, %99 : vector<2x32xf32>
    %101 = vector.extract_strided_slice %29 {offsets = [8, 0], sizes = [2, 128], strides = [1, 1]} : vector<16x128xf32> to vector<2x128xf32>
    %cst_61 = arith.constant dense<0.000000e+00> : vector<2x128xf32>
    %102 = tpu.matmul %100, %1, %cst_61 {dimension_numbers = #tpu.dot_dimension_numbers<[1], [0], [0], [1], [0, 0, 1, 1], [], []>} : vector<2x32xf32>, vector<32x128xf32>, vector<2x128xf32> -> vector<2x128xf32>
    %103 = arith.addf %101, %102 : vector<2x128xf32>
    %104 = arith.negf %103 : vector<2x128xf32>
    %105 = math.exp %104 : vector<2x128xf32>
    %cst_62 = arith.constant 1.000000e+00 : f32
    %106 = vector.broadcast %cst_62 : f32 to vector<2x128xf32>
    %107 = arith.addf %106, %105 : vector<2x128xf32>
    %108 = arith.divf %106, %107 : vector<2x128xf32>
    %109 = math.tanh %103 : vector<2x128xf32>
    %110 = vector.extract_strided_slice %108 {offsets = [0, 0], sizes = [2, 32], strides = [1, 1]} : vector<2x128xf32> to vector<2x32xf32>
    %111 = vector.extract_strided_slice %108 {offsets = [0, 32], sizes = [2, 32], strides = [1, 1]} : vector<2x128xf32> to vector<2x32xf32>
    %112 = vector.extract_strided_slice %109 {offsets = [0, 64], sizes = [2, 32], strides = [1, 1]} : vector<2x128xf32> to vector<2x32xf32>
    %113 = vector.extract_strided_slice %108 {offsets = [0, 96], sizes = [2, 32], strides = [1, 1]} : vector<2x128xf32> to vector<2x32xf32>
    %114 = arith.mulf %111, %98 : vector<2x32xf32>
    %115 = arith.mulf %110, %112 : vector<2x32xf32>
    %116 = arith.addf %114, %115 : vector<2x32xf32>
    %117 = math.tanh %116 : vector<2x32xf32>
    %118 = arith.mulf %113, %117 : vector<2x32xf32>
    %119 = vector.extract_strided_slice %29 {offsets = [10, 0], sizes = [2, 128], strides = [1, 1]} : vector<16x128xf32> to vector<2x128xf32>
    %cst_63 = arith.constant dense<0.000000e+00> : vector<2x128xf32>
    %120 = tpu.matmul %118, %1, %cst_63 {dimension_numbers = #tpu.dot_dimension_numbers<[1], [0], [0], [1], [0, 0, 1, 1], [], []>} : vector<2x32xf32>, vector<32x128xf32>, vector<2x128xf32> -> vector<2x128xf32>
    %121 = arith.addf %119, %120 : vector<2x128xf32>
    %122 = arith.negf %121 : vector<2x128xf32>
    %123 = math.exp %122 : vector<2x128xf32>
    %cst_64 = arith.constant 1.000000e+00 : f32
    %124 = vector.broadcast %cst_64 : f32 to vector<2x128xf32>
    %125 = arith.addf %124, %123 : vector<2x128xf32>
    %126 = arith.divf %124, %125 : vector<2x128xf32>
    %127 = math.tanh %121 : vector<2x128xf32>
    %128 = vector.extract_strided_slice %126 {offsets = [0, 0], sizes = [2, 32], strides = [1, 1]} : vector<2x128xf32> to vector<2x32xf32>
    %129 = vector.extract_strided_slice %126 {offsets = [0, 32], sizes = [2, 32], strides = [1, 1]} : vector<2x128xf32> to vector<2x32xf32>
    %130 = vector.extract_strided_slice %127 {offsets = [0, 64], sizes = [2, 32], strides = [1, 1]} : vector<2x128xf32> to vector<2x32xf32>
    %131 = vector.extract_strided_slice %126 {offsets = [0, 96], sizes = [2, 32], strides = [1, 1]} : vector<2x128xf32> to vector<2x32xf32>
    %132 = arith.mulf %129, %116 : vector<2x32xf32>
    %133 = arith.mulf %128, %130 : vector<2x32xf32>
    %134 = arith.addf %132, %133 : vector<2x32xf32>
    %135 = math.tanh %134 : vector<2x32xf32>
    %136 = arith.mulf %131, %135 : vector<2x32xf32>
    %137 = vector.extract_strided_slice %29 {offsets = [12, 0], sizes = [2, 128], strides = [1, 1]} : vector<16x128xf32> to vector<2x128xf32>
    %cst_65 = arith.constant dense<0.000000e+00> : vector<2x128xf32>
    %138 = tpu.matmul %136, %1, %cst_65 {dimension_numbers = #tpu.dot_dimension_numbers<[1], [0], [0], [1], [0, 0, 1, 1], [], []>} : vector<2x32xf32>, vector<32x128xf32>, vector<2x128xf32> -> vector<2x128xf32>
    %139 = arith.addf %137, %138 : vector<2x128xf32>
    %140 = arith.negf %139 : vector<2x128xf32>
    %141 = math.exp %140 : vector<2x128xf32>
    %cst_66 = arith.constant 1.000000e+00 : f32
    %142 = vector.broadcast %cst_66 : f32 to vector<2x128xf32>
    %143 = arith.addf %142, %141 : vector<2x128xf32>
    %144 = arith.divf %142, %143 : vector<2x128xf32>
    %145 = math.tanh %139 : vector<2x128xf32>
    %146 = vector.extract_strided_slice %144 {offsets = [0, 0], sizes = [2, 32], strides = [1, 1]} : vector<2x128xf32> to vector<2x32xf32>
    %147 = vector.extract_strided_slice %144 {offsets = [0, 32], sizes = [2, 32], strides = [1, 1]} : vector<2x128xf32> to vector<2x32xf32>
    %148 = vector.extract_strided_slice %145 {offsets = [0, 64], sizes = [2, 32], strides = [1, 1]} : vector<2x128xf32> to vector<2x32xf32>
    %149 = vector.extract_strided_slice %144 {offsets = [0, 96], sizes = [2, 32], strides = [1, 1]} : vector<2x128xf32> to vector<2x32xf32>
    %150 = arith.mulf %147, %134 : vector<2x32xf32>
    %151 = arith.mulf %146, %148 : vector<2x32xf32>
    %152 = arith.addf %150, %151 : vector<2x32xf32>
    %153 = math.tanh %152 : vector<2x32xf32>
    %154 = arith.mulf %149, %153 : vector<2x32xf32>
    %155 = vector.extract_strided_slice %29 {offsets = [14, 0], sizes = [2, 128], strides = [1, 1]} : vector<16x128xf32> to vector<2x128xf32>
    %cst_67 = arith.constant dense<0.000000e+00> : vector<2x128xf32>
    %156 = tpu.matmul %154, %1, %cst_67 {dimension_numbers = #tpu.dot_dimension_numbers<[1], [0], [0], [1], [0, 0, 1, 1], [], []>} : vector<2x32xf32>, vector<32x128xf32>, vector<2x128xf32> -> vector<2x128xf32>
    %157 = arith.addf %155, %156 : vector<2x128xf32>
    %158 = arith.negf %157 : vector<2x128xf32>
    %159 = math.exp %158 : vector<2x128xf32>
    %cst_68 = arith.constant 1.000000e+00 : f32
    %160 = vector.broadcast %cst_68 : f32 to vector<2x128xf32>
    %161 = arith.addf %160, %159 : vector<2x128xf32>
    %162 = arith.divf %160, %161 : vector<2x128xf32>
    %163 = math.tanh %157 : vector<2x128xf32>
    %164 = vector.extract_strided_slice %162 {offsets = [0, 0], sizes = [2, 32], strides = [1, 1]} : vector<2x128xf32> to vector<2x32xf32>
    %165 = vector.extract_strided_slice %162 {offsets = [0, 32], sizes = [2, 32], strides = [1, 1]} : vector<2x128xf32> to vector<2x32xf32>
    %166 = vector.extract_strided_slice %163 {offsets = [0, 64], sizes = [2, 32], strides = [1, 1]} : vector<2x128xf32> to vector<2x32xf32>
    %167 = vector.extract_strided_slice %162 {offsets = [0, 96], sizes = [2, 32], strides = [1, 1]} : vector<2x128xf32> to vector<2x32xf32>
    %168 = arith.mulf %165, %152 : vector<2x32xf32>
    %169 = arith.mulf %164, %166 : vector<2x32xf32>
    %170 = arith.addf %168, %169 : vector<2x32xf32>
    %171 = math.tanh %170 : vector<2x32xf32>
    %172 = arith.mulf %167, %171 : vector<2x32xf32>
    %173 = tpu.concatenate %46, %64, %82, %100, %118, %136, %154, %172 in 0 : vector<2x32xf32>, vector<2x32xf32>, vector<2x32xf32>, vector<2x32xf32>, vector<2x32xf32>, vector<2x32xf32>, vector<2x32xf32>, vector<2x32xf32> -> vector<16x32xf32>
    %cst_69 = arith.constant dense<0.000000e+00> : vector<16x128xf32>
    %174 = tpu.matmul %173, %3, %cst_69 {dimension_numbers = #tpu.dot_dimension_numbers<[1], [0], [0], [1], [0, 0, 1, 1], [], []>} : vector<16x32xf32>, vector<32x128xf32>, vector<16x128xf32> -> vector<16x128xf32>
    %175 = vector.broadcast %5 : vector<1x128xf32> to vector<16x128xf32>
    %176 = arith.addf %174, %175 : vector<16x128xf32>
    %cst_70 = arith.constant 0.000000e+00 : f32
    %177 = vector.broadcast %cst_70 : f32 to vector<2x32xf32>
    %178 = vector.extract_strided_slice %176 {offsets = [0, 0], sizes = [2, 128], strides = [1, 1]} : vector<16x128xf32> to vector<2x128xf32>
    %179 = arith.negf %178 : vector<2x128xf32>
    %180 = math.exp %179 : vector<2x128xf32>
    %cst_71 = arith.constant 1.000000e+00 : f32
    %181 = vector.broadcast %cst_71 : f32 to vector<2x128xf32>
    %182 = arith.addf %181, %180 : vector<2x128xf32>
    %183 = arith.divf %181, %182 : vector<2x128xf32>
    %184 = math.tanh %178 : vector<2x128xf32>
    %185 = vector.extract_strided_slice %183 {offsets = [0, 0], sizes = [2, 32], strides = [1, 1]} : vector<2x128xf32> to vector<2x32xf32>
    %186 = vector.extract_strided_slice %183 {offsets = [0, 32], sizes = [2, 32], strides = [1, 1]} : vector<2x128xf32> to vector<2x32xf32>
    %187 = vector.extract_strided_slice %184 {offsets = [0, 64], sizes = [2, 32], strides = [1, 1]} : vector<2x128xf32> to vector<2x32xf32>
    %188 = vector.extract_strided_slice %183 {offsets = [0, 96], sizes = [2, 32], strides = [1, 1]} : vector<2x128xf32> to vector<2x32xf32>
    %189 = arith.mulf %186, %177 : vector<2x32xf32>
    %190 = arith.mulf %185, %187 : vector<2x32xf32>
    %191 = arith.addf %189, %190 : vector<2x32xf32>
    %192 = math.tanh %191 : vector<2x32xf32>
    %193 = arith.mulf %188, %192 : vector<2x32xf32>
    %194 = vector.extract_strided_slice %176 {offsets = [2, 0], sizes = [2, 128], strides = [1, 1]} : vector<16x128xf32> to vector<2x128xf32>
    %cst_72 = arith.constant dense<0.000000e+00> : vector<2x128xf32>
    %195 = tpu.matmul %193, %4, %cst_72 {dimension_numbers = #tpu.dot_dimension_numbers<[1], [0], [0], [1], [0, 0, 1, 1], [], []>} : vector<2x32xf32>, vector<32x128xf32>, vector<2x128xf32> -> vector<2x128xf32>
    %196 = arith.addf %194, %195 : vector<2x128xf32>
    %197 = arith.negf %196 : vector<2x128xf32>
    %198 = math.exp %197 : vector<2x128xf32>
    %cst_73 = arith.constant 1.000000e+00 : f32
    %199 = vector.broadcast %cst_73 : f32 to vector<2x128xf32>
    %200 = arith.addf %199, %198 : vector<2x128xf32>
    %201 = arith.divf %199, %200 : vector<2x128xf32>
    %202 = math.tanh %196 : vector<2x128xf32>
    %203 = vector.extract_strided_slice %201 {offsets = [0, 0], sizes = [2, 32], strides = [1, 1]} : vector<2x128xf32> to vector<2x32xf32>
    %204 = vector.extract_strided_slice %201 {offsets = [0, 32], sizes = [2, 32], strides = [1, 1]} : vector<2x128xf32> to vector<2x32xf32>
    %205 = vector.extract_strided_slice %202 {offsets = [0, 64], sizes = [2, 32], strides = [1, 1]} : vector<2x128xf32> to vector<2x32xf32>
    %206 = vector.extract_strided_slice %201 {offsets = [0, 96], sizes = [2, 32], strides = [1, 1]} : vector<2x128xf32> to vector<2x32xf32>
    %207 = arith.mulf %204, %191 : vector<2x32xf32>
    %208 = arith.mulf %203, %205 : vector<2x32xf32>
    %209 = arith.addf %207, %208 : vector<2x32xf32>
    %210 = math.tanh %209 : vector<2x32xf32>
    %211 = arith.mulf %206, %210 : vector<2x32xf32>
    %212 = vector.extract_strided_slice %176 {offsets = [4, 0], sizes = [2, 128], strides = [1, 1]} : vector<16x128xf32> to vector<2x128xf32>
    %cst_74 = arith.constant dense<0.000000e+00> : vector<2x128xf32>
    %213 = tpu.matmul %211, %4, %cst_74 {dimension_numbers = #tpu.dot_dimension_numbers<[1], [0], [0], [1], [0, 0, 1, 1], [], []>} : vector<2x32xf32>, vector<32x128xf32>, vector<2x128xf32> -> vector<2x128xf32>
    %214 = arith.addf %212, %213 : vector<2x128xf32>
    %215 = arith.negf %214 : vector<2x128xf32>
    %216 = math.exp %215 : vector<2x128xf32>
    %cst_75 = arith.constant 1.000000e+00 : f32
    %217 = vector.broadcast %cst_75 : f32 to vector<2x128xf32>
    %218 = arith.addf %217, %216 : vector<2x128xf32>
    %219 = arith.divf %217, %218 : vector<2x128xf32>
    %220 = math.tanh %214 : vector<2x128xf32>
    %221 = vector.extract_strided_slice %219 {offsets = [0, 0], sizes = [2, 32], strides = [1, 1]} : vector<2x128xf32> to vector<2x32xf32>
    %222 = vector.extract_strided_slice %219 {offsets = [0, 32], sizes = [2, 32], strides = [1, 1]} : vector<2x128xf32> to vector<2x32xf32>
    %223 = vector.extract_strided_slice %220 {offsets = [0, 64], sizes = [2, 32], strides = [1, 1]} : vector<2x128xf32> to vector<2x32xf32>
    %224 = vector.extract_strided_slice %219 {offsets = [0, 96], sizes = [2, 32], strides = [1, 1]} : vector<2x128xf32> to vector<2x32xf32>
    %225 = arith.mulf %222, %209 : vector<2x32xf32>
    %226 = arith.mulf %221, %223 : vector<2x32xf32>
    %227 = arith.addf %225, %226 : vector<2x32xf32>
    %228 = math.tanh %227 : vector<2x32xf32>
    %229 = arith.mulf %224, %228 : vector<2x32xf32>
    %230 = vector.extract_strided_slice %176 {offsets = [6, 0], sizes = [2, 128], strides = [1, 1]} : vector<16x128xf32> to vector<2x128xf32>
    %cst_76 = arith.constant dense<0.000000e+00> : vector<2x128xf32>
    %231 = tpu.matmul %229, %4, %cst_76 {dimension_numbers = #tpu.dot_dimension_numbers<[1], [0], [0], [1], [0, 0, 1, 1], [], []>} : vector<2x32xf32>, vector<32x128xf32>, vector<2x128xf32> -> vector<2x128xf32>
    %232 = arith.addf %230, %231 : vector<2x128xf32>
    %233 = arith.negf %232 : vector<2x128xf32>
    %234 = math.exp %233 : vector<2x128xf32>
    %cst_77 = arith.constant 1.000000e+00 : f32
    %235 = vector.broadcast %cst_77 : f32 to vector<2x128xf32>
    %236 = arith.addf %235, %234 : vector<2x128xf32>
    %237 = arith.divf %235, %236 : vector<2x128xf32>
    %238 = math.tanh %232 : vector<2x128xf32>
    %239 = vector.extract_strided_slice %237 {offsets = [0, 0], sizes = [2, 32], strides = [1, 1]} : vector<2x128xf32> to vector<2x32xf32>
    %240 = vector.extract_strided_slice %237 {offsets = [0, 32], sizes = [2, 32], strides = [1, 1]} : vector<2x128xf32> to vector<2x32xf32>
    %241 = vector.extract_strided_slice %238 {offsets = [0, 64], sizes = [2, 32], strides = [1, 1]} : vector<2x128xf32> to vector<2x32xf32>
    %242 = vector.extract_strided_slice %237 {offsets = [0, 96], sizes = [2, 32], strides = [1, 1]} : vector<2x128xf32> to vector<2x32xf32>
    %243 = arith.mulf %240, %227 : vector<2x32xf32>
    %244 = arith.mulf %239, %241 : vector<2x32xf32>
    %245 = arith.addf %243, %244 : vector<2x32xf32>
    %246 = math.tanh %245 : vector<2x32xf32>
    %247 = arith.mulf %242, %246 : vector<2x32xf32>
    %248 = vector.extract_strided_slice %176 {offsets = [8, 0], sizes = [2, 128], strides = [1, 1]} : vector<16x128xf32> to vector<2x128xf32>
    %cst_78 = arith.constant dense<0.000000e+00> : vector<2x128xf32>
    %249 = tpu.matmul %247, %4, %cst_78 {dimension_numbers = #tpu.dot_dimension_numbers<[1], [0], [0], [1], [0, 0, 1, 1], [], []>} : vector<2x32xf32>, vector<32x128xf32>, vector<2x128xf32> -> vector<2x128xf32>
    %250 = arith.addf %248, %249 : vector<2x128xf32>
    %251 = arith.negf %250 : vector<2x128xf32>
    %252 = math.exp %251 : vector<2x128xf32>
    %cst_79 = arith.constant 1.000000e+00 : f32
    %253 = vector.broadcast %cst_79 : f32 to vector<2x128xf32>
    %254 = arith.addf %253, %252 : vector<2x128xf32>
    %255 = arith.divf %253, %254 : vector<2x128xf32>
    %256 = math.tanh %250 : vector<2x128xf32>
    %257 = vector.extract_strided_slice %255 {offsets = [0, 0], sizes = [2, 32], strides = [1, 1]} : vector<2x128xf32> to vector<2x32xf32>
    %258 = vector.extract_strided_slice %255 {offsets = [0, 32], sizes = [2, 32], strides = [1, 1]} : vector<2x128xf32> to vector<2x32xf32>
    %259 = vector.extract_strided_slice %256 {offsets = [0, 64], sizes = [2, 32], strides = [1, 1]} : vector<2x128xf32> to vector<2x32xf32>
    %260 = vector.extract_strided_slice %255 {offsets = [0, 96], sizes = [2, 32], strides = [1, 1]} : vector<2x128xf32> to vector<2x32xf32>
    %261 = arith.mulf %258, %245 : vector<2x32xf32>
    %262 = arith.mulf %257, %259 : vector<2x32xf32>
    %263 = arith.addf %261, %262 : vector<2x32xf32>
    %264 = math.tanh %263 : vector<2x32xf32>
    %265 = arith.mulf %260, %264 : vector<2x32xf32>
    %266 = vector.extract_strided_slice %176 {offsets = [10, 0], sizes = [2, 128], strides = [1, 1]} : vector<16x128xf32> to vector<2x128xf32>
    %cst_80 = arith.constant dense<0.000000e+00> : vector<2x128xf32>
    %267 = tpu.matmul %265, %4, %cst_80 {dimension_numbers = #tpu.dot_dimension_numbers<[1], [0], [0], [1], [0, 0, 1, 1], [], []>} : vector<2x32xf32>, vector<32x128xf32>, vector<2x128xf32> -> vector<2x128xf32>
    %268 = arith.addf %266, %267 : vector<2x128xf32>
    %269 = arith.negf %268 : vector<2x128xf32>
    %270 = math.exp %269 : vector<2x128xf32>
    %cst_81 = arith.constant 1.000000e+00 : f32
    %271 = vector.broadcast %cst_81 : f32 to vector<2x128xf32>
    %272 = arith.addf %271, %270 : vector<2x128xf32>
    %273 = arith.divf %271, %272 : vector<2x128xf32>
    %274 = math.tanh %268 : vector<2x128xf32>
    %275 = vector.extract_strided_slice %273 {offsets = [0, 0], sizes = [2, 32], strides = [1, 1]} : vector<2x128xf32> to vector<2x32xf32>
    %276 = vector.extract_strided_slice %273 {offsets = [0, 32], sizes = [2, 32], strides = [1, 1]} : vector<2x128xf32> to vector<2x32xf32>
    %277 = vector.extract_strided_slice %274 {offsets = [0, 64], sizes = [2, 32], strides = [1, 1]} : vector<2x128xf32> to vector<2x32xf32>
    %278 = vector.extract_strided_slice %273 {offsets = [0, 96], sizes = [2, 32], strides = [1, 1]} : vector<2x128xf32> to vector<2x32xf32>
    %279 = arith.mulf %276, %263 : vector<2x32xf32>
    %280 = arith.mulf %275, %277 : vector<2x32xf32>
    %281 = arith.addf %279, %280 : vector<2x32xf32>
    %282 = math.tanh %281 : vector<2x32xf32>
    %283 = arith.mulf %278, %282 : vector<2x32xf32>
    %284 = vector.extract_strided_slice %176 {offsets = [12, 0], sizes = [2, 128], strides = [1, 1]} : vector<16x128xf32> to vector<2x128xf32>
    %cst_82 = arith.constant dense<0.000000e+00> : vector<2x128xf32>
    %285 = tpu.matmul %283, %4, %cst_82 {dimension_numbers = #tpu.dot_dimension_numbers<[1], [0], [0], [1], [0, 0, 1, 1], [], []>} : vector<2x32xf32>, vector<32x128xf32>, vector<2x128xf32> -> vector<2x128xf32>
    %286 = arith.addf %284, %285 : vector<2x128xf32>
    %287 = arith.negf %286 : vector<2x128xf32>
    %288 = math.exp %287 : vector<2x128xf32>
    %cst_83 = arith.constant 1.000000e+00 : f32
    %289 = vector.broadcast %cst_83 : f32 to vector<2x128xf32>
    %290 = arith.addf %289, %288 : vector<2x128xf32>
    %291 = arith.divf %289, %290 : vector<2x128xf32>
    %292 = math.tanh %286 : vector<2x128xf32>
    %293 = vector.extract_strided_slice %291 {offsets = [0, 0], sizes = [2, 32], strides = [1, 1]} : vector<2x128xf32> to vector<2x32xf32>
    %294 = vector.extract_strided_slice %291 {offsets = [0, 32], sizes = [2, 32], strides = [1, 1]} : vector<2x128xf32> to vector<2x32xf32>
    %295 = vector.extract_strided_slice %292 {offsets = [0, 64], sizes = [2, 32], strides = [1, 1]} : vector<2x128xf32> to vector<2x32xf32>
    %296 = vector.extract_strided_slice %291 {offsets = [0, 96], sizes = [2, 32], strides = [1, 1]} : vector<2x128xf32> to vector<2x32xf32>
    %297 = arith.mulf %294, %281 : vector<2x32xf32>
    %298 = arith.mulf %293, %295 : vector<2x32xf32>
    %299 = arith.addf %297, %298 : vector<2x32xf32>
    %300 = math.tanh %299 : vector<2x32xf32>
    %301 = arith.mulf %296, %300 : vector<2x32xf32>
    %302 = vector.extract_strided_slice %176 {offsets = [14, 0], sizes = [2, 128], strides = [1, 1]} : vector<16x128xf32> to vector<2x128xf32>
    %cst_84 = arith.constant dense<0.000000e+00> : vector<2x128xf32>
    %303 = tpu.matmul %301, %4, %cst_84 {dimension_numbers = #tpu.dot_dimension_numbers<[1], [0], [0], [1], [0, 0, 1, 1], [], []>} : vector<2x32xf32>, vector<32x128xf32>, vector<2x128xf32> -> vector<2x128xf32>
    %304 = arith.addf %302, %303 : vector<2x128xf32>
    %305 = arith.negf %304 : vector<2x128xf32>
    %306 = math.exp %305 : vector<2x128xf32>
    %cst_85 = arith.constant 1.000000e+00 : f32
    %307 = vector.broadcast %cst_85 : f32 to vector<2x128xf32>
    %308 = arith.addf %307, %306 : vector<2x128xf32>
    %309 = arith.divf %307, %308 : vector<2x128xf32>
    %310 = math.tanh %304 : vector<2x128xf32>
    %311 = vector.extract_strided_slice %309 {offsets = [0, 0], sizes = [2, 32], strides = [1, 1]} : vector<2x128xf32> to vector<2x32xf32>
    %312 = vector.extract_strided_slice %309 {offsets = [0, 32], sizes = [2, 32], strides = [1, 1]} : vector<2x128xf32> to vector<2x32xf32>
    %313 = vector.extract_strided_slice %310 {offsets = [0, 64], sizes = [2, 32], strides = [1, 1]} : vector<2x128xf32> to vector<2x32xf32>
    %314 = vector.extract_strided_slice %309 {offsets = [0, 96], sizes = [2, 32], strides = [1, 1]} : vector<2x128xf32> to vector<2x32xf32>
    %315 = arith.mulf %312, %299 : vector<2x32xf32>
    %316 = arith.mulf %311, %313 : vector<2x32xf32>
    %317 = arith.addf %315, %316 : vector<2x32xf32>
    %318 = math.tanh %317 : vector<2x32xf32>
    %319 = arith.mulf %314, %318 : vector<2x32xf32>
    %320 = tpu.concatenate %193, %211, %229, %247, %265, %283, %301, %319 in 0 : vector<2x32xf32>, vector<2x32xf32>, vector<2x32xf32>, vector<2x32xf32>, vector<2x32xf32>, vector<2x32xf32>, vector<2x32xf32>, vector<2x32xf32> -> vector<16x32xf32>
    %321 = vector.extract_strided_slice %320 {offsets = [0, 0], sizes = [2, 32], strides = [1, 1]} : vector<16x32xf32> to vector<2x32xf32>
    %322 = vector.extract_strided_slice %320 {offsets = [2, 0], sizes = [2, 32], strides = [1, 1]} : vector<16x32xf32> to vector<2x32xf32>
    %323 = tpu.concatenate %321, %322 in 1 : vector<2x32xf32>, vector<2x32xf32> -> vector<2x64xf32>
    %324 = vector.extract_strided_slice %320 {offsets = [4, 0], sizes = [2, 32], strides = [1, 1]} : vector<16x32xf32> to vector<2x32xf32>
    %325 = vector.extract_strided_slice %320 {offsets = [6, 0], sizes = [2, 32], strides = [1, 1]} : vector<16x32xf32> to vector<2x32xf32>
    %326 = tpu.concatenate %324, %325 in 1 : vector<2x32xf32>, vector<2x32xf32> -> vector<2x64xf32>
    %327 = vector.extract_strided_slice %320 {offsets = [8, 0], sizes = [2, 32], strides = [1, 1]} : vector<16x32xf32> to vector<2x32xf32>
    %328 = vector.extract_strided_slice %320 {offsets = [10, 0], sizes = [2, 32], strides = [1, 1]} : vector<16x32xf32> to vector<2x32xf32>
    %329 = tpu.concatenate %327, %328 in 1 : vector<2x32xf32>, vector<2x32xf32> -> vector<2x64xf32>
    %330 = vector.extract_strided_slice %320 {offsets = [12, 0], sizes = [2, 32], strides = [1, 1]} : vector<16x32xf32> to vector<2x32xf32>
    %331 = vector.extract_strided_slice %320 {offsets = [14, 0], sizes = [2, 32], strides = [1, 1]} : vector<16x32xf32> to vector<2x32xf32>
    %332 = tpu.concatenate %330, %331 in 1 : vector<2x32xf32>, vector<2x32xf32> -> vector<2x64xf32>
    %333 = tpu.concatenate %323, %326, %329, %332 in 0 : vector<2x64xf32>, vector<2x64xf32>, vector<2x64xf32>, vector<2x64xf32> -> vector<8x64xf32>
    %cst_86 = arith.constant dense<0.000000e+00> : vector<8x128xf32>
    %334 = tpu.matmul %333, %6, %cst_86 {dimension_numbers = #tpu.dot_dimension_numbers<[1], [0], [0], [1], [0, 0, 1, 1], [], []>} : vector<8x64xf32>, vector<64x128xf32>, vector<8x128xf32> -> vector<8x128xf32>
    %335 = vector.broadcast %8 : vector<1x128xf32> to vector<8x128xf32>
    %336 = arith.addf %334, %335 : vector<8x128xf32>
    %cst_87 = arith.constant 0.000000e+00 : f32
    %337 = vector.broadcast %cst_87 : f32 to vector<2x32xf32>
    %338 = vector.extract_strided_slice %336 {offsets = [0, 0], sizes = [2, 128], strides = [1, 1]} : vector<8x128xf32> to vector<2x128xf32>
    %339 = arith.negf %338 : vector<2x128xf32>
    %340 = math.exp %339 : vector<2x128xf32>
    %cst_88 = arith.constant 1.000000e+00 : f32
    %341 = vector.broadcast %cst_88 : f32 to vector<2x128xf32>
    %342 = arith.addf %341, %340 : vector<2x128xf32>
    %343 = arith.divf %341, %342 : vector<2x128xf32>
    %344 = math.tanh %338 : vector<2x128xf32>
    %345 = vector.extract_strided_slice %343 {offsets = [0, 0], sizes = [2, 32], strides = [1, 1]} : vector<2x128xf32> to vector<2x32xf32>
    %346 = vector.extract_strided_slice %343 {offsets = [0, 32], sizes = [2, 32], strides = [1, 1]} : vector<2x128xf32> to vector<2x32xf32>
    %347 = vector.extract_strided_slice %344 {offsets = [0, 64], sizes = [2, 32], strides = [1, 1]} : vector<2x128xf32> to vector<2x32xf32>
    %348 = vector.extract_strided_slice %343 {offsets = [0, 96], sizes = [2, 32], strides = [1, 1]} : vector<2x128xf32> to vector<2x32xf32>
    %349 = arith.mulf %346, %337 : vector<2x32xf32>
    %350 = arith.mulf %345, %347 : vector<2x32xf32>
    %351 = arith.addf %349, %350 : vector<2x32xf32>
    %352 = math.tanh %351 : vector<2x32xf32>
    %353 = arith.mulf %348, %352 : vector<2x32xf32>
    %354 = vector.extract_strided_slice %336 {offsets = [2, 0], sizes = [2, 128], strides = [1, 1]} : vector<8x128xf32> to vector<2x128xf32>
    %cst_89 = arith.constant dense<0.000000e+00> : vector<2x128xf32>
    %355 = tpu.matmul %353, %7, %cst_89 {dimension_numbers = #tpu.dot_dimension_numbers<[1], [0], [0], [1], [0, 0, 1, 1], [], []>} : vector<2x32xf32>, vector<32x128xf32>, vector<2x128xf32> -> vector<2x128xf32>
    %356 = arith.addf %354, %355 : vector<2x128xf32>
    %357 = arith.negf %356 : vector<2x128xf32>
    %358 = math.exp %357 : vector<2x128xf32>
    %cst_90 = arith.constant 1.000000e+00 : f32
    %359 = vector.broadcast %cst_90 : f32 to vector<2x128xf32>
    %360 = arith.addf %359, %358 : vector<2x128xf32>
    %361 = arith.divf %359, %360 : vector<2x128xf32>
    %362 = math.tanh %356 : vector<2x128xf32>
    %363 = vector.extract_strided_slice %361 {offsets = [0, 0], sizes = [2, 32], strides = [1, 1]} : vector<2x128xf32> to vector<2x32xf32>
    %364 = vector.extract_strided_slice %361 {offsets = [0, 32], sizes = [2, 32], strides = [1, 1]} : vector<2x128xf32> to vector<2x32xf32>
    %365 = vector.extract_strided_slice %362 {offsets = [0, 64], sizes = [2, 32], strides = [1, 1]} : vector<2x128xf32> to vector<2x32xf32>
    %366 = vector.extract_strided_slice %361 {offsets = [0, 96], sizes = [2, 32], strides = [1, 1]} : vector<2x128xf32> to vector<2x32xf32>
    %367 = arith.mulf %364, %351 : vector<2x32xf32>
    %368 = arith.mulf %363, %365 : vector<2x32xf32>
    %369 = arith.addf %367, %368 : vector<2x32xf32>
    %370 = math.tanh %369 : vector<2x32xf32>
    %371 = arith.mulf %366, %370 : vector<2x32xf32>
    %372 = vector.extract_strided_slice %336 {offsets = [4, 0], sizes = [2, 128], strides = [1, 1]} : vector<8x128xf32> to vector<2x128xf32>
    %cst_91 = arith.constant dense<0.000000e+00> : vector<2x128xf32>
    %373 = tpu.matmul %371, %7, %cst_91 {dimension_numbers = #tpu.dot_dimension_numbers<[1], [0], [0], [1], [0, 0, 1, 1], [], []>} : vector<2x32xf32>, vector<32x128xf32>, vector<2x128xf32> -> vector<2x128xf32>
    %374 = arith.addf %372, %373 : vector<2x128xf32>
    %375 = arith.negf %374 : vector<2x128xf32>
    %376 = math.exp %375 : vector<2x128xf32>
    %cst_92 = arith.constant 1.000000e+00 : f32
    %377 = vector.broadcast %cst_92 : f32 to vector<2x128xf32>
    %378 = arith.addf %377, %376 : vector<2x128xf32>
    %379 = arith.divf %377, %378 : vector<2x128xf32>
    %380 = math.tanh %374 : vector<2x128xf32>
    %381 = vector.extract_strided_slice %379 {offsets = [0, 0], sizes = [2, 32], strides = [1, 1]} : vector<2x128xf32> to vector<2x32xf32>
    %382 = vector.extract_strided_slice %379 {offsets = [0, 32], sizes = [2, 32], strides = [1, 1]} : vector<2x128xf32> to vector<2x32xf32>
    %383 = vector.extract_strided_slice %380 {offsets = [0, 64], sizes = [2, 32], strides = [1, 1]} : vector<2x128xf32> to vector<2x32xf32>
    %384 = vector.extract_strided_slice %379 {offsets = [0, 96], sizes = [2, 32], strides = [1, 1]} : vector<2x128xf32> to vector<2x32xf32>
    %385 = arith.mulf %382, %369 : vector<2x32xf32>
    %386 = arith.mulf %381, %383 : vector<2x32xf32>
    %387 = arith.addf %385, %386 : vector<2x32xf32>
    %388 = math.tanh %387 : vector<2x32xf32>
    %389 = arith.mulf %384, %388 : vector<2x32xf32>
    %390 = vector.extract_strided_slice %336 {offsets = [6, 0], sizes = [2, 128], strides = [1, 1]} : vector<8x128xf32> to vector<2x128xf32>
    %cst_93 = arith.constant dense<0.000000e+00> : vector<2x128xf32>
    %391 = tpu.matmul %389, %7, %cst_93 {dimension_numbers = #tpu.dot_dimension_numbers<[1], [0], [0], [1], [0, 0, 1, 1], [], []>} : vector<2x32xf32>, vector<32x128xf32>, vector<2x128xf32> -> vector<2x128xf32>
    %392 = arith.addf %390, %391 : vector<2x128xf32>
    %393 = arith.negf %392 : vector<2x128xf32>
    %394 = math.exp %393 : vector<2x128xf32>
    %cst_94 = arith.constant 1.000000e+00 : f32
    %395 = vector.broadcast %cst_94 : f32 to vector<2x128xf32>
    %396 = arith.addf %395, %394 : vector<2x128xf32>
    %397 = arith.divf %395, %396 : vector<2x128xf32>
    %398 = math.tanh %392 : vector<2x128xf32>
    %399 = vector.extract_strided_slice %397 {offsets = [0, 0], sizes = [2, 32], strides = [1, 1]} : vector<2x128xf32> to vector<2x32xf32>
    %400 = vector.extract_strided_slice %397 {offsets = [0, 32], sizes = [2, 32], strides = [1, 1]} : vector<2x128xf32> to vector<2x32xf32>
    %401 = vector.extract_strided_slice %398 {offsets = [0, 64], sizes = [2, 32], strides = [1, 1]} : vector<2x128xf32> to vector<2x32xf32>
    %402 = vector.extract_strided_slice %397 {offsets = [0, 96], sizes = [2, 32], strides = [1, 1]} : vector<2x128xf32> to vector<2x32xf32>
    %403 = arith.mulf %400, %387 : vector<2x32xf32>
    %404 = arith.mulf %399, %401 : vector<2x32xf32>
    %405 = arith.addf %403, %404 : vector<2x32xf32>
    %406 = math.tanh %405 : vector<2x32xf32>
    %407 = arith.mulf %402, %406 : vector<2x32xf32>
    %408 = tpu.concatenate %353, %371, %389, %407 in 0 : vector<2x32xf32>, vector<2x32xf32>, vector<2x32xf32>, vector<2x32xf32> -> vector<8x32xf32>
    %cst_95 = arith.constant dense<0.000000e+00> : vector<8x128xf32>
    %409 = tpu.matmul %408, %9, %cst_95 {dimension_numbers = #tpu.dot_dimension_numbers<[1], [0], [0], [1], [0, 0, 1, 1], [], []>} : vector<8x32xf32>, vector<32x128xf32>, vector<8x128xf32> -> vector<8x128xf32>
    %410 = vector.broadcast %11 : vector<1x128xf32> to vector<8x128xf32>
    %411 = arith.addf %409, %410 : vector<8x128xf32>
    %cst_96 = arith.constant 0.000000e+00 : f32
    %412 = vector.broadcast %cst_96 : f32 to vector<2x32xf32>
    %413 = vector.extract_strided_slice %411 {offsets = [0, 0], sizes = [2, 128], strides = [1, 1]} : vector<8x128xf32> to vector<2x128xf32>
    %414 = arith.negf %413 : vector<2x128xf32>
    %415 = math.exp %414 : vector<2x128xf32>
    %cst_97 = arith.constant 1.000000e+00 : f32
    %416 = vector.broadcast %cst_97 : f32 to vector<2x128xf32>
    %417 = arith.addf %416, %415 : vector<2x128xf32>
    %418 = arith.divf %416, %417 : vector<2x128xf32>
    %419 = math.tanh %413 : vector<2x128xf32>
    %420 = vector.extract_strided_slice %418 {offsets = [0, 0], sizes = [2, 32], strides = [1, 1]} : vector<2x128xf32> to vector<2x32xf32>
    %421 = vector.extract_strided_slice %418 {offsets = [0, 32], sizes = [2, 32], strides = [1, 1]} : vector<2x128xf32> to vector<2x32xf32>
    %422 = vector.extract_strided_slice %419 {offsets = [0, 64], sizes = [2, 32], strides = [1, 1]} : vector<2x128xf32> to vector<2x32xf32>
    %423 = vector.extract_strided_slice %418 {offsets = [0, 96], sizes = [2, 32], strides = [1, 1]} : vector<2x128xf32> to vector<2x32xf32>
    %424 = arith.mulf %421, %412 : vector<2x32xf32>
    %425 = arith.mulf %420, %422 : vector<2x32xf32>
    %426 = arith.addf %424, %425 : vector<2x32xf32>
    %427 = math.tanh %426 : vector<2x32xf32>
    %428 = arith.mulf %423, %427 : vector<2x32xf32>
    %429 = vector.extract_strided_slice %411 {offsets = [2, 0], sizes = [2, 128], strides = [1, 1]} : vector<8x128xf32> to vector<2x128xf32>
    %cst_98 = arith.constant dense<0.000000e+00> : vector<2x128xf32>
    %430 = tpu.matmul %428, %10, %cst_98 {dimension_numbers = #tpu.dot_dimension_numbers<[1], [0], [0], [1], [0, 0, 1, 1], [], []>} : vector<2x32xf32>, vector<32x128xf32>, vector<2x128xf32> -> vector<2x128xf32>
    %431 = arith.addf %429, %430 : vector<2x128xf32>
    %432 = arith.negf %431 : vector<2x128xf32>
    %433 = math.exp %432 : vector<2x128xf32>
    %cst_99 = arith.constant 1.000000e+00 : f32
    %434 = vector.broadcast %cst_99 : f32 to vector<2x128xf32>
    %435 = arith.addf %434, %433 : vector<2x128xf32>
    %436 = arith.divf %434, %435 : vector<2x128xf32>
    %437 = math.tanh %431 : vector<2x128xf32>
    %438 = vector.extract_strided_slice %436 {offsets = [0, 0], sizes = [2, 32], strides = [1, 1]} : vector<2x128xf32> to vector<2x32xf32>
    %439 = vector.extract_strided_slice %436 {offsets = [0, 32], sizes = [2, 32], strides = [1, 1]} : vector<2x128xf32> to vector<2x32xf32>
    %440 = vector.extract_strided_slice %437 {offsets = [0, 64], sizes = [2, 32], strides = [1, 1]} : vector<2x128xf32> to vector<2x32xf32>
    %441 = vector.extract_strided_slice %436 {offsets = [0, 96], sizes = [2, 32], strides = [1, 1]} : vector<2x128xf32> to vector<2x32xf32>
    %442 = arith.mulf %439, %426 : vector<2x32xf32>
    %443 = arith.mulf %438, %440 : vector<2x32xf32>
    %444 = arith.addf %442, %443 : vector<2x32xf32>
    %445 = math.tanh %444 : vector<2x32xf32>
    %446 = arith.mulf %441, %445 : vector<2x32xf32>
    %447 = vector.extract_strided_slice %411 {offsets = [4, 0], sizes = [2, 128], strides = [1, 1]} : vector<8x128xf32> to vector<2x128xf32>
    %cst_100 = arith.constant dense<0.000000e+00> : vector<2x128xf32>
    %448 = tpu.matmul %446, %10, %cst_100 {dimension_numbers = #tpu.dot_dimension_numbers<[1], [0], [0], [1], [0, 0, 1, 1], [], []>} : vector<2x32xf32>, vector<32x128xf32>, vector<2x128xf32> -> vector<2x128xf32>
    %449 = arith.addf %447, %448 : vector<2x128xf32>
    %450 = arith.negf %449 : vector<2x128xf32>
    %451 = math.exp %450 : vector<2x128xf32>
    %cst_101 = arith.constant 1.000000e+00 : f32
    %452 = vector.broadcast %cst_101 : f32 to vector<2x128xf32>
    %453 = arith.addf %452, %451 : vector<2x128xf32>
    %454 = arith.divf %452, %453 : vector<2x128xf32>
    %455 = math.tanh %449 : vector<2x128xf32>
    %456 = vector.extract_strided_slice %454 {offsets = [0, 0], sizes = [2, 32], strides = [1, 1]} : vector<2x128xf32> to vector<2x32xf32>
    %457 = vector.extract_strided_slice %454 {offsets = [0, 32], sizes = [2, 32], strides = [1, 1]} : vector<2x128xf32> to vector<2x32xf32>
    %458 = vector.extract_strided_slice %455 {offsets = [0, 64], sizes = [2, 32], strides = [1, 1]} : vector<2x128xf32> to vector<2x32xf32>
    %459 = vector.extract_strided_slice %454 {offsets = [0, 96], sizes = [2, 32], strides = [1, 1]} : vector<2x128xf32> to vector<2x32xf32>
    %460 = arith.mulf %457, %444 : vector<2x32xf32>
    %461 = arith.mulf %456, %458 : vector<2x32xf32>
    %462 = arith.addf %460, %461 : vector<2x32xf32>
    %463 = math.tanh %462 : vector<2x32xf32>
    %464 = arith.mulf %459, %463 : vector<2x32xf32>
    %465 = vector.extract_strided_slice %411 {offsets = [6, 0], sizes = [2, 128], strides = [1, 1]} : vector<8x128xf32> to vector<2x128xf32>
    %cst_102 = arith.constant dense<0.000000e+00> : vector<2x128xf32>
    %466 = tpu.matmul %464, %10, %cst_102 {dimension_numbers = #tpu.dot_dimension_numbers<[1], [0], [0], [1], [0, 0, 1, 1], [], []>} : vector<2x32xf32>, vector<32x128xf32>, vector<2x128xf32> -> vector<2x128xf32>
    %467 = arith.addf %465, %466 : vector<2x128xf32>
    %468 = arith.negf %467 : vector<2x128xf32>
    %469 = math.exp %468 : vector<2x128xf32>
    %cst_103 = arith.constant 1.000000e+00 : f32
    %470 = vector.broadcast %cst_103 : f32 to vector<2x128xf32>
    %471 = arith.addf %470, %469 : vector<2x128xf32>
    %472 = arith.divf %470, %471 : vector<2x128xf32>
    %473 = math.tanh %467 : vector<2x128xf32>
    %474 = vector.extract_strided_slice %472 {offsets = [0, 0], sizes = [2, 32], strides = [1, 1]} : vector<2x128xf32> to vector<2x32xf32>
    %475 = vector.extract_strided_slice %472 {offsets = [0, 32], sizes = [2, 32], strides = [1, 1]} : vector<2x128xf32> to vector<2x32xf32>
    %476 = vector.extract_strided_slice %473 {offsets = [0, 64], sizes = [2, 32], strides = [1, 1]} : vector<2x128xf32> to vector<2x32xf32>
    %477 = vector.extract_strided_slice %472 {offsets = [0, 96], sizes = [2, 32], strides = [1, 1]} : vector<2x128xf32> to vector<2x32xf32>
    %478 = arith.mulf %475, %462 : vector<2x32xf32>
    %479 = arith.mulf %474, %476 : vector<2x32xf32>
    %480 = arith.addf %478, %479 : vector<2x32xf32>
    %481 = math.tanh %480 : vector<2x32xf32>
    %482 = arith.mulf %477, %481 : vector<2x32xf32>
    %483 = tpu.concatenate %428, %446, %464, %482 in 0 : vector<2x32xf32>, vector<2x32xf32>, vector<2x32xf32>, vector<2x32xf32> -> vector<8x32xf32>
    %cst_104 = arith.constant dense<0.000000e+00> : vector<8x128xf32>
    %484 = tpu.matmul %483, %12, %cst_104 {dimension_numbers = #tpu.dot_dimension_numbers<[1], [0], [0], [1], [0, 0, 1, 1], [], []>} : vector<8x32xf32>, vector<32x128xf32>, vector<8x128xf32> -> vector<8x128xf32>
    %485 = vector.broadcast %14 : vector<1x128xf32> to vector<8x128xf32>
    %486 = arith.addf %484, %485 : vector<8x128xf32>
    %cst_105 = arith.constant 0.000000e+00 : f32
    %487 = vector.broadcast %cst_105 : f32 to vector<2x32xf32>
    %488 = vector.extract_strided_slice %486 {offsets = [0, 0], sizes = [2, 128], strides = [1, 1]} : vector<8x128xf32> to vector<2x128xf32>
    %489 = arith.negf %488 : vector<2x128xf32>
    %490 = math.exp %489 : vector<2x128xf32>
    %cst_106 = arith.constant 1.000000e+00 : f32
    %491 = vector.broadcast %cst_106 : f32 to vector<2x128xf32>
    %492 = arith.addf %491, %490 : vector<2x128xf32>
    %493 = arith.divf %491, %492 : vector<2x128xf32>
    %494 = math.tanh %488 : vector<2x128xf32>
    %495 = vector.extract_strided_slice %493 {offsets = [0, 0], sizes = [2, 32], strides = [1, 1]} : vector<2x128xf32> to vector<2x32xf32>
    %496 = vector.extract_strided_slice %493 {offsets = [0, 32], sizes = [2, 32], strides = [1, 1]} : vector<2x128xf32> to vector<2x32xf32>
    %497 = vector.extract_strided_slice %494 {offsets = [0, 64], sizes = [2, 32], strides = [1, 1]} : vector<2x128xf32> to vector<2x32xf32>
    %498 = vector.extract_strided_slice %493 {offsets = [0, 96], sizes = [2, 32], strides = [1, 1]} : vector<2x128xf32> to vector<2x32xf32>
    %499 = arith.mulf %496, %487 : vector<2x32xf32>
    %500 = arith.mulf %495, %497 : vector<2x32xf32>
    %501 = arith.addf %499, %500 : vector<2x32xf32>
    %502 = math.tanh %501 : vector<2x32xf32>
    %503 = arith.mulf %498, %502 : vector<2x32xf32>
    %504 = vector.extract_strided_slice %486 {offsets = [2, 0], sizes = [2, 128], strides = [1, 1]} : vector<8x128xf32> to vector<2x128xf32>
    %cst_107 = arith.constant dense<0.000000e+00> : vector<2x128xf32>
    %505 = tpu.matmul %503, %13, %cst_107 {dimension_numbers = #tpu.dot_dimension_numbers<[1], [0], [0], [1], [0, 0, 1, 1], [], []>} : vector<2x32xf32>, vector<32x128xf32>, vector<2x128xf32> -> vector<2x128xf32>
    %506 = arith.addf %504, %505 : vector<2x128xf32>
    %507 = arith.negf %506 : vector<2x128xf32>
    %508 = math.exp %507 : vector<2x128xf32>
    %cst_108 = arith.constant 1.000000e+00 : f32
    %509 = vector.broadcast %cst_108 : f32 to vector<2x128xf32>
    %510 = arith.addf %509, %508 : vector<2x128xf32>
    %511 = arith.divf %509, %510 : vector<2x128xf32>
    %512 = math.tanh %506 : vector<2x128xf32>
    %513 = vector.extract_strided_slice %511 {offsets = [0, 0], sizes = [2, 32], strides = [1, 1]} : vector<2x128xf32> to vector<2x32xf32>
    %514 = vector.extract_strided_slice %511 {offsets = [0, 32], sizes = [2, 32], strides = [1, 1]} : vector<2x128xf32> to vector<2x32xf32>
    %515 = vector.extract_strided_slice %512 {offsets = [0, 64], sizes = [2, 32], strides = [1, 1]} : vector<2x128xf32> to vector<2x32xf32>
    %516 = vector.extract_strided_slice %511 {offsets = [0, 96], sizes = [2, 32], strides = [1, 1]} : vector<2x128xf32> to vector<2x32xf32>
    %517 = arith.mulf %514, %501 : vector<2x32xf32>
    %518 = arith.mulf %513, %515 : vector<2x32xf32>
    %519 = arith.addf %517, %518 : vector<2x32xf32>
    %520 = math.tanh %519 : vector<2x32xf32>
    %521 = arith.mulf %516, %520 : vector<2x32xf32>
    %522 = vector.extract_strided_slice %486 {offsets = [4, 0], sizes = [2, 128], strides = [1, 1]} : vector<8x128xf32> to vector<2x128xf32>
    %cst_109 = arith.constant dense<0.000000e+00> : vector<2x128xf32>
    %523 = tpu.matmul %521, %13, %cst_109 {dimension_numbers = #tpu.dot_dimension_numbers<[1], [0], [0], [1], [0, 0, 1, 1], [], []>} : vector<2x32xf32>, vector<32x128xf32>, vector<2x128xf32> -> vector<2x128xf32>
    %524 = arith.addf %522, %523 : vector<2x128xf32>
    %525 = arith.negf %524 : vector<2x128xf32>
    %526 = math.exp %525 : vector<2x128xf32>
    %cst_110 = arith.constant 1.000000e+00 : f32
    %527 = vector.broadcast %cst_110 : f32 to vector<2x128xf32>
    %528 = arith.addf %527, %526 : vector<2x128xf32>
    %529 = arith.divf %527, %528 : vector<2x128xf32>
    %530 = math.tanh %524 : vector<2x128xf32>
    %531 = vector.extract_strided_slice %529 {offsets = [0, 0], sizes = [2, 32], strides = [1, 1]} : vector<2x128xf32> to vector<2x32xf32>
    %532 = vector.extract_strided_slice %529 {offsets = [0, 32], sizes = [2, 32], strides = [1, 1]} : vector<2x128xf32> to vector<2x32xf32>
    %533 = vector.extract_strided_slice %530 {offsets = [0, 64], sizes = [2, 32], strides = [1, 1]} : vector<2x128xf32> to vector<2x32xf32>
    %534 = vector.extract_strided_slice %529 {offsets = [0, 96], sizes = [2, 32], strides = [1, 1]} : vector<2x128xf32> to vector<2x32xf32>
    %535 = arith.mulf %532, %519 : vector<2x32xf32>
    %536 = arith.mulf %531, %533 : vector<2x32xf32>
    %537 = arith.addf %535, %536 : vector<2x32xf32>
    %538 = math.tanh %537 : vector<2x32xf32>
    %539 = arith.mulf %534, %538 : vector<2x32xf32>
    %540 = vector.extract_strided_slice %486 {offsets = [6, 0], sizes = [2, 128], strides = [1, 1]} : vector<8x128xf32> to vector<2x128xf32>
    %cst_111 = arith.constant dense<0.000000e+00> : vector<2x128xf32>
    %541 = tpu.matmul %539, %13, %cst_111 {dimension_numbers = #tpu.dot_dimension_numbers<[1], [0], [0], [1], [0, 0, 1, 1], [], []>} : vector<2x32xf32>, vector<32x128xf32>, vector<2x128xf32> -> vector<2x128xf32>
    %542 = arith.addf %540, %541 : vector<2x128xf32>
    %543 = arith.negf %542 : vector<2x128xf32>
    %544 = math.exp %543 : vector<2x128xf32>
    %cst_112 = arith.constant 1.000000e+00 : f32
    %545 = vector.broadcast %cst_112 : f32 to vector<2x128xf32>
    %546 = arith.addf %545, %544 : vector<2x128xf32>
    %547 = arith.divf %545, %546 : vector<2x128xf32>
    %548 = math.tanh %542 : vector<2x128xf32>
    %549 = vector.extract_strided_slice %547 {offsets = [0, 0], sizes = [2, 32], strides = [1, 1]} : vector<2x128xf32> to vector<2x32xf32>
    %550 = vector.extract_strided_slice %547 {offsets = [0, 32], sizes = [2, 32], strides = [1, 1]} : vector<2x128xf32> to vector<2x32xf32>
    %551 = vector.extract_strided_slice %548 {offsets = [0, 64], sizes = [2, 32], strides = [1, 1]} : vector<2x128xf32> to vector<2x32xf32>
    %552 = vector.extract_strided_slice %547 {offsets = [0, 96], sizes = [2, 32], strides = [1, 1]} : vector<2x128xf32> to vector<2x32xf32>
    %553 = arith.mulf %550, %537 : vector<2x32xf32>
    %554 = arith.mulf %549, %551 : vector<2x32xf32>
    %555 = arith.addf %553, %554 : vector<2x32xf32>
    %556 = math.tanh %555 : vector<2x32xf32>
    %557 = arith.mulf %552, %556 : vector<2x32xf32>
    %c0_113 = arith.constant 0 : index
    %c0_114 = arith.constant 0 : index
    %558 = vector.load %arg2[%c0_113, %c0_114] : memref<28x32xf32, #tpu.memory_space<vmem>>, vector<28x32xf32>
    %559 = tpu.iota {dimensions = array<i32: 1>} : vector<1x28xi32>
    %c0_115 = arith.constant 0 : index
    %c0_116 = arith.constant 0 : index
    %560 = memref.load %arg1[%c0_115, %c0_116] : memref<2x4xi32, #tpu.memory_space<smem>>
    %561 = vector.broadcast %560 : i32 to vector<1x28xi32>
    %562 = arith.cmpi eq, %559, %561 : vector<1x28xi32>
    %563 = arith.extui %562 : vector<1x28xi1> to vector<1x28xi32>
    %564 = arith.sitofp %563 : vector<1x28xi32> to vector<1x28xf32>
    %c1 = arith.constant 1 : index
    %c0_117 = arith.constant 0 : index
    %565 = memref.load %arg1[%c1, %c0_117] : memref<2x4xi32, #tpu.memory_space<smem>>
    %566 = vector.broadcast %565 : i32 to vector<1x28xi32>
    %567 = arith.cmpi eq, %559, %566 : vector<1x28xi32>
    %568 = arith.extui %567 : vector<1x28xi1> to vector<1x28xi32>
    %569 = arith.sitofp %568 : vector<1x28xi32> to vector<1x28xf32>
    %c0_118 = arith.constant 0 : index
    %c1_119 = arith.constant 1 : index
    %570 = memref.load %arg1[%c0_118, %c1_119] : memref<2x4xi32, #tpu.memory_space<smem>>
    %571 = vector.broadcast %570 : i32 to vector<1x28xi32>
    %572 = arith.cmpi eq, %559, %571 : vector<1x28xi32>
    %573 = arith.extui %572 : vector<1x28xi1> to vector<1x28xi32>
    %574 = arith.sitofp %573 : vector<1x28xi32> to vector<1x28xf32>
    %c1_120 = arith.constant 1 : index
    %c1_121 = arith.constant 1 : index
    %575 = memref.load %arg1[%c1_120, %c1_121] : memref<2x4xi32, #tpu.memory_space<smem>>
    %576 = vector.broadcast %575 : i32 to vector<1x28xi32>
    %577 = arith.cmpi eq, %559, %576 : vector<1x28xi32>
    %578 = arith.extui %577 : vector<1x28xi1> to vector<1x28xi32>
    %579 = arith.sitofp %578 : vector<1x28xi32> to vector<1x28xf32>
    %c0_122 = arith.constant 0 : index
    %c2 = arith.constant 2 : index
    %580 = memref.load %arg1[%c0_122, %c2] : memref<2x4xi32, #tpu.memory_space<smem>>
    %581 = vector.broadcast %580 : i32 to vector<1x28xi32>
    %582 = arith.cmpi eq, %559, %581 : vector<1x28xi32>
    %583 = arith.extui %582 : vector<1x28xi1> to vector<1x28xi32>
    %584 = arith.sitofp %583 : vector<1x28xi32> to vector<1x28xf32>
    %c1_123 = arith.constant 1 : index
    %c2_124 = arith.constant 2 : index
    %585 = memref.load %arg1[%c1_123, %c2_124] : memref<2x4xi32, #tpu.memory_space<smem>>
    %586 = vector.broadcast %585 : i32 to vector<1x28xi32>
    %587 = arith.cmpi eq, %559, %586 : vector<1x28xi32>
    %588 = arith.extui %587 : vector<1x28xi1> to vector<1x28xi32>
    %589 = arith.sitofp %588 : vector<1x28xi32> to vector<1x28xf32>
    %c0_125 = arith.constant 0 : index
    %c3 = arith.constant 3 : index
    %590 = memref.load %arg1[%c0_125, %c3] : memref<2x4xi32, #tpu.memory_space<smem>>
    %591 = vector.broadcast %590 : i32 to vector<1x28xi32>
    %592 = arith.cmpi eq, %559, %591 : vector<1x28xi32>
    %593 = arith.extui %592 : vector<1x28xi1> to vector<1x28xi32>
    %594 = arith.sitofp %593 : vector<1x28xi32> to vector<1x28xf32>
    %c1_126 = arith.constant 1 : index
    %c3_127 = arith.constant 3 : index
    %595 = memref.load %arg1[%c1_126, %c3_127] : memref<2x4xi32, #tpu.memory_space<smem>>
    %596 = vector.broadcast %595 : i32 to vector<1x28xi32>
    %597 = arith.cmpi eq, %559, %596 : vector<1x28xi32>
    %598 = arith.extui %597 : vector<1x28xi1> to vector<1x28xi32>
    %599 = arith.sitofp %598 : vector<1x28xi32> to vector<1x28xf32>
    %600 = tpu.concatenate %564, %569, %574, %579, %584, %589, %594, %599 in 0 : vector<1x28xf32>, vector<1x28xf32>, vector<1x28xf32>, vector<1x28xf32>, vector<1x28xf32>, vector<1x28xf32>, vector<1x28xf32>, vector<1x28xf32> -> vector<8x28xf32>
    %cst_128 = arith.constant dense<0.000000e+00> : vector<8x32xf32>
    %601 = tpu.matmul %600, %558, %cst_128 {dimension_numbers = #tpu.dot_dimension_numbers<[1], [0], [0], [1], [0, 0, 1, 1], [], []>} : vector<8x28xf32>, vector<28x32xf32>, vector<8x32xf32> -> vector<8x32xf32>
    %cst_129 = arith.constant dense<0.000000e+00> : vector<8x128xf32>
    %602 = tpu.matmul %601, %15, %cst_129 {dimension_numbers = #tpu.dot_dimension_numbers<[1], [0], [0], [1], [0, 0, 1, 1], [], []>} : vector<8x32xf32>, vector<32x128xf32>, vector<8x128xf32> -> vector<8x128xf32>
    %603 = vector.broadcast %17 : vector<1x128xf32> to vector<8x128xf32>
    %604 = arith.addf %602, %603 : vector<8x128xf32>
    %cst_130 = arith.constant 0.000000e+00 : f32
    %605 = vector.broadcast %cst_130 : f32 to vector<2x32xf32>
    %606 = vector.extract_strided_slice %604 {offsets = [0, 0], sizes = [2, 128], strides = [1, 1]} : vector<8x128xf32> to vector<2x128xf32>
    %607 = arith.negf %606 : vector<2x128xf32>
    %608 = math.exp %607 : vector<2x128xf32>
    %cst_131 = arith.constant 1.000000e+00 : f32
    %609 = vector.broadcast %cst_131 : f32 to vector<2x128xf32>
    %610 = arith.addf %609, %608 : vector<2x128xf32>
    %611 = arith.divf %609, %610 : vector<2x128xf32>
    %612 = math.tanh %606 : vector<2x128xf32>
    %613 = vector.extract_strided_slice %611 {offsets = [0, 0], sizes = [2, 32], strides = [1, 1]} : vector<2x128xf32> to vector<2x32xf32>
    %614 = vector.extract_strided_slice %611 {offsets = [0, 32], sizes = [2, 32], strides = [1, 1]} : vector<2x128xf32> to vector<2x32xf32>
    %615 = vector.extract_strided_slice %612 {offsets = [0, 64], sizes = [2, 32], strides = [1, 1]} : vector<2x128xf32> to vector<2x32xf32>
    %616 = vector.extract_strided_slice %611 {offsets = [0, 96], sizes = [2, 32], strides = [1, 1]} : vector<2x128xf32> to vector<2x32xf32>
    %617 = arith.mulf %614, %605 : vector<2x32xf32>
    %618 = arith.mulf %613, %615 : vector<2x32xf32>
    %619 = arith.addf %617, %618 : vector<2x32xf32>
    %620 = math.tanh %619 : vector<2x32xf32>
    %621 = arith.mulf %616, %620 : vector<2x32xf32>
    %622 = vector.extract_strided_slice %604 {offsets = [2, 0], sizes = [2, 128], strides = [1, 1]} : vector<8x128xf32> to vector<2x128xf32>
    %cst_132 = arith.constant dense<0.000000e+00> : vector<2x128xf32>
    %623 = tpu.matmul %621, %16, %cst_132 {dimension_numbers = #tpu.dot_dimension_numbers<[1], [0], [0], [1], [0, 0, 1, 1], [], []>} : vector<2x32xf32>, vector<32x128xf32>, vector<2x128xf32> -> vector<2x128xf32>
    %624 = arith.addf %622, %623 : vector<2x128xf32>
    %625 = arith.negf %624 : vector<2x128xf32>
    %626 = math.exp %625 : vector<2x128xf32>
    %cst_133 = arith.constant 1.000000e+00 : f32
    %627 = vector.broadcast %cst_133 : f32 to vector<2x128xf32>
    %628 = arith.addf %627, %626 : vector<2x128xf32>
    %629 = arith.divf %627, %628 : vector<2x128xf32>
    %630 = math.tanh %624 : vector<2x128xf32>
    %631 = vector.extract_strided_slice %629 {offsets = [0, 0], sizes = [2, 32], strides = [1, 1]} : vector<2x128xf32> to vector<2x32xf32>
    %632 = vector.extract_strided_slice %629 {offsets = [0, 32], sizes = [2, 32], strides = [1, 1]} : vector<2x128xf32> to vector<2x32xf32>
    %633 = vector.extract_strided_slice %630 {offsets = [0, 64], sizes = [2, 32], strides = [1, 1]} : vector<2x128xf32> to vector<2x32xf32>
    %634 = vector.extract_strided_slice %629 {offsets = [0, 96], sizes = [2, 32], strides = [1, 1]} : vector<2x128xf32> to vector<2x32xf32>
    %635 = arith.mulf %632, %619 : vector<2x32xf32>
    %636 = arith.mulf %631, %633 : vector<2x32xf32>
    %637 = arith.addf %635, %636 : vector<2x32xf32>
    %638 = math.tanh %637 : vector<2x32xf32>
    %639 = arith.mulf %634, %638 : vector<2x32xf32>
    %640 = vector.extract_strided_slice %604 {offsets = [4, 0], sizes = [2, 128], strides = [1, 1]} : vector<8x128xf32> to vector<2x128xf32>
    %cst_134 = arith.constant dense<0.000000e+00> : vector<2x128xf32>
    %641 = tpu.matmul %639, %16, %cst_134 {dimension_numbers = #tpu.dot_dimension_numbers<[1], [0], [0], [1], [0, 0, 1, 1], [], []>} : vector<2x32xf32>, vector<32x128xf32>, vector<2x128xf32> -> vector<2x128xf32>
    %642 = arith.addf %640, %641 : vector<2x128xf32>
    %643 = arith.negf %642 : vector<2x128xf32>
    %644 = math.exp %643 : vector<2x128xf32>
    %cst_135 = arith.constant 1.000000e+00 : f32
    %645 = vector.broadcast %cst_135 : f32 to vector<2x128xf32>
    %646 = arith.addf %645, %644 : vector<2x128xf32>
    %647 = arith.divf %645, %646 : vector<2x128xf32>
    %648 = math.tanh %642 : vector<2x128xf32>
    %649 = vector.extract_strided_slice %647 {offsets = [0, 0], sizes = [2, 32], strides = [1, 1]} : vector<2x128xf32> to vector<2x32xf32>
    %650 = vector.extract_strided_slice %647 {offsets = [0, 32], sizes = [2, 32], strides = [1, 1]} : vector<2x128xf32> to vector<2x32xf32>
    %651 = vector.extract_strided_slice %648 {offsets = [0, 64], sizes = [2, 32], strides = [1, 1]} : vector<2x128xf32> to vector<2x32xf32>
    %652 = vector.extract_strided_slice %647 {offsets = [0, 96], sizes = [2, 32], strides = [1, 1]} : vector<2x128xf32> to vector<2x32xf32>
    %653 = arith.mulf %650, %637 : vector<2x32xf32>
    %654 = arith.mulf %649, %651 : vector<2x32xf32>
    %655 = arith.addf %653, %654 : vector<2x32xf32>
    %656 = math.tanh %655 : vector<2x32xf32>
    %657 = arith.mulf %652, %656 : vector<2x32xf32>
    %658 = vector.extract_strided_slice %604 {offsets = [6, 0], sizes = [2, 128], strides = [1, 1]} : vector<8x128xf32> to vector<2x128xf32>
    %cst_136 = arith.constant dense<0.000000e+00> : vector<2x128xf32>
    %659 = tpu.matmul %657, %16, %cst_136 {dimension_numbers = #tpu.dot_dimension_numbers<[1], [0], [0], [1], [0, 0, 1, 1], [], []>} : vector<2x32xf32>, vector<32x128xf32>, vector<2x128xf32> -> vector<2x128xf32>
    %660 = arith.addf %658, %659 : vector<2x128xf32>
    %661 = arith.negf %660 : vector<2x128xf32>
    %662 = math.exp %661 : vector<2x128xf32>
    %cst_137 = arith.constant 1.000000e+00 : f32
    %663 = vector.broadcast %cst_137 : f32 to vector<2x128xf32>
    %664 = arith.addf %663, %662 : vector<2x128xf32>
    %665 = arith.divf %663, %664 : vector<2x128xf32>
    %666 = math.tanh %660 : vector<2x128xf32>
    %667 = vector.extract_strided_slice %665 {offsets = [0, 0], sizes = [2, 32], strides = [1, 1]} : vector<2x128xf32> to vector<2x32xf32>
    %668 = vector.extract_strided_slice %665 {offsets = [0, 32], sizes = [2, 32], strides = [1, 1]} : vector<2x128xf32> to vector<2x32xf32>
    %669 = vector.extract_strided_slice %666 {offsets = [0, 64], sizes = [2, 32], strides = [1, 1]} : vector<2x128xf32> to vector<2x32xf32>
    %670 = vector.extract_strided_slice %665 {offsets = [0, 96], sizes = [2, 32], strides = [1, 1]} : vector<2x128xf32> to vector<2x32xf32>
    %671 = arith.mulf %668, %655 : vector<2x32xf32>
    %672 = arith.mulf %667, %669 : vector<2x32xf32>
    %673 = arith.addf %671, %672 : vector<2x32xf32>
    %674 = math.tanh %673 : vector<2x32xf32>
    %675 = arith.mulf %670, %674 : vector<2x32xf32>
    %676 = tpu.concatenate %621, %639, %657, %675 in 0 : vector<2x32xf32>, vector<2x32xf32>, vector<2x32xf32>, vector<2x32xf32> -> vector<8x32xf32>
    %cst_138 = arith.constant dense<0.000000e+00> : vector<8x128xf32>
    %677 = tpu.matmul %676, %18, %cst_138 {dimension_numbers = #tpu.dot_dimension_numbers<[1], [0], [0], [1], [0, 0, 1, 1], [], []>} : vector<8x32xf32>, vector<32x128xf32>, vector<8x128xf32> -> vector<8x128xf32>
    %678 = vector.broadcast %20 : vector<1x128xf32> to vector<8x128xf32>
    %679 = arith.addf %677, %678 : vector<8x128xf32>
    %cst_139 = arith.constant 0.000000e+00 : f32
    %680 = vector.broadcast %cst_139 : f32 to vector<2x32xf32>
    %681 = vector.extract_strided_slice %679 {offsets = [0, 0], sizes = [2, 128], strides = [1, 1]} : vector<8x128xf32> to vector<2x128xf32>
    %682 = arith.negf %681 : vector<2x128xf32>
    %683 = math.exp %682 : vector<2x128xf32>
    %cst_140 = arith.constant 1.000000e+00 : f32
    %684 = vector.broadcast %cst_140 : f32 to vector<2x128xf32>
    %685 = arith.addf %684, %683 : vector<2x128xf32>
    %686 = arith.divf %684, %685 : vector<2x128xf32>
    %687 = math.tanh %681 : vector<2x128xf32>
    %688 = vector.extract_strided_slice %686 {offsets = [0, 0], sizes = [2, 32], strides = [1, 1]} : vector<2x128xf32> to vector<2x32xf32>
    %689 = vector.extract_strided_slice %686 {offsets = [0, 32], sizes = [2, 32], strides = [1, 1]} : vector<2x128xf32> to vector<2x32xf32>
    %690 = vector.extract_strided_slice %687 {offsets = [0, 64], sizes = [2, 32], strides = [1, 1]} : vector<2x128xf32> to vector<2x32xf32>
    %691 = vector.extract_strided_slice %686 {offsets = [0, 96], sizes = [2, 32], strides = [1, 1]} : vector<2x128xf32> to vector<2x32xf32>
    %692 = arith.mulf %689, %680 : vector<2x32xf32>
    %693 = arith.mulf %688, %690 : vector<2x32xf32>
    %694 = arith.addf %692, %693 : vector<2x32xf32>
    %695 = math.tanh %694 : vector<2x32xf32>
    %696 = arith.mulf %691, %695 : vector<2x32xf32>
    %697 = vector.extract_strided_slice %679 {offsets = [2, 0], sizes = [2, 128], strides = [1, 1]} : vector<8x128xf32> to vector<2x128xf32>
    %cst_141 = arith.constant dense<0.000000e+00> : vector<2x128xf32>
    %698 = tpu.matmul %696, %19, %cst_141 {dimension_numbers = #tpu.dot_dimension_numbers<[1], [0], [0], [1], [0, 0, 1, 1], [], []>} : vector<2x32xf32>, vector<32x128xf32>, vector<2x128xf32> -> vector<2x128xf32>
    %699 = arith.addf %697, %698 : vector<2x128xf32>
    %700 = arith.negf %699 : vector<2x128xf32>
    %701 = math.exp %700 : vector<2x128xf32>
    %cst_142 = arith.constant 1.000000e+00 : f32
    %702 = vector.broadcast %cst_142 : f32 to vector<2x128xf32>
    %703 = arith.addf %702, %701 : vector<2x128xf32>
    %704 = arith.divf %702, %703 : vector<2x128xf32>
    %705 = math.tanh %699 : vector<2x128xf32>
    %706 = vector.extract_strided_slice %704 {offsets = [0, 0], sizes = [2, 32], strides = [1, 1]} : vector<2x128xf32> to vector<2x32xf32>
    %707 = vector.extract_strided_slice %704 {offsets = [0, 32], sizes = [2, 32], strides = [1, 1]} : vector<2x128xf32> to vector<2x32xf32>
    %708 = vector.extract_strided_slice %705 {offsets = [0, 64], sizes = [2, 32], strides = [1, 1]} : vector<2x128xf32> to vector<2x32xf32>
    %709 = vector.extract_strided_slice %704 {offsets = [0, 96], sizes = [2, 32], strides = [1, 1]} : vector<2x128xf32> to vector<2x32xf32>
    %710 = arith.mulf %707, %694 : vector<2x32xf32>
    %711 = arith.mulf %706, %708 : vector<2x32xf32>
    %712 = arith.addf %710, %711 : vector<2x32xf32>
    %713 = math.tanh %712 : vector<2x32xf32>
    %714 = arith.mulf %709, %713 : vector<2x32xf32>
    %715 = vector.extract_strided_slice %679 {offsets = [4, 0], sizes = [2, 128], strides = [1, 1]} : vector<8x128xf32> to vector<2x128xf32>
    %cst_143 = arith.constant dense<0.000000e+00> : vector<2x128xf32>
    %716 = tpu.matmul %714, %19, %cst_143 {dimension_numbers = #tpu.dot_dimension_numbers<[1], [0], [0], [1], [0, 0, 1, 1], [], []>} : vector<2x32xf32>, vector<32x128xf32>, vector<2x128xf32> -> vector<2x128xf32>
    %717 = arith.addf %715, %716 : vector<2x128xf32>
    %718 = arith.negf %717 : vector<2x128xf32>
    %719 = math.exp %718 : vector<2x128xf32>
    %cst_144 = arith.constant 1.000000e+00 : f32
    %720 = vector.broadcast %cst_144 : f32 to vector<2x128xf32>
    %721 = arith.addf %720, %719 : vector<2x128xf32>
    %722 = arith.divf %720, %721 : vector<2x128xf32>
    %723 = math.tanh %717 : vector<2x128xf32>
    %724 = vector.extract_strided_slice %722 {offsets = [0, 0], sizes = [2, 32], strides = [1, 1]} : vector<2x128xf32> to vector<2x32xf32>
    %725 = vector.extract_strided_slice %722 {offsets = [0, 32], sizes = [2, 32], strides = [1, 1]} : vector<2x128xf32> to vector<2x32xf32>
    %726 = vector.extract_strided_slice %723 {offsets = [0, 64], sizes = [2, 32], strides = [1, 1]} : vector<2x128xf32> to vector<2x32xf32>
    %727 = vector.extract_strided_slice %722 {offsets = [0, 96], sizes = [2, 32], strides = [1, 1]} : vector<2x128xf32> to vector<2x32xf32>
    %728 = arith.mulf %725, %712 : vector<2x32xf32>
    %729 = arith.mulf %724, %726 : vector<2x32xf32>
    %730 = arith.addf %728, %729 : vector<2x32xf32>
    %731 = math.tanh %730 : vector<2x32xf32>
    %732 = arith.mulf %727, %731 : vector<2x32xf32>
    %733 = vector.extract_strided_slice %679 {offsets = [6, 0], sizes = [2, 128], strides = [1, 1]} : vector<8x128xf32> to vector<2x128xf32>
    %cst_145 = arith.constant dense<0.000000e+00> : vector<2x128xf32>
    %734 = tpu.matmul %732, %19, %cst_145 {dimension_numbers = #tpu.dot_dimension_numbers<[1], [0], [0], [1], [0, 0, 1, 1], [], []>} : vector<2x32xf32>, vector<32x128xf32>, vector<2x128xf32> -> vector<2x128xf32>
    %735 = arith.addf %733, %734 : vector<2x128xf32>
    %736 = arith.negf %735 : vector<2x128xf32>
    %737 = math.exp %736 : vector<2x128xf32>
    %cst_146 = arith.constant 1.000000e+00 : f32
    %738 = vector.broadcast %cst_146 : f32 to vector<2x128xf32>
    %739 = arith.addf %738, %737 : vector<2x128xf32>
    %740 = arith.divf %738, %739 : vector<2x128xf32>
    %741 = math.tanh %735 : vector<2x128xf32>
    %742 = vector.extract_strided_slice %740 {offsets = [0, 0], sizes = [2, 32], strides = [1, 1]} : vector<2x128xf32> to vector<2x32xf32>
    %743 = vector.extract_strided_slice %740 {offsets = [0, 32], sizes = [2, 32], strides = [1, 1]} : vector<2x128xf32> to vector<2x32xf32>
    %744 = vector.extract_strided_slice %741 {offsets = [0, 64], sizes = [2, 32], strides = [1, 1]} : vector<2x128xf32> to vector<2x32xf32>
    %745 = vector.extract_strided_slice %740 {offsets = [0, 96], sizes = [2, 32], strides = [1, 1]} : vector<2x128xf32> to vector<2x32xf32>
    %746 = arith.mulf %743, %730 : vector<2x32xf32>
    %747 = arith.mulf %742, %744 : vector<2x32xf32>
    %748 = arith.addf %746, %747 : vector<2x32xf32>
    %749 = math.tanh %748 : vector<2x32xf32>
    %750 = arith.mulf %745, %749 : vector<2x32xf32>
    %751 = vector.extract_strided_slice %503 {offsets = [0, 0], sizes = [1, 32], strides = [1, 1]} : vector<2x32xf32> to vector<1x32xf32>
    %752 = vector.extract_strided_slice %521 {offsets = [0, 0], sizes = [1, 32], strides = [1, 1]} : vector<2x32xf32> to vector<1x32xf32>
    %753 = vector.extract_strided_slice %539 {offsets = [0, 0], sizes = [1, 32], strides = [1, 1]} : vector<2x32xf32> to vector<1x32xf32>
    %754 = vector.extract_strided_slice %557 {offsets = [0, 0], sizes = [1, 32], strides = [1, 1]} : vector<2x32xf32> to vector<1x32xf32>
    %755 = vector.extract_strided_slice %503 {offsets = [1, 0], sizes = [1, 32], strides = [1, 1]} : vector<2x32xf32> to vector<1x32xf32>
    %756 = vector.extract_strided_slice %521 {offsets = [1, 0], sizes = [1, 32], strides = [1, 1]} : vector<2x32xf32> to vector<1x32xf32>
    %757 = vector.extract_strided_slice %539 {offsets = [1, 0], sizes = [1, 32], strides = [1, 1]} : vector<2x32xf32> to vector<1x32xf32>
    %758 = vector.extract_strided_slice %557 {offsets = [1, 0], sizes = [1, 32], strides = [1, 1]} : vector<2x32xf32> to vector<1x32xf32>
    %759 = tpu.concatenate %751, %752, %753, %754, %755, %756, %757, %758 in 0 : vector<1x32xf32>, vector<1x32xf32>, vector<1x32xf32>, vector<1x32xf32>, vector<1x32xf32>, vector<1x32xf32>, vector<1x32xf32>, vector<1x32xf32> -> vector<8x32xf32>
    %760 = vector.extract_strided_slice %696 {offsets = [0, 0], sizes = [1, 32], strides = [1, 1]} : vector<2x32xf32> to vector<1x32xf32>
    %761 = vector.extract_strided_slice %714 {offsets = [0, 0], sizes = [1, 32], strides = [1, 1]} : vector<2x32xf32> to vector<1x32xf32>
    %762 = vector.extract_strided_slice %732 {offsets = [0, 0], sizes = [1, 32], strides = [1, 1]} : vector<2x32xf32> to vector<1x32xf32>
    %763 = vector.extract_strided_slice %750 {offsets = [0, 0], sizes = [1, 32], strides = [1, 1]} : vector<2x32xf32> to vector<1x32xf32>
    %764 = vector.extract_strided_slice %696 {offsets = [1, 0], sizes = [1, 32], strides = [1, 1]} : vector<2x32xf32> to vector<1x32xf32>
    %765 = vector.extract_strided_slice %714 {offsets = [1, 0], sizes = [1, 32], strides = [1, 1]} : vector<2x32xf32> to vector<1x32xf32>
    %766 = vector.extract_strided_slice %732 {offsets = [1, 0], sizes = [1, 32], strides = [1, 1]} : vector<2x32xf32> to vector<1x32xf32>
    %767 = vector.extract_strided_slice %750 {offsets = [1, 0], sizes = [1, 32], strides = [1, 1]} : vector<2x32xf32> to vector<1x32xf32>
    %768 = tpu.concatenate %760, %761, %762, %763, %764, %765, %766, %767 in 0 : vector<1x32xf32>, vector<1x32xf32>, vector<1x32xf32>, vector<1x32xf32>, vector<1x32xf32>, vector<1x32xf32>, vector<1x32xf32>, vector<1x32xf32> -> vector<8x32xf32>
    %cst_147 = arith.constant dense<0.000000e+00> : vector<8x64xf32>
    %769 = tpu.matmul %759, %21, %cst_147 {dimension_numbers = #tpu.dot_dimension_numbers<[1], [0], [0], [1], [0, 0, 1, 1], [], []>} : vector<8x32xf32>, vector<32x64xf32>, vector<8x64xf32> -> vector<8x64xf32>
    %cst_148 = arith.constant dense<0.000000e+00> : vector<8x64xf32>
    %770 = tpu.matmul %768, %22, %cst_148 {dimension_numbers = #tpu.dot_dimension_numbers<[1], [0], [0], [1], [0, 0, 1, 1], [], []>} : vector<8x32xf32>, vector<32x64xf32>, vector<8x64xf32> -> vector<8x64xf32>
    %771 = vector.shape_cast %769 : vector<8x64xf32> to vector<2x4x1x64xf32>
    %772 = vector.shape_cast %770 : vector<8x64xf32> to vector<2x1x4x64xf32>
    %773 = vector.broadcast %771 : vector<2x4x1x64xf32> to vector<2x4x4x64xf32>
    %774 = vector.broadcast %772 : vector<2x1x4x64xf32> to vector<2x4x4x64xf32>
    %775 = arith.addf %773, %774 : vector<2x4x4x64xf32>
    %776 = vector.shape_cast %23 : vector<1x64xf32> to vector<1x1x1x64xf32>
    %777 = vector.broadcast %776 : vector<1x1x1x64xf32> to vector<2x4x4x64xf32>
    %778 = arith.addf %775, %777 : vector<2x4x4x64xf32>
    %cst_149 = arith.constant 0.000000e+00 : f32
    %779 = vector.broadcast %cst_149 : f32 to vector<2x4x4x64xf32>
    %780 = arith.maximumf %778, %779 : vector<2x4x4x64xf32>
    %781 = vector.shape_cast %780 : vector<2x4x4x64xf32> to vector<32x64xf32>
    %cst_150 = arith.constant dense<0.000000e+00> : vector<32x128xf32>
    %782 = tpu.matmul %781, %24, %cst_150 {dimension_numbers = #tpu.dot_dimension_numbers<[1], [0], [0], [1], [0, 0, 1, 1], [], []>} : vector<32x64xf32>, vector<64x128xf32>, vector<32x128xf32> -> vector<32x128xf32>
    %783 = vector.broadcast %25 : vector<1x128xf32> to vector<32x128xf32>
    %784 = arith.addf %782, %783 : vector<32x128xf32>
    %785 = vector.shape_cast %784 : vector<32x128xf32> to vector<2x4x4x128xf32>
    %c0_151 = arith.constant 0 : index
    %c0_152 = arith.constant 0 : index
    %c0_153 = arith.constant 0 : index
    %c0_154 = arith.constant 0 : index
    %786 = vector.load %arg29[%c0_151, %c0_152, %c0_153, %c0_154] : memref<2x4x4x128xf32, #tpu.memory_space<vmem>>, vector<2x4x4x128xf32>
    tpu.vector_store %arg29[%c0_151, %c0_152, %c0_153, %c0_154], %785 {strides = array<i32>} : memref<2x4x4x128xf32, #tpu.memory_space<vmem>>, vector<2x4x4x128xf32>,
    return
  }
}

</mosaic_0001>

<bundles_post_ra>
// kernel: rnnt_forward.1
= control target key start
LH: loop header
LB: loop body
LE: loop exit
PB: predicated region body
PF: predicated region fallthrough
CT: control target
= control target key end

     0   :  { %s6992_s6 = smov 1   ;;  %s6993_s10 = smov 2   ;;  %s7991_s0 = inlined_call_operand.smem [shape: u32[30], index: -1, kind: input, shape index: {}] }
   0x1   :  { %s7064_s5 = sld [smem:[%s7991_s0]]   ;;  %s6994_s14 = smov 3  }
   0x2   :  { %s7069_s9 = sld [smem:[%s7991_s0 + %s6992_s6]]   ;;  %s6995_s18 = smov 4  }
   0x3   :  { %s7074_s13 = sld [smem:[%s7991_s0 + %s6993_s10]]   ;;  %s6996_s22 = smov 5  }
   0x4   :  { %s7079_s17 = sld [smem:[%s7991_s0 + %s6994_s14]]   ;;  %s6997_s26 = smov 6  }
   0x5   :  { %s7084_s21 = sld [smem:[%s7991_s0 + %s6995_s18]]   ;;  %s6998_s30 = smov 7  }
   0x6   :  { %s7089_s25 = sld [smem:[%s7991_s0 + %s6996_s22]]   ;;  %s6999_s4 = smov 8  }
   0x7   :  { %8003 = sst [smem:[#allocation55_spill]] %s7064_s5  ;;  %s7000_s10 = smov 9  }
   0x8   :  { %s7094_s29 = sld [smem:[%s7991_s0 + %s6997_s26]]   ;;  %s7001_s15 = smov 10  }
   0x9   :  { %8004 = sst [smem:[#allocation56_spill]] %s7074_s13  ;;  %s7002_s20 = smov 11  }
   0xa   :  { %s7099_s3 = sld [smem:[%s7991_s0 + %s6998_s30]]   ;;  %s7003_s26 = smov 12  }
   0xb   :  { %s7104_s8 = sld [smem:[%s7991_s0 + %s6999_s4]]   ;;  %s7004_s1 = smov 13  }
   0xc   :  { %8005 = sst [smem:[#allocation57_spill]] %s7089_s25  ;;  %s7005_s7 = smov 14  }
   0xd   :  { %s7109_s14 = sld [smem:[%s7991_s0 + %s7000_s10]]   ;;  %s7007_s22 = smov 16  }
   0xe   :  { %s7114_s19 = sld [smem:[%s7991_s0 + %s7001_s15]]   ;;  %s7006_s15 = smov 15  }
   0xf   :  { %s7119_s24 = sld [smem:[%s7991_s0 + %s7002_s20]]   ;;  %s7008_s28 = smov 17  }
  0x10   :  { %s7124_s30 = sld [smem:[%s7991_s0 + %s7003_s26]]  }
  0x11   :  { %s7129_s6 = sld [smem:[%s7991_s0 + %s7004_s1]]  }
  0x12   :  { %s7134_s12 = sld [smem:[%s7991_s0 + %s7005_s7]]   ;;  %s7009_s7 = smov 18  }
  0x13   :  { %8006 = sst [smem:[#allocation58_spill]] %s7109_s14 }
  0x14   :  { %8007 = sst [smem:[#allocation59_spill]] %s7114_s19 }
  0x15   :  { %s7139_s20 = sld [smem:[%s7991_s0 + %s7006_s15]]   ;;  %s7010_s15 = smov 19  }
  0x16   :  { %8008 = sst [smem:[#allocation60_spill]] %s7124_s30 }
  0x17   :  { %s7144_s27 = sld [smem:[%s7991_s0 + %s7007_s22]]   ;;  %s7011_s22 = smov 20  }
  0x18   :  { %8009 = sst [smem:[#allocation61_spill]] %s7134_s12 }
  0x19   :  { %s7149_s4 = sld [smem:[%s7991_s0 + %s7008_s28]]   ;;  %s7012_s28 = smov 21  }
  0x1a   :  { %s7154_s13 = sld [smem:[%s7991_s0 + %s7009_s7]]   ;;  %s7013_s7 = smov 22  }
  0x1b   :  { %s7159_s19 = sld [smem:[%s7991_s0 + %s7010_s15]]   ;;  %s7014_s15 = smov 23  }
  0x1c   :  { %s7164_s14 = sld [smem:[%s7991_s0 + %s7011_s22]]   ;;  %s7015_s22 = smov 24  }
  0x1d   :  { %8010 = sst [smem:[#allocation62_spill]] %s7144_s27 }
  0x1e   :  { %s7169_s25 = sld [smem:[%s7991_s0 + %s7012_s28]]   ;;  %s7016_s28 = smov 25  }
  0x1f   :  { %s7174_s5 = sld [smem:[%s7991_s0 + %s7013_s7]]   ;;  %s7017_s7 = smov 26  }
  0x20   :  { %8011 = sst [smem:[#allocation63_spill]] %s7154_s13 }
  0x21   :  { %s7179_s13 = sld [smem:[%s7991_s0 + %s7014_s15]]   ;;  %s7018_s15 = smov 27  }
  0x22   :  { %8012 = sst [smem:[#allocation64_spill]] %s7164_s14 }
  0x23   :  { %s7184_s14 = sld [smem:[%s7991_s0 + %s7015_s22]]   ;;  %s7019_s22 = smov 28  }
  0x24   :  { %s7189_s27 = sld [smem:[%s7991_s0 + %s7016_s28]]   ;;  %s7020_s28 = smov 29  }
  0x25   :  { %8013 = sst [smem:[#allocation65_spill]] %s7174_s5 }
  0x26   :  { %s7194_s5 = sld [smem:[%s7991_s0 + %s7017_s7]]  }
  0x27   :  { %s7199_s12 = sld [smem:[%s7991_s0 + %s7018_s15]]  }
  0x28   :  { %s7209_s30 = sld [smem:[%s7991_s0 + %s7020_s28]]  }
  0x29   :  { %8014 = sst [smem:[#allocation66_spill]] %s7184_s14 }
  0x2a   :  { %s7204_s14 = sld [smem:[%s7991_s0 + %s7019_s22]]  }
  0x2b   :  { %64 = vsyncpa [#allocation5], 0 }
  0x2c   :  { %65 = vsyncpa [#allocation3], 0 }
  0x2d   :  { %66 = vsyncpa [#allocation8], 0 }
  0x2e   :  { %67 = vsyncpa [#allocation11], 0 }
  0x2f   :  { %68 = vsyncpa [#allocation14], 0 }
  0x30   :  { %69 = vsyncpa [#allocation17], 0 }
  0x31   :  { %70 = vsyncpa [#allocation20], 0 }
  0x32   :  { %71 = vsyncpa [#allocation23], 0 }
  0x33   :  { %72 = vsyncpa [#allocation26], 0 }
  0x34   :  { %73 = vsyncpa [#allocation29], 0 }
  0x35   :  { %74 = vsyncpa [#allocation32], 0 }
  0x36   :  { %75 = vsyncpa [#allocation35], 0 }
  0x37   :  { %76 = vsyncpa [#allocation38], 0 }
  0x38   :  { %77 = vsyncpa [#allocation4], 0  ;;  %s7021_s7 = smov [#allocation7]   ;;  %s7022_s10 = smov [#allocation10]  }
  0x39   :  { %s107_s0 = sshll.u32 %s7021_s7, 4  ;;  %s133_s11 = sshll.u32 %s7022_s10, 4  ;;  %s108_s0 = int_to_ptr.vmem [resolvable:$true] %s107_s0  ;;  %s7211_s11 = int_to_ptr.vmem [resolvable:$true] %s133_s11 }
  0x3a   :  { %s6426_s15 = scalar_lea.hbm %s7084_s21, 512 }
  0x3b   :  { %p6427_p0 = scmp.ne.s32.totalorder %s7084_s21, %s6426_s15  ;;  %p6430_p1 = scmp.lt.u32.totalorder %s6426_s15, %s7084_s21 }
  0x3d   :  { %p6432_p2 = pnand %p6430_p1, %p6427_p0 }
  0x3f   :  { %6435 = shalt.err (!%p6432_p2)
}
  0x40   :  { %s6436_s16 = scalar_lea.vmem %s108_s0, 512  ;;  %p6441_p4 = scmp.lt.s32.totalorder %s108_s0, %s108_s0 }
  0x41   :  { %p6437_p3 = scmp.ne.s32.totalorder %s108_s0, %s6436_s16  ;;  %p6442_p5 = scmp.lt.s32.totalorder %s6436_s16, %s6436_s16 }
  0x43   :  { %p6443_p6 = por %p6442_p5, %p6441_p4 }
  0x45   :  { %p6444_p7 = pnand %p6443_p6, %p6437_p3 }
  0x47   :  { %6447 = shalt.err (!%p6444_p7)
}
  0x48   :  { %s7023_s18 = smov 128   ;;  %s7024_s22 = smov 8  }
  0x49   :  { %113 = dma.hbm_to_vmem [thread:$0]  %s7084_s21, 512, %s108_s0, [#allocation8], %s7023_s18, %s7023_s18, %s7024_s22  }
  0x4a   :  { %s6448_s23 = scalar_lea.hbm %s7099_s3, 512 }
  0x4b   :  { %p6449_p8 = scmp.ne.s32.totalorder %s7099_s3, %s6448_s23  ;;  %p6452_p9 = scmp.lt.u32.totalorder %s6448_s23, %s7099_s3 }
  0x4d   :  { %p6454_p10 = pnand %p6452_p9, %p6449_p8 }
  0x4f   :  { %6457 = shalt.err (!%p6454_p10)
}
  0x50   :  { %s6458_s26 = scalar_lea.vmem %s7211_s11, 512  ;;  %p6463_p12 = scmp.lt.s32.totalorder %s7211_s11, %s7211_s11 }
  0x51   :  { %p6459_p11 = scmp.ne.s32.totalorder %s7211_s11, %s6458_s26  ;;  %p6464_p13 = scmp.lt.s32.totalorder %s6458_s26, %s6458_s26 }
  0x53   :  { %p6465_p0 = por %p6464_p13, %p6463_p12 }
  0x55   :  { %p6466_p1 = pnand %p6465_p0, %p6459_p11 }
  0x57   :  { %6469 = shalt.err (!%p6466_p1)
}
  0x58   :  { %139 = dma.hbm_to_vmem [thread:$0]  %s7099_s3, 512, %s7211_s11, [#allocation11], %s7023_s18, %s7023_s18, %s7024_s22  }
  0x59   :  { %s7025_s21 = smov [#allocation13]   ;;  %s7026_s1 = smov [#allocation16]  }
  0x5a   :  { %s160_s28 = sshll.u32 %s7025_s21, 4  ;;  %s181_s2 = sshll.u32 %s7026_s1, 4  ;;  %s161_s28 = int_to_ptr.vmem [resolvable:$true] %s160_s28  ;;  %s7232_s2 = int_to_ptr.vmem [resolvable:$true] %s181_s2 }
  0x5b   :  { %s6470_s7 = scalar_lea.hbm %s7119_s24, 16 }
  0x5c   :  { %p6471_p2 = scmp.ne.s32.totalorder %s7119_s24, %s6470_s7  ;;  %p6474_p3 = scmp.lt.u32.totalorder %s6470_s7, %s7119_s24 }
  0x5e   :  { %p6476_p4 = pnand %p6474_p3, %p6471_p2 }
  0x60   :  { %6479 = shalt.err (!%p6476_p4)
}
  0x61   :  { %s6480_s0 = scalar_lea.vmem %s161_s28, 16  ;;  %s6484_s10 = scalar_lea.vmem %s161_s28, 32 }
  0x62   :  { %p6481_p5 = scmp.ne.s32.totalorder %s161_s28, %s6480_s0  ;;  %p6485_p6 = scmp.lt.s32.totalorder %s161_s28, %s161_s28 }
  0x63   :  { %p6486_p7 = scmp.lt.s32.totalorder %s6484_s10, %s6480_s0 }
  0x65   :  { %p6487_p8 = por %p6486_p7, %p6485_p6 }
  0x67   :  { %p6488_p9 = pnand %p6487_p8, %p6481_p5 }
  0x69   :  { %6491 = shalt.err (!%p6488_p9)
}
  0x6a   :  { %163 = dma.hbm_to_vmem [thread:$0]  %s7119_s24, 16, %s161_s28, [#allocation14]  }
  0x6b   :  { %s6492_s3 = scalar_lea.hbm %s7129_s6, 512 }
  0x6c   :  { %p6493_p10 = scmp.ne.s32.totalorder %s7129_s6, %s6492_s3  ;;  %p6496_p11 = scmp.lt.u32.totalorder %s6492_s3, %s7129_s6 }
  0x6e   :  { %p6498_p12 = pnand %p6496_p11, %p6493_p10 }
  0x70   :  { %6501 = shalt.err (!%p6498_p12)
}
  0x71   :  { %s6502_s11 = scalar_lea.vmem %s7232_s2, 512  ;;  %p6507_p0 = scmp.lt.s32.totalorder %s7232_s2, %s7232_s2 }
  0x72   :  { %p6503_p13 = scmp.ne.s32.totalorder %s7232_s2, %s6502_s11  ;;  %p6508_p1 = scmp.lt.s32.totalorder %s6502_s11, %s6502_s11 }
  0x74   :  { %p6509_p2 = por %p6508_p1, %p6507_p0 }
  0x76   :  { %p6510_p3 = pnand %p6509_p2, %p6503_p13 }
  0x78   :  { %6513 = shalt.err (!%p6510_p3)
}
  0x79   :  { %187 = dma.hbm_to_vmem [thread:$0]  %s7129_s6, 512, %s7232_s2, [#allocation17], %s7023_s18, %s7023_s18, %s7024_s22  }
  0x7a   :  { %s7027_s24 = smov [#allocation19]   ;;  %s7028_s16 = smov [#allocation22]  }
  0x7b   :  { %s203_s15 = sshll.u32 %s7027_s24, 4  ;;  %s228_s23 = sshll.u32 %s7028_s16, 4  ;;  %s204_s15 = int_to_ptr.vmem [resolvable:$true] %s203_s15  ;;  %s229_s23 = int_to_ptr.vmem [resolvable:$true] %s228_s23 }
  0x7c   :  { %s6514_s26 = scalar_lea.hbm %s7139_s20, 512 }
  0x7d   :  { %p6515_p4 = scmp.ne.s32.totalorder %s7139_s20, %s6514_s26  ;;  %p6518_p5 = scmp.lt.u32.totalorder %s6514_s26, %s7139_s20 }
  0x7f   :  { %p6520_p6 = pnand %p6518_p5, %p6515_p4 }
  0x81   :  { %6523 = shalt.err (!%p6520_p6)
}
  0x82   :  { %s6524_s21 = scalar_lea.vmem %s204_s15, 512  ;;  %p6529_p8 = scmp.lt.s32.totalorder %s204_s15, %s204_s15 }
  0x83   :  { %p6525_p7 = scmp.ne.s32.totalorder %s204_s15, %s6524_s21  ;;  %p6530_p9 = scmp.lt.s32.totalorder %s6524_s21, %s6524_s21 }
  0x85   :  { %p6531_p10 = por %p6530_p9, %p6529_p8 }
  0x87   :  { %p6532_p11 = pnand %p6531_p10, %p6525_p7 }
  0x89   :  { %6535 = shalt.err (!%p6532_p11)
}
  0x8a   :  { %209 = dma.hbm_to_vmem [thread:$0]  %s7139_s20, 512, %s204_s15, [#allocation20], %s7023_s18, %s7023_s18, %s7024_s22  }
  0x8b   :  { %s6536_s6 = scalar_lea.hbm %s7149_s4, 16 }
  0x8c   :  { %p6537_p12 = scmp.ne.s32.totalorder %s7149_s4, %s6536_s6  ;;  %p6540_p13 = scmp.lt.u32.totalorder %s6536_s6, %s7149_s4 }
  0x8e   :  { %p6542_p0 = pnand %p6540_p13, %p6537_p12 }
  0x90   :  { %6545 = shalt.err (!%p6542_p0)
}
  0x91   :  { %s6546_s28 = scalar_lea.vmem %s229_s23, 16  ;;  %s6550_s1 = scalar_lea.vmem %s229_s23, 32 }
  0x92   :  { %p6547_p1 = scmp.ne.s32.totalorder %s229_s23, %s6546_s28  ;;  %p6551_p2 = scmp.lt.s32.totalorder %s229_s23, %s229_s23 }
  0x93   :  { %p6552_p3 = scmp.lt.s32.totalorder %s6550_s1, %s6546_s28 }
  0x95   :  { %p6553_p4 = por %p6552_p3, %p6551_p2 }
  0x97   :  { %p6554_p5 = pnand %p6553_p4, %p6547_p1 }
  0x99   :  { %6557 = shalt.err (!%p6554_p5)
}
  0x9a   :  { %231 = dma.hbm_to_vmem [thread:$0]  %s7149_s4, 16, %s229_s23, [#allocation23]  }
  0x9b   :  { %s7029_s2 = smov [#allocation25]   ;;  %s7030_s7 = smov [#allocation28]  }
  0x9c   :  { %s249_s20 = sshll.u32 %s7029_s2, 4  ;;  %s271_s0 = sshll.u32 %s7030_s7, 4  ;;  %s250_s20 = int_to_ptr.vmem [resolvable:$true] %s249_s20  ;;  %s7261_s0 = int_to_ptr.vmem [resolvable:$true] %s271_s0 }
  0x9d   :  { %s6558_s10 = scalar_lea.hbm %s7159_s19, 512 }
  0x9e   :  { %p6559_p6 = scmp.ne.s32.totalorder %s7159_s19, %s6558_s10  ;;  %p6562_p7 = scmp.lt.u32.totalorder %s6558_s10, %s7159_s19 }
  0xa0   :  { %p6564_p8 = pnand %p6562_p7, %p6559_p6 }
  0xa2   :  { %6567 = shalt.err (!%p6564_p8)
}
  0xa3   :  { %s6568_s3 = scalar_lea.vmem %s250_s20, 512  ;;  %p6573_p10 = scmp.lt.s32.totalorder %s250_s20, %s250_s20 }
  0xa4   :  { %p6569_p9 = scmp.ne.s32.totalorder %s250_s20, %s6568_s3  ;;  %p6574_p11 = scmp.lt.s32.totalorder %s6568_s3, %s6568_s3 }
  0xa6   :  { %p6575_p12 = por %p6574_p11, %p6573_p10 }
  0xa8   :  { %p6576_p13 = pnand %p6575_p12, %p6569_p9 }
  0xaa   :  { %6579 = shalt.err (!%p6576_p13)
}
  0xab   :  { %255 = dma.hbm_to_vmem [thread:$0]  %s7159_s19, 512, %s250_s20, [#allocation26], %s7023_s18, %s7023_s18, %s7024_s22  }
  0xac   :  { %s6580_s4 = scalar_lea.hbm %s7169_s25, 512 }
  0xad   :  { %p6581_p0 = scmp.ne.s32.totalorder %s7169_s25, %s6580_s4  ;;  %p6584_p1 = scmp.lt.u32.totalorder %s6580_s4, %s7169_s25 }
  0xaf   :  { %p6586_p2 = pnand %p6584_p1, %p6581_p0 }
  0xb1   :  { %6589 = shalt.err (!%p6586_p2)
}
  0xb2   :  { %s6590_s11 = scalar_lea.vmem %s7261_s0, 512  ;;  %p6595_p4 = scmp.lt.s32.totalorder %s7261_s0, %s7261_s0 }
  0xb3   :  { %p6591_p3 = scmp.ne.s32.totalorder %s7261_s0, %s6590_s11  ;;  %p6596_p5 = scmp.lt.s32.totalorder %s6590_s11, %s6590_s11 }
  0xb5   :  { %p6597_p6 = por %p6596_p5, %p6595_p4 }
  0xb7   :  { %p6598_p7 = pnand %p6597_p6, %p6591_p3 }
  0xb9   :  { %6601 = shalt.err (!%p6598_p7)
}
  0xba   :  { %277 = dma.hbm_to_vmem [thread:$0]  %s7169_s25, 512, %s7261_s0, [#allocation29], %s7023_s18, %s7023_s18, %s7024_s22  }
  0xbb   :  { %s7031_s19 = smov [#allocation31]   ;;  %s7032_s15 = smov [#allocation34]  }
  0xbc   :  { %s296_s24 = sshll.u32 %s7031_s19, 4  ;;  %s317_s16 = sshll.u32 %s7032_s15, 4  ;;  %s297_s24 = int_to_ptr.vmem [resolvable:$true] %s296_s24  ;;  %s7282_s16 = int_to_ptr.vmem [resolvable:$true] %s317_s16 }
  0xbd   :  { %s6602_s23 = scalar_lea.hbm %s7179_s13, 16 }
  0xbe   :  { %p6603_p8 = scmp.ne.s32.totalorder %s7179_s13, %s6602_s23  ;;  %p6606_p9 = scmp.lt.u32.totalorder %s6602_s23, %s7179_s13 }
  0xc0   :  { %p6608_p10 = pnand %p6606_p9, %p6603_p8 }
  0xc2   :  { %6611 = shalt.err (!%p6608_p10)
}
  0xc3   :  { %s6612_s26 = scalar_lea.vmem %s297_s24, 16  ;;  %s6616_s21 = scalar_lea.vmem %s297_s24, 32 }
  0xc4   :  { %p6613_p11 = scmp.ne.s32.totalorder %s297_s24, %s6612_s26  ;;  %p6617_p12 = scmp.lt.s32.totalorder %s297_s24, %s297_s24 }
  0xc5   :  { %p6618_p13 = scmp.lt.s32.totalorder %s6616_s21, %s6612_s26 }
  0xc7   :  { %p6619_p0 = por %p6618_p13, %p6617_p12 }
  0xc9   :  { %p6620_p1 = pnand %p6619_p0, %p6613_p11 }
  0xcb   :  { %6623 = shalt.err (!%p6620_p1)
}
  0xcc   :  { %299 = dma.hbm_to_vmem [thread:$0]  %s7179_s13, 16, %s297_s24, [#allocation32]  }
  0xcd   :  { %s6624_s25 = scalar_lea.hbm %s7189_s27, 512 }
  0xce   :  { %p6625_p2 = scmp.ne.s32.totalorder %s7189_s27, %s6624_s25  ;;  %p6628_p3 = scmp.lt.u32.totalorder %s6624_s25, %s7189_s27 }
  0xd0   :  { %p6630_p4 = pnand %p6628_p3, %p6625_p2 }
  0xd2   :  { %6633 = shalt.err (!%p6630_p4)
}
  0xd3   :  { %s6634_s6 = scalar_lea.vmem %s7282_s16, 512  ;;  %p6639_p6 = scmp.lt.s32.totalorder %s7282_s16, %s7282_s16 }
  0xd4   :  { %p6635_p5 = scmp.ne.s32.totalorder %s7282_s16, %s6634_s6  ;;  %p6640_p7 = scmp.lt.s32.totalorder %s6634_s6, %s6634_s6 }
  0xd6   :  { %p6641_p8 = por %p6640_p7, %p6639_p6 }
  0xd8   :  { %p6642_p9 = pnand %p6641_p8, %p6635_p5 }
  0xda   :  { %6645 = shalt.err (!%p6642_p9)
}
  0xdb   :  { %323 = dma.hbm_to_vmem [thread:$0]  %s7189_s27, 512, %s7282_s16, [#allocation35], %s7023_s18, %s7023_s18, %s7024_s22  }
  0xdc   :  { %s7033_s13 = smov [#allocation37]   ;;  %s7034_s1 = smov [#allocation6]  }
  0xdd   :  { %s339_s28 = sshll.u32 %s7033_s13, 4  ;;  %s95_s2 = sshll.u32 %s7034_s1, 4  ;;  %s340_s28 = int_to_ptr.vmem [resolvable:$true] %s339_s28  ;;  %s96_s2 = int_to_ptr.vmem [resolvable:$true] %s95_s2 }
  0xde   :  { %s6646_s20 = scalar_lea.hbm %s7199_s12, 1024 }
  0xdf   :  { %p6647_p10 = scmp.ne.s32.totalorder %s7199_s12, %s6646_s20  ;;  %p6650_p11 = scmp.lt.u32.totalorder %s6646_s20, %s7199_s12 }
  0xe1   :  { %p6652_p12 = pnand %p6650_p11, %p6647_p10 }
  0xe3   :  { %6655 = shalt.err (!%p6652_p12)
}
  0xe4   :  { %s6656_s7 = scalar_lea.vmem %s340_s28, 1024  ;;  %p6661_p0 = scmp.lt.s32.totalorder %s340_s28, %s340_s28 }
  0xe5   :  { %p6657_p13 = scmp.ne.s32.totalorder %s340_s28, %s6656_s7  ;;  %p6662_p1 = scmp.lt.s32.totalorder %s6656_s7, %s6656_s7 }
  0xe7   :  { %p6663_p2 = por %p6662_p1, %p6661_p0 }
  0xe9   :  { %p6664_p3 = pnand %p6663_p2, %p6657_p13 }
  0xeb   :  { %6667 = shalt.err (!%p6664_p3)
}
  0xec   :  { %345 = dma.hbm_to_vmem [thread:$0]  %s7199_s12, 1024, %s340_s28, [#allocation38], %s7023_s18, %s7023_s18, %s7024_s22  }
  0xed   :  { %s6668_s27 = scalar_lea.hbm %s7069_s9, 32 }
  0xee   :  { %p6669_p4 = scmp.ne.s32.totalorder %s7069_s9, %s6668_s27  ;;  %p6672_p5 = scmp.lt.u32.totalorder %s6668_s27, %s7069_s9 }
  0xf0   :  { %p6674_p6 = pnand %p6672_p5, %p6669_p4 }
  0xf2   :  { %6677 = shalt.err (!%p6674_p6)
}
  0xf3   :  { %s7035_s0 = smov [#allocation2]   ;;  %s6678_s10 = scalar_lea.hbm %s7079_s17, 384 }
  0xf4   :  { %87 = dma.hbm_to_smem %s7069_s9, 32, %s7035_s0, [#allocation5]  }
  0xf5   :  { %p6679_p7 = scmp.ne.s32.totalorder %s7079_s17, %s6678_s10  ;;  %p6682_p8 = scmp.lt.u32.totalorder %s6678_s10, %s7079_s17 }
  0xf7   :  { %p6684_p9 = pnand %p6682_p8, %p6679_p7 }
  0xf9   :  { %6687 = shalt.err (!%p6684_p9)
}
  0xfa   :  { %s6688_s3 = scalar_lea.vmem %s96_s2, 384  ;;  %p6693_p11 = scmp.lt.s32.totalorder %s96_s2, %s96_s2 }
  0xfb   :  { %p6689_p10 = scmp.ne.s32.totalorder %s96_s2, %s6688_s3  ;;  %p6694_p12 = scmp.lt.s32.totalorder %s6688_s3, %s6688_s3 }
  0xfd   :  { %p6695_p13 = por %p6694_p12, %p6693_p11 }
  0xff   :  { %p6696_p0 = pnand %p6695_p13, %p6689_p10 }
 0x101   :  { %6699 = shalt.err (!%p6696_p0)
}
 0x102   :  { %101 = dma.hbm_to_vmem [thread:$0]  %s7079_s17, 384, %s96_s2, [#allocation3], %s7023_s18, %s7023_s18, %s7024_s22  }
 0x103   :  { %s7036_s9 = smov [#allocation9]   ;;  %s7037_s4 = smov [#allocation12]  }
 0x104   :  { %s121_s12 = sshll.u32 %s7036_s9, 4  ;;  %s146_s11 = sshll.u32 %s7037_s4, 4  ;;  %s122_s12 = int_to_ptr.vmem [resolvable:$true] %s121_s12  ;;  %s147_s11 = int_to_ptr.vmem [resolvable:$true] %s146_s11 }
 0x105   :  { %s6700_s19 = scalar_lea.hbm %s7094_s29, 512 }
 0x106   :  { %p6701_p1 = scmp.ne.s32.totalorder %s7094_s29, %s6700_s19  ;;  %p6704_p2 = scmp.lt.u32.totalorder %s6700_s19, %s7094_s29 }
 0x108   :  { %p6706_p3 = pnand %p6704_p2, %p6701_p1 }
 0x10a   :  { %6709 = shalt.err (!%p6706_p3)
}
 0x10b   :  { %s6710_s24 = scalar_lea.vmem %s122_s12, 512  ;;  %p6715_p5 = scmp.lt.s32.totalorder %s122_s12, %s122_s12 }
 0x10c   :  { %p6711_p4 = scmp.ne.s32.totalorder %s122_s12, %s6710_s24  ;;  %p6716_p6 = scmp.lt.s32.totalorder %s6710_s24, %s6710_s24 }
 0x10e   :  { %p6717_p7 = por %p6716_p6, %p6715_p5 }
 0x110   :  { %p6718_p8 = pnand %p6717_p7, %p6711_p4 }
 0x112   :  { %6721 = shalt.err (!%p6718_p8)
}
 0x113   :  { %127 = dma.hbm_to_vmem [thread:$0]  %s7094_s29, 512, %s122_s12, [#allocation8], %s7023_s18, %s7023_s18, %s7024_s22  }
 0x114   :  { %s6722_s17 = scalar_lea.hbm %s7104_s8, 16 }
 0x115   :  { %p6723_p9 = scmp.ne.s32.totalorder %s7104_s8, %s6722_s17  ;;  %p6726_p10 = scmp.lt.u32.totalorder %s6722_s17, %s7104_s8 }
 0x117   :  { %p6728_p11 = pnand %p6726_p10, %p6723_p9 }
 0x119   :  { %6731 = shalt.err (!%p6728_p11)
}
 0x11a   :  { %s6732_s15 = scalar_lea.vmem %s147_s11, 16  ;;  %s6736_s16 = scalar_lea.vmem %s147_s11, 32 }
 0x11b   :  { %p6733_p12 = scmp.ne.s32.totalorder %s147_s11, %s6732_s15  ;;  %p6737_p13 = scmp.lt.s32.totalorder %s147_s11, %s147_s11 }
 0x11c   :  { %p6738_p0 = scmp.lt.s32.totalorder %s6736_s16, %s6732_s15 }
 0x11e   :  { %p6739_p1 = por %p6738_p0, %p6737_p13 }
 0x120   :  { %p6740_p2 = pnand %p6739_p1, %p6733_p12 }
 0x122   :  { %6743 = shalt.err (!%p6740_p2)
}
 0x123   :  { %s8015_s23 = sld [smem:[#allocation60_spill]]  ;;  %s7038_s29 = smov [#allocation15]  }
 0x124   :  { %149 = dma.hbm_to_vmem [thread:$0]  %s7104_s8, 16, %s147_s11, [#allocation11]  }
 0x125   :  { %s169_s26 = sshll.u32 %s7038_s29, 4  ;;  %s7039_s21 = smov [#allocation18]   ;;  %s170_s26 = int_to_ptr.vmem [resolvable:$true] %s169_s26 }
 0x126   :  { %s194_s25 = sshll.u32 %s7039_s21, 4  ;;  %s195_s25 = int_to_ptr.vmem [resolvable:$true] %s194_s25 }
 0x129   :  { %s6744_s6 = scalar_lea.hbm %s8015_s23, 512 }
 0x12a   :  { %p6745_p3 = scmp.ne.s32.totalorder %s8015_s23, %s6744_s6  ;;  %p6748_p4 = scmp.lt.u32.totalorder %s6744_s6, %s8015_s23 }
 0x12c   :  { %p6750_p5 = pnand %p6748_p4, %p6745_p3 }
 0x12e   :  { %6753 = shalt.err (!%p6750_p5)
}
 0x12f   :  { %s6754_s13 = scalar_lea.vmem %s170_s26, 512  ;;  %p6759_p7 = scmp.lt.s32.totalorder %s170_s26, %s170_s26 }
 0x130   :  { %p6755_p6 = scmp.ne.s32.totalorder %s170_s26, %s6754_s13  ;;  %p6760_p8 = scmp.lt.s32.totalorder %s6754_s13, %s6754_s13 }
 0x132   :  { %p6761_p9 = por %p6760_p8, %p6759_p7 }
 0x134   :  { %p6762_p10 = pnand %p6761_p9, %p6755_p6 }
 0x136   :  { %6765 = shalt.err (!%p6762_p10)
}
 0x137   :  { %s8016_s8 = sld [smem:[#allocation61_spill]] }
 0x138   :  { %175 = dma.hbm_to_vmem [thread:$0]  %s8015_s23, 512, %s170_s26, [#allocation14], %s7023_s18, %s7023_s18, %s7024_s22  }
 0x13d   :  { %s6766_s28 = scalar_lea.hbm %s8016_s8, 16 }
 0x13e   :  { %p6767_p11 = scmp.ne.s32.totalorder %s8016_s8, %s6766_s28  ;;  %p6770_p12 = scmp.lt.u32.totalorder %s6766_s28, %s8016_s8 }
 0x140   :  { %p6772_p13 = pnand %p6770_p12, %p6767_p11 }
 0x142   :  { %6775 = shalt.err (!%p6772_p13)
}
 0x143   :  { %s6776_s1 = scalar_lea.vmem %s195_s25, 16  ;;  %s6780_s2 = scalar_lea.vmem %s195_s25, 32 }
 0x144   :  { %p6777_p0 = scmp.ne.s32.totalorder %s195_s25, %s6776_s1  ;;  %p6781_p1 = scmp.lt.s32.totalorder %s195_s25, %s195_s25 }
 0x145   :  { %p6782_p2 = scmp.lt.s32.totalorder %s6780_s2, %s6776_s1 }
 0x147   :  { %p6783_p3 = por %p6782_p2, %p6781_p1 }
 0x149   :  { %p6784_p4 = pnand %p6783_p3, %p6777_p0 }
 0x14b   :  { %6787 = shalt.err (!%p6784_p4)
}
 0x14c   :  { %s8017_s20 = sld [smem:[#allocation62_spill]]  ;;  %s7040_s7 = smov [#allocation21]  }
 0x14d   :  { %197 = dma.hbm_to_vmem [thread:$0]  %s8016_s8, 16, %s195_s25, [#allocation17]  }
 0x14e   :  { %s215_s27 = sshll.u32 %s7040_s7, 4  ;;  %s7041_s0 = smov [#allocation24]   ;;  %s216_s27 = int_to_ptr.vmem [resolvable:$true] %s215_s27 }
 0x14f   :  { %s237_s10 = sshll.u32 %s7041_s0, 4  ;;  %s238_s10 = int_to_ptr.vmem [resolvable:$true] %s237_s10 }
 0x152   :  { %s6788_s3 = scalar_lea.hbm %s8017_s20, 512 }
 0x153   :  { %p6789_p5 = scmp.ne.s32.totalorder %s8017_s20, %s6788_s3  ;;  %p6792_p6 = scmp.lt.u32.totalorder %s6788_s3, %s8017_s20 }
 0x155   :  { %p6794_p7 = pnand %p6792_p6, %p6789_p5 }
 0x157   :  { %6797 = shalt.err (!%p6794_p7)
}
 0x158   :  { %s6798_s9 = scalar_lea.vmem %s216_s27, 512  ;;  %p6803_p9 = scmp.lt.s32.totalorder %s216_s27, %s216_s27 }
 0x159   :  { %p6799_p8 = scmp.ne.s32.totalorder %s216_s27, %s6798_s9  ;;  %p6804_p10 = scmp.lt.s32.totalorder %s6798_s9, %s6798_s9 }
 0x15b   :  { %p6805_p11 = por %p6804_p10, %p6803_p9 }
 0x15d   :  { %p6806_p12 = pnand %p6805_p11, %p6799_p8 }
 0x15f   :  { %6809 = shalt.err (!%p6806_p12)
}
 0x160   :  { %s8018_s12 = sld [smem:[#allocation63_spill]] }
 0x161   :  { %221 = dma.hbm_to_vmem [thread:$0]  %s8017_s20, 512, %s216_s27, [#allocation20], %s7023_s18, %s7023_s18, %s7024_s22  }
 0x166   :  { %s6810_s4 = scalar_lea.hbm %s8018_s12, 512 }
 0x167   :  { %p6811_p13 = scmp.ne.s32.totalorder %s8018_s12, %s6810_s4  ;;  %p6814_p0 = scmp.lt.u32.totalorder %s6810_s4, %s8018_s12 }
 0x169   :  { %p6816_p1 = pnand %p6814_p0, %p6811_p13 }
 0x16b   :  { %6819 = shalt.err (!%p6816_p1)
}
 0x16c   :  { %s6820_s11 = scalar_lea.vmem %s238_s10, 512  ;;  %p6825_p3 = scmp.lt.s32.totalorder %s238_s10, %s238_s10 }
 0x16d   :  { %p6821_p2 = scmp.ne.s32.totalorder %s238_s10, %s6820_s11  ;;  %p6826_p4 = scmp.lt.s32.totalorder %s6820_s11, %s6820_s11 }
 0x16f   :  { %p6827_p5 = por %p6826_p4, %p6825_p3 }
 0x171   :  { %p6828_p6 = pnand %p6827_p5, %p6821_p2 }
 0x173   :  { %6831 = shalt.err (!%p6828_p6)
}
 0x174   :  { %s8019_s19 = sld [smem:[#allocation64_spill]]  ;;  %s7042_s24 = smov [#allocation27]  }
 0x175   :  { %243 = dma.hbm_to_vmem [thread:$0]  %s8018_s12, 512, %s238_s10, [#allocation23], %s7023_s18, %s7023_s18, %s7024_s22  }
 0x176   :  { %s262_s17 = sshll.u32 %s7042_s24, 4  ;;  %s7043_s15 = smov [#allocation30]   ;;  %s263_s17 = int_to_ptr.vmem [resolvable:$true] %s262_s17 }
 0x177   :  { %s283_s16 = sshll.u32 %s7043_s15, 4  ;;  %s284_s16 = int_to_ptr.vmem [resolvable:$true] %s283_s16 }
 0x17a   :  { %s6832_s23 = scalar_lea.hbm %s8019_s19, 16 }
 0x17b   :  { %p6833_p7 = scmp.ne.s32.totalorder %s8019_s19, %s6832_s23  ;;  %p6836_p8 = scmp.lt.u32.totalorder %s6832_s23, %s8019_s19 }
 0x17d   :  { %p6838_p9 = pnand %p6836_p8, %p6833_p7 }
 0x17f   :  { %6841 = shalt.err (!%p6838_p9)
}
 0x180   :  { %s6842_s29 = scalar_lea.vmem %s263_s17, 16  ;;  %s6846_s26 = scalar_lea.vmem %s263_s17, 32 }
 0x181   :  { %p6843_p10 = scmp.ne.s32.totalorder %s263_s17, %s6842_s29  ;;  %p6847_p11 = scmp.lt.s32.totalorder %s263_s17, %s263_s17 }
 0x182   :  { %p6848_p12 = scmp.lt.s32.totalorder %s6846_s26, %s6842_s29 }
 0x184   :  { %p6849_p13 = por %p6848_p12, %p6847_p11 }
 0x186   :  { %p6850_p0 = pnand %p6849_p13, %p6843_p10 }
 0x188   :  { %6853 = shalt.err (!%p6850_p0)
}
 0x189   :  { %s8020_s21 = sld [smem:[#allocation65_spill]] }
 0x18a   :  { %265 = dma.hbm_to_vmem [thread:$0]  %s8019_s19, 16, %s263_s17, [#allocation26]  }
 0x18f   :  { %s6854_s25 = scalar_lea.hbm %s8020_s21, 512 }
 0x190   :  { %p6855_p1 = scmp.ne.s32.totalorder %s8020_s21, %s6854_s25  ;;  %p6858_p2 = scmp.lt.u32.totalorder %s6854_s25, %s8020_s21 }
 0x192   :  { %p6860_p3 = pnand %p6858_p2, %p6855_p1 }
 0x194   :  { %6863 = shalt.err (!%p6860_p3)
}
 0x195   :  { %s6864_s6 = scalar_lea.vmem %s284_s16, 512  ;;  %p6869_p5 = scmp.lt.s32.totalorder %s284_s16, %s284_s16 }
 0x196   :  { %p6865_p4 = scmp.ne.s32.totalorder %s284_s16, %s6864_s6  ;;  %p6870_p6 = scmp.lt.s32.totalorder %s6864_s6, %s6864_s6 }
 0x198   :  { %p6871_p7 = por %p6870_p6, %p6869_p5 }
 0x19a   :  { %p6872_p8 = pnand %p6871_p7, %p6865_p4 }
 0x19c   :  { %6875 = shalt.err (!%p6872_p8)
}
 0x19d   :  { %s8021_s13 = sld [smem:[#allocation66_spill]]  ;;  %s7044_s8 = smov [#allocation33]  }
 0x19e   :  { %289 = dma.hbm_to_vmem [thread:$0]  %s8020_s21, 512, %s284_s16, [#allocation29], %s7023_s18, %s7023_s18, %s7024_s22  }
 0x19f   :  { %s305_s28 = sshll.u32 %s7044_s8, 4  ;;  %s7045_s1 = smov [#allocation36]   ;;  %s306_s28 = int_to_ptr.vmem [resolvable:$true] %s305_s28 }
 0x1a0   :  { %s330_s2 = sshll.u32 %s7045_s1, 4  ;;  %s331_s2 = int_to_ptr.vmem [resolvable:$true] %s330_s2 }
 0x1a3   :  { %s6876_s20 = scalar_lea.hbm %s8021_s13, 512 }
 0x1a4   :  { %p6877_p9 = scmp.ne.s32.totalorder %s8021_s13, %s6876_s20  ;;  %p6880_p10 = scmp.lt.u32.totalorder %s6876_s20, %s8021_s13 }
 0x1a6   :  { %p6882_p11 = pnand %p6880_p10, %p6877_p9 }
 0x1a8   :  { %6885 = shalt.err (!%p6882_p11)
}
 0x1a9   :  { %s6886_s7 = scalar_lea.vmem %s306_s28, 512  ;;  %p6891_p13 = scmp.lt.s32.totalorder %s306_s28, %s306_s28 }
 0x1aa   :  { %p6887_p12 = scmp.ne.s32.totalorder %s306_s28, %s6886_s7  ;;  %p6892_p0 = scmp.lt.s32.totalorder %s6886_s7, %s6886_s7 }
 0x1ac   :  { %p6893_p1 = por %p6892_p0, %p6891_p13 }
 0x1ae   :  { %p6894_p2 = pnand %p6893_p1, %p6887_p12 }
 0x1b0   :  { %6897 = shalt.err (!%p6894_p2)
}
 0x1b1   :  { %311 = dma.hbm_to_vmem [thread:$0]  %s8021_s13, 512, %s306_s28, [#allocation32], %s7023_s18, %s7023_s18, %s7024_s22  }
 0x1b2   :  { %s6898_s27 = scalar_lea.hbm %s7194_s5, 16 }
 0x1b3   :  { %p6899_p3 = scmp.ne.s32.totalorder %s7194_s5, %s6898_s27  ;;  %p6902_p4 = scmp.lt.u32.totalorder %s6898_s27, %s7194_s5 }
 0x1b5   :  { %p6904_p5 = pnand %p6902_p4, %p6899_p3 }
 0x1b7   :  { %6907 = shalt.err (!%p6904_p5)
}
 0x1b8   :  { %s6908_s0 = scalar_lea.vmem %s331_s2, 16  ;;  %s6912_s10 = scalar_lea.vmem %s331_s2, 32 }
 0x1b9   :  { %p6909_p6 = scmp.ne.s32.totalorder %s331_s2, %s6908_s0  ;;  %p6913_p7 = scmp.lt.s32.totalorder %s331_s2, %s331_s2 }
 0x1ba   :  { %p6914_p8 = scmp.lt.s32.totalorder %s6912_s10, %s6908_s0 }
 0x1bc   :  { %p6915_p9 = por %p6914_p8, %p6913_p7 }
 0x1be   :  { %p6916_p10 = pnand %p6915_p9, %p6909_p6 }
 0x1c0   :  { %6919 = shalt.err (!%p6916_p10)
}
 0x1c1   :  { %333 = dma.hbm_to_vmem [thread:$0]  %s7194_s5, 16, %s331_s2, [#allocation35]  }
 0x1c2   :  { %s7046_s18 = smov [#allocation39]   ;;  %s6920_s3 = scalar_lea.hbm %s7204_s14, 16 }
 0x1c3   :  { %s352_s22 = sshll.u32 %s7046_s18, 4  ;;  %p6921_p11 = scmp.ne.s32.totalorder %s7204_s14, %s6920_s3  ;;  %s353_s22 = int_to_ptr.vmem [resolvable:$true] %s352_s22 }
 0x1c4   :  { %p6924_p12 = scmp.lt.u32.totalorder %s6920_s3, %s7204_s14 }
 0x1c6   :  { %p6926_p13 = pnand %p6924_p12, %p6921_p11 }
 0x1c8   :  { %6929 = shalt.err (!%p6926_p13)
}
 0x1c9   :  { %s6930_s9 = scalar_lea.vmem %s353_s22, 16  ;;  %s6934_s12 = scalar_lea.vmem %s353_s22, 32 }
 0x1ca   :  { %p6931_p0 = scmp.ne.s32.totalorder %s353_s22, %s6930_s9  ;;  %p6935_p1 = scmp.lt.s32.totalorder %s353_s22, %s353_s22 }
 0x1cb   :  { %p6936_p2 = scmp.lt.s32.totalorder %s6934_s12, %s6930_s9 }
 0x1cd   :  { %p6937_p3 = por %p6936_p2, %p6935_p1 }
 0x1cf   :  { %p6938_p4 = pnand %p6937_p3, %p6931_p0 }
 0x1d1   :  { %6941 = shalt.err (!%p6938_p4)
}
 0x1d2   :  { %355 = dma.hbm_to_vmem [thread:$0]  %s7204_s14, 16, %s353_s22, [#allocation38]  }
 0x1d3   :  { %6964 = dma.done.wait [#allocation5], 32  }
 0x1d4   :  { %6965 = vsyncadd [#allocation5], 4294967264 }
 0x1d5   :  { %6966 = dma.done.wait [#allocation3], 384  }
 0x1d6   :  { %6967 = vsyncadd [#allocation3], 4294966912 }
 0x1d7   :  { %6968 = dma.done.wait [#allocation8], 1024  }
 0x1d8   :  { %6969 = vsyncadd [#allocation8], 4294966272 }
 0x1d9   :  { %6970 = dma.done.wait [#allocation11], 528  }
 0x1da   :  { %6971 = vsyncadd [#allocation11], 4294966768 }
 0x1db   :  { %6972 = dma.done.wait [#allocation14], 528  }
 0x1dc   :  { %6973 = vsyncadd [#allocation14], 4294966768 }
 0x1dd   :  { %6974 = dma.done.wait [#allocation17], 528  }
 0x1de   :  { %6975 = vsyncadd [#allocation17], 4294966768 }
 0x1df   :  { %6976 = dma.done.wait [#allocation20], 1024  }
 0x1e0   :  { %6977 = vsyncadd [#allocation20], 4294966272 }
 0x1e1   :  { %6978 = dma.done.wait [#allocation23], 528  }
 0x1e2   :  { %6979 = vsyncadd [#allocation23], 4294966768 }
 0x1e3   :  { %6980 = dma.done.wait [#allocation26], 528  }
 0x1e4   :  { %6981 = vsyncadd [#allocation26], 4294966768 }
 0x1e5   :  { %6982 = dma.done.wait [#allocation29], 1024  }
 0x1e6   :  { %6983 = vsyncadd [#allocation29], 4294966272 }
 0x1e7   :  { %6984 = dma.done.wait [#allocation32], 528  }
 0x1e8   :  { %6985 = vsyncadd [#allocation32], 4294966768 }
 0x1e9   :  { %6986 = dma.done.wait [#allocation35], 528  }
 0x1ea   :  { %6987 = vsyncadd [#allocation35], 4294966768 }
 0x1eb   :  { %6988 = dma.done.wait [#allocation38], 1040  }
 0x1ec   :  { %6989 = vsyncadd [#allocation38], 4294966256 }
 0x1ed   :  { %428 = sfence }
 0x1ee   :  { %v429_v0 = vld [vmem:[#allocation6] sm:$0xff]  ;;  %s8022_s5 = sld [smem:[#allocation55_spill]]  ;;  %s8023_s14 = sld [smem:[#allocation57_spill]]  ;;  %v430_v1 = vld [vmem:[#allocation6 + $0x8] sm:$0xff]  ;;  %vm521_vm0 = vcmask 195584   ;;  %v431_v4 = vld [vmem:[#allocation6 + $0x10] sm:$0xff] }
 0x1ef   :  { %v5817_v2 = vpack.c.bf16 %v430_v1, %v429_v0  ;;  %s7047_s4 = smov 64   ;;  %s7048_s11 = smov 32   ;;  %v432_v21 = vld [vmem:[#allocation7] sm:$0xff]  ;;  %v433_v22 = vld [vmem:[#allocation7 + $0x8] sm:$0xff]  ;;  %v434_v23 = vld [vmem:[#allocation7 + $0x10] sm:$0xff]  ;;  %v7049_v24 = vmov 0.0|0.0  }
 0x1f0   :  { %5821 = vmatprep.subr.bf16.mxu1 %v7049_v24  ;;  %v7392_v25 = vpack.c.bf16 %v433_v22, %v432_v21  ;;  %v435_v26 = vld [vmem:[#allocation7 + $0x18] sm:$0xff]  ;;  %vm7050_vm1 = vmmov 0   ;;  %v7051_v27 = vmov 0.0   ;;  %vm630_vm2 = vcmask 261120   ;;  %s8024_s19 = sld [smem:[#allocation58_spill]]  ;;  %s8025_s24 = sld [smem:[#allocation59_spill]] }
 0x1f1   :  { %5818 = vmatprep.subr.bf16.mxu0 %v5817_v2  ;;  %5377 = vmatprep.mubr.msk.f32.mxu1 %vm7050_vm1, %v7051_v27  ;;  %v7400_v28 = vpack.c.bf16 %v435_v26, %v434_v23  ;;  %vm1372_vm3 = vcmask 1041408   ;;  %vm1374_vm4 = vcmask 1043456   ;;  %vm1376_vm5 = vcmask 1045504   ;;  %s3561_s17 = sld [smem:[#allocation2]]  ;;  %s8026_s16 = sld [smem:[#allocation56_spill]] }
 0x1f2   :  { %5820 = vmatpush3.bf16.msra.mxu0 %v5817_v2  ;;  %5823 = vmatpush3.bf16.msra.mxu1 %v7392_v25  ;;  %vm2281_vm6 = vcmask 523264   ;;  %s5106_s15 = sld [smem:[#allocation2 + $0x80]]  ;;  %s5108_s23 = sld [smem:[#allocation2 + $0x1]]  ;;  %vm3601_vm10 = vcmask 1040384   ;;  %vm7052_vm11 = vmmov 1   ;;  %vm3604_vm13 = vcmask 1042432  }
 0x1f3   :  { %5364 = vmatprep.subr.mxu0 %v431_v4  ;;  %5824 = vmatprep.subr.bf16.mxu1 %v7049_v24  ;;  %s5110_s29 = sld [smem:[#allocation2 + $0x81]]  ;;  %s5112_s26 = sld [smem:[#allocation2 + $0x2]]  ;;  %vm5996_vm12 = vmpackc.low %vm1374_vm4, %vm7052_vm11  ;;  %vm3607_vm15 = vcmask 1044480   ;;  %vm3610_vm11 = vcmask 1046528  }
 0x1f4   :  { %v513_v3 = vld [vmem:[%s8022_s5] sm:$0xff]  ;;  %v514_v5 = vld [vmem:[%s8022_s5 + $0x8] sm:$0xff]  ;;  %s5114_s21 = sld [smem:[#allocation2 + $0x82]]  ;;  %s5116_s25 = sld [smem:[#allocation2 + $0x3]] }
 0x1f5   :  { %5366 = vmatprep.mubr.msk.f32.mxu0 %vm521_vm0, %v513_v3  ;;  %v5042_v6 = vld [vmem:[%s8023_s14] ss:$0 sm:$0xff]  ;;  %s5118_s6 = sld [smem:[#allocation2 + $0x83]]  ;;  %s7054_s13 = smov [#allocation40]  }
 0x1f6   :  { %5365 = vmatpush3.msra.mxu0 %v431_v4  ;;  %5826 = vmatpush3.bf16.msra.mxu1 %v7400_v28  ;;  %s4989_s8 = sshll.u32 %s7054_s13, 4  ;;  %s4990_s8 = int_to_ptr.vmem [resolvable:$true] %s4989_s8 }
 0x1f7   :  { %5367 = vmatmul.mubr.msk.f32.vlgmr.msra.gmra.mrb[0].mxu0 %vm521_vm0, %v514_v5  ;;  %5839 = vmatprep.subr.bf16.mxu0 %v7049_v24  ;;  %s6942_s28 = scalar_lea.vmem %s4990_s8, 512  ;;  %p6947_p6 = scmp.lt.s32.totalorder %s4990_s8, %s4990_s8 }
 0x1f8   :  { %5410 = vmatprep.mubr.msk.f32.mxu0 %vm7050_vm1, %v7051_v27  ;;  %5841 = vmatpush3.bf16.msra.mxu0 %v7392_v25  ;;  %p6943_p5 = scmp.ne.s32.totalorder %s4990_s8, %s6942_s28  ;;  %p6948_p7 = scmp.lt.s32.totalorder %s6942_s28, %s6942_s28 }
 0x1f9   :  { %5842 = vmatprep.subr.bf16.mxu0 %v7049_v24  ;;  %5827 = vmatprep.subr.bf16.mxu1 %v7049_v24 }
 0x1fa   :  { %p6949_p8 = por %p6948_p7, %p6947_p6 }
 0x1fc   :  { %5844 = vmatpush3.bf16.msra.mxu0 %v7400_v28  ;;  %p6950_p9 = pnand %p6949_p8, %p6943_p5 }
 0x1fd   :  { %5851 = vmatprep.subr.bf16.mxu0 %v7049_v24 }
 0x2ca   :  { %v5368_v7 = vpop.f32.mrb[0].mxu0 }
 0x2cb   :  { %v7383_v8 = vadd.f32 %v5368_v7, %v5042_v6  ;;  %v594_v9 = vpop.f32.mrb[1].mxu0 }
 0x2cc   :  { %v7385_v10 = vadd.f32 %v5042_v6, %v594_v9 }
 0x2ce   :  { %6138 = vtanh.f32 %v7385_v10  ;;  %v5045_v12 = vmul.f32 -1.442695, %v7385_v10 }
 0x2d0   :  { %6140 = vpow2.f32 %v5045_v12 }
 0x2d8   :  { %v6139_v11 = vpop.eup %6138 }
 0x2d9   :  { %612 = vrot.lane.b32.xlu0 %v6139_v11, %s7047_s4 }
 0x2da   :  { %v6141_v13 = vpop.eup %6140 }
 0x2db   :  { %v606_v14 = vadd.f32 1.0, %v6141_v13 }
 0x2dd   :  { %6142 = vrcp.f32 %v606_v14 }
 0x2e7   :  { %v6143_v15 = vpop.eup %6142 }
 0x2e8   :  { %v610_v18 = vmul.f32 0.0, %v6143_v15 }
 0x34b   :  { %v613_v16 = vpop.permute.xlu0 %612 }
 0x34c   :  { %v615_v17 = vmul.f32 %v6143_v15, %v613_v16 }
 0x34e   :  { %617 = vrot.lane.b32.xlu0 %v615_v17, %s7048_s11 }
 0x3c0   :  { %v618_v19 = vpop.permute.xlu0 %617 }
 0x3c1   :  { %v620_v20 = vadd.f32 %v618_v19, %v610_v18 }
 0x3c3   :  { %6144 = vtanh.f32 %v620_v20  ;;  %v715_v44 = vrot.slane %v620_v20, 6 }
 0x3cd   :  { %v6145_v29 = vpop.eup %6144 }
 0x3ce   :  { %623 = vrot.lane.b32.xlu1 %v6145_v29, %s7047_s4 }
 0x440   :  { %v624_v30 = vpop.permute.xlu1 %623 }
 0x441   :  { %v7410_v31 = vmul.f32 %v6143_v15, %v624_v30 }
 0x443   :  { %628 = vrot.lane.b32.xlu1 %v7410_v31, %s7048_s11 }
 0x4b5   :  { %v629_v32 = vpop.permute.xlu1 %628 }
 0x4b6   :  { %5378 = vmatmul.mubr.msk.f32.vlgmr.msra.gmra.mrb[0].mxu1 %vm630_vm2, %v629_v32 }
 0x4b7   :  { %5829 = vmatpush3.bf16.msra.mxu1 %v7392_v25  ;;  %5388 = vmatprep.mubr.msk.f32.mxu1 %vm7050_vm1, %v7051_v27 }
 0x4b8   :  { %5830 = vmatprep.subr.bf16.mxu1 %v7049_v24 }
 0x4bb   :  { %5832 = vmatpush3.bf16.msra.mxu1 %v7400_v28 }
 0x4bc   :  { %5833 = vmatprep.subr.bf16.mxu1 %v7049_v24 }
 0x589   :  { %v699_v33 = vpop.f32.mrb[0].mxu1 }
 0x58a   :  { %v704_v34 = vrot.slane %v699_v33, 6  ;;  %v5379_v35 = vpop.f32.mrb[1].mxu1 }
 0x58c   :  { %v706_v36 = vadd.f32 %v704_v34, %v7385_v10 }
 0x58e   :  { %6146 = vtanh.f32 %v706_v36  ;;  %v5047_v38 = vmul.f32 -1.442695, %v706_v36 }
 0x590   :  { %6148 = vpow2.f32 %v5047_v38 }
 0x598   :  { %v6147_v37 = vpop.eup %6146 }
 0x599   :  { %719 = vrot.lane.b32.xlu0 %v6147_v37, %s7047_s4 }
 0x59a   :  { %v6149_v39 = vpop.eup %6148 }
 0x59b   :  { %v710_v40 = vadd.f32 1.0, %v6149_v39 }
 0x59d   :  { %6150 = vrcp.f32 %v710_v40 }
 0x5a7   :  { %v6151_v41 = vpop.eup %6150 }
 0x5a8   :  { %v717_v45 = vmul.f32 %v6151_v41, %v715_v44 }
 0x60b   :  { %v720_v42 = vpop.permute.xlu0 %719 }
 0x60c   :  { %v722_v43 = vmul.f32 %v6151_v41, %v720_v42 }
 0x60e   :  { %724 = vrot.lane.b32.xlu1 %v722_v43, %s7048_s11 }
 0x680   :  { %v725_v46 = vpop.permute.xlu1 %724 }
 0x681   :  { %v727_v47 = vadd.f32 %v725_v46, %v717_v45 }
 0x683   :  { %6152 = vtanh.f32 %v727_v47  ;;  %v822_v0 = vrot.slane %v727_v47, 6 }
 0x68d   :  { %v6153_v48 = vpop.eup %6152 }
 0x68e   :  { %730 = vrot.lane.b32.xlu0 %v6153_v48, %s7047_s4 }
 0x700   :  { %v731_v49 = vpop.permute.xlu0 %730 }
 0x701   :  { %v733_v50 = vmul.f32 %v6151_v41, %v731_v49 }
 0x703   :  { %v735_v51 = vrot.slane %v733_v50, 2  ;;  %v1373_v7 = vsel %vm1372_vm3, %v7410_v31, %v733_v50 }
 0x705   :  { %736 = vrot.lane.b32.xlu1 %v735_v51, %s7048_s11 }
 0x777   :  { %v737_v52 = vpop.permute.xlu1 %736 }
 0x778   :  { %5389 = vmatmul.mubr.msk.f32.vlgmr.msra.gmra.mrb[2].mxu1 %vm630_vm2, %v737_v52 }
 0x779   :  { %5835 = vmatpush3.bf16.msra.mxu1 %v7392_v25  ;;  %5399 = vmatprep.mubr.msk.f32.mxu1 %vm7050_vm1, %v7051_v27 }
 0x77a   :  { %5836 = vmatprep.subr.bf16.mxu1 %v7049_v24 }
 0x77d   :  { %5838 = vmatpush3.bf16.msra.mxu1 %v7400_v28 }
 0x77e   :  { %5845 = vmatprep.subr.bf16.mxu1 %v7049_v24 }
 0x84b   :  { %v806_v53 = vpop.f32.mrb[2].mxu1 }
 0x84c   :  { %v811_v54 = vrot.slane %v806_v53, 4  ;;  %v5390_v55 = vpop.f32.mrb[3].mxu1 }
 0x84e   :  { %v813_v56 = vadd.f32 %v811_v54, %v7385_v10 }
 0x850   :  { %6154 = vtanh.f32 %v813_v56  ;;  %v5049_v58 = vmul.f32 -1.442695, %v813_v56 }
 0x852   :  { %6156 = vpow2.f32 %v5049_v58 }
 0x85a   :  { %v6155_v57 = vpop.eup %6154 }
 0x85b   :  { %826 = vrot.lane.b32.xlu0 %v6155_v57, %s7047_s4 }
 0x85c   :  { %v6157_v59 = vpop.eup %6156 }
 0x85d   :  { %v817_v60 = vadd.f32 1.0, %v6157_v59 }
 0x85f   :  { %6158 = vrcp.f32 %v817_v60 }
 0x869   :  { %v6159_v61 = vpop.eup %6158 }
 0x86a   :  { %v824_v1 = vmul.f32 %v6159_v61, %v822_v0 }
 0x8cd   :  { %v827_v62 = vpop.permute.xlu0 %826 }
 0x8ce   :  { %v829_v63 = vmul.f32 %v6159_v61, %v827_v62 }
 0x8d0   :  { %831 = vrot.lane.b32.xlu1 %v829_v63, %s7048_s11 }
 0x942   :  { %v832_v2 = vpop.permute.xlu1 %831 }
 0x943   :  { %v834_v3 = vadd.f32 %v832_v2, %v824_v1 }
 0x945   :  { %6160 = vtanh.f32 %v834_v3  ;;  %v929_v26 = vrot.slane %v834_v3, 6 }
 0x94f   :  { %v6161_v4 = vpop.eup %6160 }
 0x950   :  { %837 = vrot.lane.b32.xlu0 %v6161_v4, %s7047_s4 }
 0x9c2   :  { %v838_v5 = vpop.permute.xlu0 %837 }
 0x9c3   :  { %v840_v6 = vmul.f32 %v6159_v61, %v838_v5 }
 0x9c5   :  { %v842_v9 = vrot.slane %v840_v6, 4  ;;  %v1375_v11 = vsel %vm1374_vm4, %v1373_v7, %v840_v6 }
 0x9c7   :  { %843 = vrot.lane.b32.xlu1 %v842_v9, %s7048_s11 }
 0xa39   :  { %v844_v12 = vpop.permute.xlu1 %843 }
 0xa3a   :  { %5400 = vmatmul.mubr.msk.f32.vlgmr.msra.gmra.mrb[4].mxu1 %vm630_vm2, %v844_v12 }
 0xa3b   :  { %5847 = vmatpush3.bf16.msra.mxu1 %v7392_v25  ;;  %5421 = vmatprep.mubr.msk.f32.mxu1 %vm7050_vm1, %v7051_v27 }
 0xa3c   :  { %5848 = vmatprep.subr.bf16.mxu1 %v7049_v24 }
 0xa3f   :  { %5850 = vmatpush3.bf16.msra.mxu1 %v7400_v28 }
 0xa40   :  { %5857 = vmatprep.subr.bf16.mxu1 %v7049_v24 }
 0xb0d   :  { %v913_v13 = vpop.f32.mrb[4].mxu1 }
 0xb0e   :  { %v918_v14 = vrot.slane %v913_v13, 2  ;;  %v5401_v15 = vpop.f32.mrb[5].mxu1 }
 0xb10   :  { %v920_v16 = vadd.f32 %v918_v14, %v7385_v10 }
 0xb12   :  { %6162 = vtanh.f32 %v920_v16  ;;  %v5051_v18 = vmul.f32 -1.442695, %v920_v16 }
 0xb14   :  { %6164 = vpow2.f32 %v5051_v18 }
 0xb1c   :  { %v6163_v17 = vpop.eup %6162 }
 0xb1d   :  { %933 = vrot.lane.b32.xlu0 %v6163_v17, %s7047_s4 }
 0xb1e   :  { %v6165_v19 = vpop.eup %6164 }
 0xb1f   :  { %v924_v20 = vadd.f32 1.0, %v6165_v19 }
 0xb21   :  { %6166 = vrcp.f32 %v924_v20 }
 0xb2b   :  { %v6167_v21 = vpop.eup %6166 }
 0xb2c   :  { %v931_v29 = vmul.f32 %v6167_v21, %v929_v26 }
 0xb8f   :  { %v934_v22 = vpop.permute.xlu0 %933 }
 0xb90   :  { %v936_v23 = vmul.f32 %v6167_v21, %v934_v22 }
 0xb92   :  { %938 = vrot.lane.b32.xlu1 %v936_v23, %s7048_s11 }
 0xc04   :  { %v939_v30 = vpop.permute.xlu1 %938 }
 0xc05   :  { %v941_v31 = vadd.f32 %v939_v30, %v931_v29 }
 0xc07   :  { %6168 = vtanh.f32 %v941_v31  ;;  %v1033_v47 = vrot.slane %v941_v31, 6 }
 0xc11   :  { %v6169_v10 = vpop.eup %6168 }
 0xc12   :  { %944 = vrot.lane.b32.xlu0 %v6169_v10, %s7047_s4 }
 0xc84   :  { %v945_v32 = vpop.permute.xlu0 %944 }
 0xc85   :  { %v947_v33 = vmul.f32 %v6167_v21, %v945_v32 }
 0xc87   :  { %v949_v34 = vrot.slane %v947_v33, 6  ;;  %v7453_v35 = vsel %vm1376_vm5, %v1375_v11, %v947_v33 }
 0xc89   :  { %950 = vrot.lane.b32.xlu1 %v949_v34, %s7048_s11 }
 0xcfb   :  { %v951_v36 = vpop.permute.xlu1 %950 }
 0xcfc   :  { %5411 = vmatmul.mubr.msk.f32.vlgmr.msra.gmra.mrb[2].mxu0 %vm630_vm2, %v951_v36 }
 0xcfd   :  { %5853 = vmatpush3.bf16.msra.mxu0 %v7392_v25  ;;  %5432 = vmatprep.mubr.msk.f32.mxu0 %vm7050_vm1, %v7051_v27 }
 0xcfe   :  { %5854 = vmatprep.subr.bf16.mxu0 %v7049_v24 }
 0xd01   :  { %5856 = vmatpush3.bf16.msra.mxu0 %v7400_v28 }
 0xdcf   :  { %v1020_v37 = vpop.f32.mrb[2].mxu0 }
 0xdd0   :  { %v1024_v38 = vadd.f32 %v1020_v37, %v7383_v8  ;;  %v5412_v39 = vpop.f32.mrb[3].mxu0 }
 0xdd2   :  { %6170 = vtanh.f32 %v1024_v38  ;;  %v5053_v41 = vmul.f32 -1.442695, %v1024_v38 }
 0xdd4   :  { %6172 = vpow2.f32 %v5053_v41 }
 0xddc   :  { %v6171_v40 = vpop.eup %6170 }
 0xddd   :  { %1037 = vrot.lane.b32.xlu0 %v6171_v40, %s7047_s4 }
 0xdde   :  { %v6173_v42 = vpop.eup %6172 }
 0xddf   :  { %v1028_v43 = vadd.f32 1.0, %v6173_v42 }
 0xde1   :  { %6174 = vrcp.f32 %v1028_v43 }
 0xdeb   :  { %v6175_v44 = vpop.eup %6174 }
 0xdec   :  { %v1035_v48 = vmul.f32 %v6175_v44, %v1033_v47 }
 0xe4f   :  { %v1038_v45 = vpop.permute.xlu0 %1037 }
 0xe50   :  { %v1040_v46 = vmul.f32 %v6175_v44, %v1038_v45 }
 0xe52   :  { %1042 = vrot.lane.b32.xlu1 %v1040_v46, %s7048_s11 }
 0xec4   :  { %v1043_v49 = vpop.permute.xlu1 %1042 }
 0xec5   :  { %v1045_v50 = vadd.f32 %v1043_v49, %v1035_v48 }
 0xec7   :  { %6176 = vtanh.f32 %v1045_v50 }
 0xed1   :  { %v6177_v51 = vpop.eup %6176 }
 0xed2   :  { %1048 = vrot.lane.b32.xlu0 %v6177_v51, %s7047_s4 }
 0xf44   :  { %v1049_v52 = vpop.permute.xlu0 %1048 }
 0xf45   :  { %v7466_v53 = vmul.f32 %v6175_v44, %v1049_v52  ;;  %v437_v52 = vld [vmem:[#allocation9] sm:$0xff] }
 0xf47   :  { %1053 = vrot.lane.b32.xlu1 %v7466_v53, %s7048_s11 }
 0xfb9   :  { %v1054_v54 = vpop.permute.xlu1 %1053 }
 0xfba   :  { %5422 = vmatmul.mubr.msk.f32.vlgmr.msra.gmra.mrb[6].mxu1 %vm630_vm2, %v1054_v54  ;;  %v439_v54 = vld [vmem:[#allocation9 + $0x10] sm:$0xff] }
 0xfbb   :  { %5859 = vmatpush3.bf16.msra.mxu1 %v7392_v25  ;;  %5443 = vmatprep.mubr.msk.f32.mxu1 %vm7050_vm1, %v7051_v27 }
 0xfbc   :  { %5860 = vmatprep.subr.bf16.mxu1 %v7049_v24 }
 0xfbf   :  { %5862 = vmatpush3.bf16.msra.mxu1 %v7400_v28  ;;  %v1139_v28 = vrot.slane %v1045_v50, 6 }
 0xfc0   :  { %5871 = vmatprep.subr.bf16.mxu1 %v7049_v24 }
0x108d   :  { %v1123_v55 = vpop.f32.mrb[6].mxu1 }
0x108e   :  { %v1128_v56 = vrot.slane %v1123_v55, 6  ;;  %v5423_v57 = vpop.f32.mrb[7].mxu1 }
0x1090   :  { %v1130_v58 = vadd.f32 %v1128_v56, %v7383_v8  ;;  %v440_v56 = vld [vmem:[#allocation9 + $0x18] sm:$0xff] }
0x1091   :  { %v5867_v57 = vpack.c.bf16 %v440_v56, %v439_v54 }
0x1092   :  { %6178 = vtanh.f32 %v1130_v58  ;;  %v5055_v60 = vmul.f32 -1.442695, %v1130_v58 }
0x1094   :  { %6180 = vpow2.f32 %v5055_v60 }
0x109c   :  { %v6179_v59 = vpop.eup %6178 }
0x109d   :  { %1143 = vrot.lane.b32.xlu0 %v6179_v59, %s7047_s4 }
0x109e   :  { %v6181_v25 = vpop.eup %6180 }
0x109f   :  { %v1134_v61 = vadd.f32 1.0, %v6181_v25 }
0x10a1   :  { %6182 = vrcp.f32 %v1134_v61  ;;  %v5060_v61 = vld [vmem:[#allocation12] ss:$0 sm:$0xff] }
0x10ab   :  { %v6183_v62 = vpop.eup %6182 }
0x10ac   :  { %v1141_v1 = vmul.f32 %v6183_v62, %v1139_v28 }
0x110f   :  { %v1144_v63 = vpop.permute.xlu0 %1143 }
0x1110   :  { %v1146_v0 = vmul.f32 %v6183_v62, %v1144_v63 }
0x1112   :  { %1148 = vrot.lane.b32.xlu1 %v1146_v0, %s7048_s11 }
0x1184   :  { %v1149_v2 = vpop.permute.xlu1 %1148 }
0x1185   :  { %v1151_v3 = vadd.f32 %v1149_v2, %v1141_v1 }
0x1187   :  { %6184 = vtanh.f32 %v1151_v3  ;;  %v1246_v22 = vrot.slane %v1151_v3, 6 }
0x1191   :  { %v6185_v4 = vpop.eup %6184 }
0x1192   :  { %1154 = vrot.lane.b32.xlu0 %v6185_v4, %s7047_s4 }
0x1204   :  { %v1155_v5 = vpop.permute.xlu0 %1154 }
0x1205   :  { %v1157_v6 = vmul.f32 %v6183_v62, %v1155_v5 }
0x1207   :  { %v1159_v7 = vrot.slane %v1157_v6, 2  ;;  %v1378_v32 = vsel %vm1372_vm3, %v7466_v53, %v1157_v6  ;;  %v438_v53 = vld [vmem:[#allocation9 + $0x8] sm:$0xff] }
0x1208   :  { %v5863_v55 = vpack.c.bf16 %v438_v53, %v437_v52 }
0x1209   :  { %1160 = vrot.lane.b32.xlu1 %v1159_v7, %s7048_s11 }
0x120a   :  { %5864 = vmatprep.subr.bf16.mxu0 %v5863_v55 }
0x127b   :  { %v1161_v9 = vpop.permute.xlu1 %1160 }
0x127c   :  { %5433 = vmatmul.mubr.msk.f32.vlgmr.msra.gmra.mrb[4].mxu0 %vm630_vm2, %v1161_v9 }
0x127d   :  { %5866 = vmatpush3.bf16.msra.mxu0 %v5863_v55 }
0x127e   :  { %5868 = vmatprep.subr.bf16.mxu0 %v5867_v57 }
0x1281   :  { %5870 = vmatpush3.bf16.msra.mxu0 %v5867_v57 }
0x1282   :  { %5877 = vmatprep.subr.bf16.mxu0 %v7049_v24 }
0x134f   :  { %v1230_v11 = vpop.f32.mrb[4].mxu0 }
0x1350   :  { %v1235_v12 = vrot.slane %v1230_v11, 4  ;;  %v5434_v13 = vpop.f32.mrb[5].mxu0 }
0x1351   :  { %v441_v13 = vld [vmem:[#allocation10] sm:$0xff] }
0x1352   :  { %v1237_v14 = vadd.f32 %v1235_v12, %v7383_v8 }
0x1354   :  { %6186 = vtanh.f32 %v1237_v14  ;;  %v5057_v16 = vmul.f32 -1.442695, %v1237_v14  ;;  %v442_v14 = vld [vmem:[#allocation10 + $0x8] sm:$0xff] }
0x1356   :  { %6188 = vpow2.f32 %v5057_v16  ;;  %v7515_v16 = vpack.c.bf16 %v442_v14, %v441_v13 }
0x135e   :  { %v6187_v15 = vpop.eup %6186 }
0x135f   :  { %1250 = vrot.lane.b32.xlu0 %v6187_v15, %s7047_s4  ;;  %v443_v15 = vld [vmem:[#allocation10 + $0x10] sm:$0xff] }
0x1360   :  { %v6189_v17 = vpop.eup %6188 }
0x1361   :  { %v1241_v18 = vadd.f32 1.0, %v6189_v17  ;;  %v444_v17 = vld [vmem:[#allocation10 + $0x18] sm:$0xff] }
0x1363   :  { %6190 = vrcp.f32 %v1241_v18  ;;  %v7518_v18 = vpack.c.bf16 %v444_v17, %v443_v15 }
0x136d   :  { %v6191_v19 = vpop.eup %6190 }
0x136e   :  { %v1248_v23 = vmul.f32 %v6191_v19, %v1246_v22 }
0x13d1   :  { %v1251_v20 = vpop.permute.xlu0 %1250 }
0x13d2   :  { %v1253_v21 = vmul.f32 %v6191_v19, %v1251_v20 }
0x13d4   :  { %1255 = vrot.lane.b32.xlu1 %v1253_v21, %s7048_s11 }
0x1446   :  { %v1256_v26 = vpop.permute.xlu1 %1255 }
0x1447   :  { %v1258_v29 = vadd.f32 %v1256_v26, %v1248_v23 }
0x1449   :  { %6192 = vtanh.f32 %v1258_v29  ;;  %v1353_v48 = vrot.slane %v1258_v29, 6 }
0x1453   :  { %v6193_v30 = vpop.eup %6192 }
0x1454   :  { %1261 = vrot.lane.b32.xlu0 %v6193_v30, %s7047_s4 }
0x14c6   :  { %v1262_v31 = vpop.permute.xlu0 %1261 }
0x14c7   :  { %v1264_v10 = vmul.f32 %v6191_v19, %v1262_v31 }
0x14c9   :  { %v1266_v33 = vrot.slane %v1264_v10, 4  ;;  %v1379_v34 = vsel %vm1374_vm4, %v1378_v32, %v1264_v10 }
0x14cb   :  { %1267 = vrot.lane.b32.xlu1 %v1266_v33, %s7048_s11 }
0x153d   :  { %v1268_v36 = vpop.permute.xlu1 %1267 }
0x153e   :  { %5444 = vmatmul.mubr.msk.f32.vlgmr.msra.gmra.mrb[8].mxu1 %vm630_vm2, %v1268_v36 }
0x153f   :  { %5465 = vmatprep.mubr.msk.f32.mxu1 %vm7050_vm1, %v7051_v27  ;;  %5873 = vmatpush3.bf16.msra.mxu1 %v7515_v16 }
0x1540   :  { %5874 = vmatprep.subr.bf16.mxu1 %v7049_v24 }
0x1543   :  { %5876 = vmatpush3.bf16.msra.mxu1 %v7518_v18 }
0x1544   :  { %5883 = vmatprep.subr.bf16.mxu1 %v7049_v24 }
0x1611   :  { %v1337_v37 = vpop.f32.mrb[8].mxu1 }
0x1612   :  { %v1342_v38 = vrot.slane %v1337_v37, 2  ;;  %v5445_v39 = vpop.f32.mrb[9].mxu1 }
0x1614   :  { %v1344_v40 = vadd.f32 %v1342_v38, %v7383_v8 }
0x1616   :  { %6194 = vtanh.f32 %v1344_v40  ;;  %v5059_v42 = vmul.f32 -1.442695, %v1344_v40 }
0x1618   :  { %6196 = vpow2.f32 %v5059_v42 }
0x1620   :  { %v6195_v41 = vpop.eup %6194 }
0x1621   :  { %1357 = vrot.lane.b32.xlu0 %v6195_v41, %s7047_s4 }
0x1622   :  { %v6197_v43 = vpop.eup %6196 }
0x1623   :  { %v1348_v44 = vadd.f32 1.0, %v6197_v43 }
0x1625   :  { %6198 = vrcp.f32 %v1348_v44 }
0x162f   :  { %v6199_v45 = vpop.eup %6198 }
0x1630   :  { %v1355_v49 = vmul.f32 %v6199_v45, %v1353_v48 }
0x1693   :  { %v1358_v46 = vpop.permute.xlu0 %1357 }
0x1694   :  { %v1360_v47 = vmul.f32 %v6199_v45, %v1358_v46 }
0x1696   :  { %1362 = vrot.lane.b32.xlu1 %v1360_v47, %s7048_s11 }
0x169a   :  { %1389 = vrot.lane.b32.xlu1 %v7453_v35, %s7048_s11 }
0x1708   :  { %v1363_v8 = vpop.permute.xlu1 %1362 }
0x1709   :  { %v1365_v50 = vadd.f32 %v1363_v8, %v1355_v49 }
0x170b   :  { %6200 = vtanh.f32 %v1365_v50 }
0x170c   :  { %v1390_v51 = vpop.permute.xlu1 %1389 }
0x170d   :  { %5454 = vmatprep.mubr.msk.f32.mxu0 %vm630_vm2, %v1390_v51 }
0x1715   :  { %v6201_v58 = vpop.eup %6200 }
0x1716   :  { %1368 = vrot.lane.b32.xlu0 %v6201_v58, %s7047_s4 }
0x1788   :  { %v1369_v35 = vpop.permute.xlu0 %1368 }
0x1789   :  { %v1371_v59 = vmul.f32 %v6199_v45, %v1369_v35 }
0x178b   :  { %v1380_v60 = vsel %vm1376_vm5, %v1379_v34, %v1371_v59 }
0x178c   :  { %1391 = vrot.lane.b32.xlu0 %v1380_v60, %s7048_s11 }
0x17fe   :  { %v1392_v25 = vpop.permute.xlu0 %1391 }
0x17ff   :  { %5455 = vmatmul.mubr.msk.f32.vlgmr.msra.gmra.mrb[6].mxu0 %vm630_vm2, %v1392_v25 }
0x1800   :  { %5476 = vmatprep.mubr.msk.f32.mxu0 %vm7050_vm1, %v7051_v27  ;;  %5879 = vmatpush3.bf16.msra.mxu0 %v7515_v16 }
0x1801   :  { %5880 = vmatprep.subr.bf16.mxu0 %v7049_v24 }
0x1804   :  { %5882 = vmatpush3.bf16.msra.mxu0 %v7518_v18 }
0x1805   :  { %5889 = vmatprep.subr.bf16.mxu0 %v7049_v24 }
0x18d2   :  { %v5456_v62 = vpop.f32.mrb[6].mxu0 }
0x18d3   :  { %v7507_v63 = vadd.f32 %v5456_v62, %v5060_v61  ;;  %v1463_v0 = vpop.f32.mrb[7].mxu0 }
0x18d4   :  { %v7509_v28 = vadd.f32 %v5060_v61, %v1463_v0 }
0x18d6   :  { %6202 = vtanh.f32 %v7509_v28  ;;  %v5063_v2 = vmul.f32 -1.442695, %v7509_v28 }
0x18d8   :  { %6204 = vpow2.f32 %v5063_v2 }
0x18e0   :  { %v6203_v1 = vpop.eup %6202 }
0x18e1   :  { %1481 = vrot.lane.b32.xlu1 %v6203_v1, %s7047_s4 }
0x18e2   :  { %v6205_v3 = vpop.eup %6204 }
0x18e3   :  { %v1475_v4 = vadd.f32 1.0, %v6205_v3 }
0x18e5   :  { %6206 = vrcp.f32 %v1475_v4 }
0x18ef   :  { %v6207_v5 = vpop.eup %6206 }
0x18f0   :  { %v1479_v9 = vmul.f32 0.0, %v6207_v5 }
0x1953   :  { %v1482_v6 = vpop.permute.xlu1 %1481 }
0x1954   :  { %v1484_v7 = vmul.f32 %v6207_v5, %v1482_v6 }
0x1956   :  { %1486 = vrot.lane.b32.xlu0 %v1484_v7, %s7048_s11 }
0x19c8   :  { %v1487_v11 = vpop.permute.xlu0 %1486 }
0x19c9   :  { %v1489_v12 = vadd.f32 %v1487_v11, %v1479_v9 }
0x19cb   :  { %6208 = vtanh.f32 %v1489_v12  ;;  %v1583_v38 = vrot.slane %v1489_v12, 6 }
0x19d5   :  { %v6209_v19 = vpop.eup %6208 }
0x19d6   :  { %1492 = vrot.lane.b32.xlu1 %v6209_v19, %s7047_s4 }
0x1a48   :  { %v1493_v20 = vpop.permute.xlu1 %1492 }
0x1a49   :  { %v7528_v21 = vmul.f32 %v6207_v5, %v1493_v20 }
0x1a4b   :  { %1497 = vrot.lane.b32.xlu0 %v7528_v21, %s7048_s11 }
0x1abd   :  { %v1498_v22 = vpop.permute.xlu0 %1497 }
0x1abe   :  { %5466 = vmatmul.mubr.msk.f32.vlgmr.msra.gmra.mrb[10].mxu1 %vm630_vm2, %v1498_v22 }
0x1abf   :  { %5885 = vmatpush3.bf16.msra.mxu1 %v7515_v16  ;;  %5487 = vmatprep.mubr.msk.f32.mxu1 %vm7050_vm1, %v7051_v27 }
0x1ac0   :  { %5886 = vmatprep.subr.bf16.mxu1 %v7049_v24 }
0x1ac3   :  { %5888 = vmatpush3.bf16.msra.mxu1 %v7518_v18 }
0x1ac4   :  { %5895 = vmatprep.subr.bf16.mxu1 %v7049_v24 }
0x1b91   :  { %v1567_v23 = vpop.f32.mrb[10].mxu1 }
0x1b92   :  { %v1572_v26 = vrot.slane %v1567_v23, 6  ;;  %v5467_v29 = vpop.f32.mrb[11].mxu1 }
0x1b94   :  { %v1574_v30 = vadd.f32 %v1572_v26, %v7509_v28 }
0x1b96   :  { %6210 = vtanh.f32 %v1574_v30  ;;  %v5065_v10 = vmul.f32 -1.442695, %v1574_v30 }
0x1b98   :  { %6212 = vpow2.f32 %v5065_v10 }
0x1ba0   :  { %v6211_v31 = vpop.eup %6210 }
0x1ba1   :  { %1587 = vrot.lane.b32.xlu1 %v6211_v31, %s7047_s4 }
0x1ba2   :  { %v6213_v32 = vpop.eup %6212 }
0x1ba3   :  { %v1578_v33 = vadd.f32 1.0, %v6213_v32 }
0x1ba5   :  { %6214 = vrcp.f32 %v1578_v33 }
0x1baf   :  { %v6215_v34 = vpop.eup %6214 }
0x1bb0   :  { %v1585_v39 = vmul.f32 %v6215_v34, %v1583_v38 }
0x1c13   :  { %v1588_v36 = vpop.permute.xlu1 %1587 }
0x1c14   :  { %v1590_v37 = vmul.f32 %v6215_v34, %v1588_v36 }
0x1c16   :  { %1592 = vrot.lane.b32.xlu0 %v1590_v37, %s7048_s11 }
0x1c88   :  { %v1593_v40 = vpop.permute.xlu0 %1592 }
0x1c89   :  { %v1595_v41 = vadd.f32 %v1593_v40, %v1585_v39 }
0x1c8b   :  { %6216 = vtanh.f32 %v1595_v41  ;;  %v1690_v57 = vrot.slane %v1595_v41, 6 }
0x1c95   :  { %v6217_v42 = vpop.eup %6216 }
0x1c96   :  { %1598 = vrot.lane.b32.xlu1 %v6217_v42, %s7047_s4 }
0x1d08   :  { %v1599_v43 = vpop.permute.xlu1 %1598 }
0x1d09   :  { %v1601_v44 = vmul.f32 %v6215_v34, %v1599_v43 }
0x1d0b   :  { %v1603_v45 = vrot.slane %v1601_v44, 2  ;;  %v2240_v62 = vsel %vm1372_vm3, %v7528_v21, %v1601_v44 }
0x1d0d   :  { %1604 = vrot.lane.b32.xlu0 %v1603_v45, %s7048_s11 }
0x1d7f   :  { %v1605_v46 = vpop.permute.xlu0 %1604 }
0x1d80   :  { %5477 = vmatmul.mubr.msk.f32.vlgmr.msra.gmra.mrb[8].mxu0 %vm630_vm2, %v1605_v46 }
0x1d81   :  { %5891 = vmatpush3.bf16.msra.mxu0 %v7515_v16  ;;  %5498 = vmatprep.mubr.msk.f32.mxu0 %vm7050_vm1, %v7051_v27 }
0x1d82   :  { %5892 = vmatprep.subr.bf16.mxu0 %v7049_v24 }
0x1d85   :  { %5894 = vmatpush3.bf16.msra.mxu0 %v7518_v18 }
0x1d86   :  { %5901 = vmatprep.subr.bf16.mxu0 %v7049_v24 }
0x1e53   :  { %v1674_v47 = vpop.f32.mrb[8].mxu0 }
0x1e54   :  { %v1679_v48 = vrot.slane %v1674_v47, 4  ;;  %v5478_v49 = vpop.f32.mrb[9].mxu0 }
0x1e56   :  { %v1681_v8 = vadd.f32 %v1679_v48, %v7509_v28 }
0x1e58   :  { %6218 = vtanh.f32 %v1681_v8  ;;  %v5067_v51 = vmul.f32 -1.442695, %v1681_v8 }
0x1e5a   :  { %6220 = vpow2.f32 %v5067_v51 }
0x1e62   :  { %v6219_v50 = vpop.eup %6218 }
0x1e63   :  { %1694 = vrot.lane.b32.xlu1 %v6219_v50, %s7047_s4 }
0x1e64   :  { %v6221_v52 = vpop.eup %6220 }
0x1e65   :  { %v1685_v53 = vadd.f32 1.0, %v6221_v52 }
0x1e67   :  { %6222 = vrcp.f32 %v1685_v53 }
0x1e71   :  { %v6223_v54 = vpop.eup %6222 }
0x1e72   :  { %v1692_v58 = vmul.f32 %v6223_v54, %v1690_v57 }
0x1ed5   :  { %v1695_v55 = vpop.permute.xlu1 %1694 }
0x1ed6   :  { %v1697_v56 = vmul.f32 %v6223_v54, %v1695_v55 }
0x1ed8   :  { %1699 = vrot.lane.b32.xlu0 %v1697_v56, %s7048_s11 }
0x1f4a   :  { %v1700_v35 = vpop.permute.xlu0 %1699 }
0x1f4b   :  { %v1702_v59 = vadd.f32 %v1700_v35, %v1692_v58 }
0x1f4d   :  { %6224 = vtanh.f32 %v1702_v59  ;;  %v1797_v17 = vrot.slane %v1702_v59, 6 }
0x1f57   :  { %v6225_v60 = vpop.eup %6224 }
0x1f58   :  { %1705 = vrot.lane.b32.xlu1 %v6225_v60, %s7047_s4 }
0x1fca   :  { %v1706_v25 = vpop.permute.xlu1 %1705 }
0x1fcb   :  { %v1708_v61 = vmul.f32 %v6223_v54, %v1706_v25 }
0x1fcd   :  { %v1710_v0 = vrot.slane %v1708_v61, 4  ;;  %v2241_v1 = vsel %vm1374_vm4, %v2240_v62, %v1708_v61 }
0x1fcf   :  { %1711 = vrot.lane.b32.xlu0 %v1710_v0, %s7048_s11 }
0x2041   :  { %v1712_v2 = vpop.permute.xlu0 %1711 }
0x2042   :  { %5488 = vmatmul.mubr.msk.f32.vlgmr.msra.gmra.mrb[12].mxu1 %vm630_vm2, %v1712_v2 }
0x2043   :  { %5897 = vmatpush3.bf16.msra.mxu1 %v7515_v16  ;;  %5509 = vmatprep.mubr.msk.f32.mxu1 %vm7050_vm1, %v7051_v27 }
0x2044   :  { %5898 = vmatprep.subr.bf16.mxu1 %v7049_v24 }
0x2047   :  { %5900 = vmatpush3.bf16.msra.mxu1 %v7518_v18 }
0x2048   :  { %5907 = vmatprep.subr.bf16.mxu1 %v7049_v24 }
0x2115   :  { %v1781_v3 = vpop.f32.mrb[12].mxu1 }
0x2116   :  { %v1786_v4 = vrot.slane %v1781_v3, 2  ;;  %v5489_v5 = vpop.f32.mrb[13].mxu1 }
0x2118   :  { %v1788_v6 = vadd.f32 %v1786_v4, %v7509_v28 }
0x211a   :  { %6226 = vtanh.f32 %v1788_v6  ;;  %v5069_v9 = vmul.f32 -1.442695, %v1788_v6 }
0x211c   :  { %6228 = vpow2.f32 %v5069_v9 }
0x2124   :  { %v6227_v7 = vpop.eup %6226 }
0x2125   :  { %1801 = vrot.lane.b32.xlu1 %v6227_v7, %s7047_s4 }
0x2126   :  { %v6229_v11 = vpop.eup %6228 }
0x2127   :  { %v1792_v12 = vadd.f32 1.0, %v6229_v11 }
0x2129   :  { %6230 = vrcp.f32 %v1792_v12 }
0x2133   :  { %v6231_v13 = vpop.eup %6230 }
0x2134   :  { %v1799_v19 = vmul.f32 %v6231_v13, %v1797_v17 }
0x2197   :  { %v1802_v14 = vpop.permute.xlu1 %1801 }
0x2198   :  { %v1804_v15 = vmul.f32 %v6231_v13, %v1802_v14 }
0x219a   :  { %1806 = vrot.lane.b32.xlu0 %v1804_v15, %s7048_s11 }
0x220c   :  { %v1807_v20 = vpop.permute.xlu0 %1806 }
0x220d   :  { %v1809_v21 = vadd.f32 %v1807_v20, %v1799_v19 }
0x220f   :  { %6232 = vtanh.f32 %v1809_v21  ;;  %v1901_v41 = vrot.slane %v1809_v21, 6 }
0x2219   :  { %v6233_v28 = vpop.eup %6232 }
0x221a   :  { %1812 = vrot.lane.b32.xlu1 %v6233_v28, %s7047_s4 }
0x228c   :  { %v1813_v22 = vpop.permute.xlu1 %1812 }
0x228d   :  { %v1815_v23 = vmul.f32 %v6231_v13, %v1813_v22 }
0x228f   :  { %v1817_v26 = vrot.slane %v1815_v23, 6  ;;  %v7571_v29 = vsel %vm1376_vm5, %v2241_v1, %v1815_v23 }
0x2291   :  { %1818 = vrot.lane.b32.xlu0 %v1817_v26, %s7048_s11 }
0x2303   :  { %v1819_v30 = vpop.permute.xlu0 %1818 }
0x2304   :  { %5499 = vmatmul.mubr.msk.f32.vlgmr.msra.gmra.mrb[10].mxu0 %vm630_vm2, %v1819_v30 }
0x2305   :  { %5903 = vmatpush3.bf16.msra.mxu0 %v7515_v16  ;;  %5520 = vmatprep.mubr.msk.f32.mxu0 %vm7050_vm1, %v7051_v27 }
0x2306   :  { %5904 = vmatprep.subr.bf16.mxu0 %v7049_v24 }
0x2309   :  { %5906 = vmatpush3.bf16.msra.mxu0 %v7518_v18 }
0x230a   :  { %5913 = vmatprep.subr.bf16.mxu0 %v7049_v24 }
0x23d7   :  { %v1888_v31 = vpop.f32.mrb[10].mxu0 }
0x23d8   :  { %v1892_v10 = vadd.f32 %v1888_v31, %v7507_v63  ;;  %v5500_v32 = vpop.f32.mrb[11].mxu0 }
0x23da   :  { %6234 = vtanh.f32 %v1892_v10  ;;  %v5071_v34 = vmul.f32 -1.442695, %v1892_v10 }
0x23dc   :  { %6236 = vpow2.f32 %v5071_v34 }
0x23e4   :  { %v6235_v33 = vpop.eup %6234 }
0x23e5   :  { %1905 = vrot.lane.b32.xlu1 %v6235_v33, %s7047_s4 }
0x23e6   :  { %v6237_v36 = vpop.eup %6236 }
0x23e7   :  { %v1896_v37 = vadd.f32 1.0, %v6237_v36 }
0x23e9   :  { %6238 = vrcp.f32 %v1896_v37 }
0x23f3   :  { %v6239_v38 = vpop.eup %6238 }
0x23f4   :  { %v1903_v42 = vmul.f32 %v6239_v38, %v1901_v41 }
0x2457   :  { %v1906_v39 = vpop.permute.xlu1 %1905 }
0x2458   :  { %v1908_v40 = vmul.f32 %v6239_v38, %v1906_v39 }
0x245a   :  { %1910 = vrot.lane.b32.xlu0 %v1908_v40, %s7048_s11 }
0x24cc   :  { %v1911_v43 = vpop.permute.xlu0 %1910 }
0x24cd   :  { %v1913_v44 = vadd.f32 %v1911_v43, %v1903_v42 }
0x24cf   :  { %6240 = vtanh.f32 %v1913_v44 }
0x24d9   :  { %v6241_v45 = vpop.eup %6240 }
0x24da   :  { %1916 = vrot.lane.b32.xlu1 %v6241_v45, %s7047_s4  ;;  %v446_v45 = vld [vmem:[%s8024_s19] sm:$0xff] }
0x254c   :  { %v1917_v46 = vpop.permute.xlu1 %1916 }
0x254d   :  { %v7585_v47 = vmul.f32 %v6239_v38, %v1917_v46  ;;  %v447_v46 = vld [vmem:[%s8024_s19 + $0x8] sm:$0xff] }
0x254f   :  { %1921 = vrot.lane.b32.xlu0 %v7585_v47, %s7048_s11 }
0x25c1   :  { %v1922_v48 = vpop.permute.xlu0 %1921 }
0x25c2   :  { %5510 = vmatmul.mubr.msk.f32.vlgmr.msra.gmra.mrb[14].mxu1 %vm630_vm2, %v1922_v48  ;;  %v5914_v48 = vpack.c.bf16 %v447_v46, %v446_v45 }
0x25c3   :  { %5909 = vmatpush3.bf16.msra.mxu1 %v7515_v16  ;;  %5531 = vmatprep.mubr.msk.f32.mxu1 %vm7050_vm1, %v7051_v27 }
0x25c4   :  { %5910 = vmatprep.subr.bf16.mxu1 %v7049_v24 }
0x25c7   :  { %5912 = vmatpush3.bf16.msra.mxu1 %v7518_v18  ;;  %v2007_v18 = vrot.slane %v1913_v44, 6 }
0x25c8   :  { %5925 = vmatprep.subr.bf16.mxu1 %v7049_v24 }
0x2695   :  { %v1991_v49 = vpop.f32.mrb[14].mxu1 }
0x2696   :  { %v1996_v8 = vrot.slane %v1991_v49, 6  ;;  %v5511_v50 = vpop.f32.mrb[15].mxu1  ;;  %v449_v49 = vld [vmem:[%s8024_s19 + $0x18] sm:$0xff] }
0x2698   :  { %v1998_v51 = vadd.f32 %v1996_v8, %v7507_v63 }
0x269a   :  { %6242 = vtanh.f32 %v1998_v51  ;;  %v5073_v53 = vmul.f32 -1.442695, %v1998_v51  ;;  %v2250_v51 = vrot.slane %v7571_v29, 2 }
0x269c   :  { %6244 = vpow2.f32 %v5073_v53  ;;  %v451_v53 = vld [vmem:[%s8024_s19 + $0x28] sm:$0xff] }
0x26a4   :  { %v6243_v52 = vpop.eup %6242 }
0x26a5   :  { %2011 = vrot.lane.b32.xlu1 %v6243_v52, %s7047_s4  ;;  %v450_v52 = vld [vmem:[%s8024_s19 + $0x20] sm:$0xff] }
0x26a6   :  { %v6245_v16 = vpop.eup %6244 }
0x26a7   :  { %v2002_v54 = vadd.f32 1.0, %v6245_v16  ;;  %v5920_v16 = vpack.c.bf16 %v451_v53, %v450_v52 }
0x26a9   :  { %6246 = vrcp.f32 %v2002_v54  ;;  %v452_v54 = vld [vmem:[%s8024_s19 + $0x30] sm:$0xff] }
0x26b3   :  { %v6247_v55 = vpop.eup %6246 }
0x26b4   :  { %v2009_v58 = vmul.f32 %v6247_v55, %v2007_v18 }
0x2717   :  { %v2012_v56 = vpop.permute.xlu1 %2011 }
0x2718   :  { %v2014_v57 = vmul.f32 %v6247_v55, %v2012_v56 }
0x271a   :  { %2016 = vrot.lane.b32.xlu0 %v2014_v57, %s7048_s11 }
0x278c   :  { %v2017_v35 = vpop.permute.xlu0 %2016 }
0x278d   :  { %v2019_v59 = vadd.f32 %v2017_v35, %v2009_v58 }
0x278f   :  { %6248 = vtanh.f32 %v2019_v59  ;;  %v2114_v14 = vrot.slane %v2019_v59, 6 }
0x2799   :  { %v6249_v60 = vpop.eup %6248 }
0x279a   :  { %2022 = vrot.lane.b32.xlu1 %v6249_v60, %s7047_s4 }
0x280c   :  { %v2023_v25 = vpop.permute.xlu1 %2022 }
0x280d   :  { %v2025_v61 = vmul.f32 %v6247_v55, %v2023_v25  ;;  %v453_v55 = vld [vmem:[%s8024_s19 + $0x38] sm:$0xff] }
0x280e   :  { %v5923_v56 = vpack.c.bf16 %v453_v55, %v452_v54 }
0x280f   :  { %v2027_v62 = vrot.slane %v2025_v61, 2  ;;  %v2243_v22 = vsel %vm1372_vm3, %v7585_v47, %v2025_v61  ;;  %v448_v47 = vld [vmem:[%s8024_s19 + $0x10] sm:$0xff] }
0x2810   :  { %v5917_v8 = vpack.c.bf16 %v449_v49, %v448_v47 }
0x2811   :  { %2028 = vrot.lane.b32.xlu0 %v2027_v62, %s7048_s11 }
0x2883   :  { %v2029_v0 = vpop.permute.xlu0 %2028 }
0x2884   :  { %5521 = vmatmul.mubr.msk.f32.vlgmr.msra.gmra.mrb[12].mxu0 %vm630_vm2, %v2029_v0 }
0x2885   :  { %5550 = vmatprep.mubr.msk.f32.mxu0 %vm7050_vm1, %v7051_v27  ;;  %5915 = vmatpush3.bf16.msra.mxu0 %v5914_v48 }
0x2886   :  { %5916 = vmatprep.subr.bf16.mxu0 %v7049_v24 }
0x2889   :  { %5918 = vmatpush3.bf16.msra.mxu0 %v5917_v8 }
0x288a   :  { %5919 = vmatprep.subr.bf16.mxu0 %v7049_v24 }
0x288d   :  { %5921 = vmatpush3.bf16.msra.mxu0 %v5920_v16 }
0x288e   :  { %5922 = vmatprep.subr.bf16.mxu0 %v7049_v24 }
0x2891   :  { %5924 = vmatpush3.bf16.msra.mxu0 %v5923_v56 }
0x2892   :  { %5937 = vmatprep.subr.bf16.mxu0 %v7049_v24 }
0x2957   :  { %v2098_v1 = vpop.f32.mrb[12].mxu0 }
0x2958   :  { %v2103_v2 = vrot.slane %v2098_v1, 4  ;;  %v5522_v3 = vpop.f32.mrb[13].mxu0 }
0x295a   :  { %v2105_v4 = vadd.f32 %v2103_v2, %v7507_v63 }
0x295c   :  { %6250 = vtanh.f32 %v2105_v4  ;;  %v5075_v6 = vmul.f32 -1.442695, %v2105_v4 }
0x295e   :  { %6252 = vpow2.f32 %v5075_v6  ;;  %v5078_v6 = vld [vmem:[#allocation13] ss:$0 sm:$0xff] }
0x2966   :  { %v6251_v5 = vpop.eup %6250 }
0x2967   :  { %2118 = vrot.lane.b32.xlu1 %v6251_v5, %s7047_s4 }
0x2968   :  { %v6253_v7 = vpop.eup %6252 }
0x2969   :  { %v2109_v9 = vadd.f32 1.0, %v6253_v7 }
0x296b   :  { %6254 = vrcp.f32 %v2109_v9 }
0x2975   :  { %v6255_v11 = vpop.eup %6254 }
0x2976   :  { %v2116_v15 = vmul.f32 %v6255_v11, %v2114_v14 }
0x29d9   :  { %v2119_v12 = vpop.permute.xlu1 %2118 }
0x29da   :  { %v2121_v13 = vmul.f32 %v6255_v11, %v2119_v12 }
0x29dc   :  { %2123 = vrot.lane.b32.xlu0 %v2121_v13, %s7048_s11 }
0x2a4e   :  { %v2124_v17 = vpop.permute.xlu0 %2123 }
0x2a4f   :  { %v2126_v19 = vadd.f32 %v2124_v17, %v2116_v15 }
0x2a51   :  { %6256 = vtanh.f32 %v2126_v19 }
0x2a5b   :  { %v6257_v20 = vpop.eup %6256 }
0x2a5c   :  { %2129 = vrot.lane.b32.xlu1 %v6257_v20, %s7047_s4 }
0x2ace   :  { %v2130_v21 = vpop.permute.xlu1 %2129 }
0x2acf   :  { %v2132_v28 = vmul.f32 %v6255_v11, %v2130_v21 }
0x2ad1   :  { %v2134_v23 = vrot.slane %v2132_v28, 4  ;;  %v2244_v26 = vsel %vm1374_vm4, %v2243_v22, %v2132_v28 }
0x2ad3   :  { %2135 = vrot.lane.b32.xlu0 %v2134_v23, %s7048_s11  ;;  %v454_v23 = vld [vmem:[%s8025_s24] sm:$0xff] }
0x2b45   :  { %v2136_v30 = vpop.permute.xlu0 %2135 }
0x2b46   :  { %5532 = vmatmul.mubr.msk.f32.vlgmr.msra.gmra.mrb[16].mxu1 %vm630_vm2, %v2136_v30  ;;  %v456_v30 = vld [vmem:[%s8025_s24 + $0x10] sm:$0xff] }
0x2b47   :  { %5561 = vmatprep.mubr.msk.f32.mxu1 %vm7050_vm1, %v7051_v27 }
0x2c19   :  { %v2205_v31 = vpop.f32.mrb[16].mxu1 }
0x2c1a   :  { %v2210_v10 = vrot.slane %v2205_v31, 2  ;;  %v5533_v32 = vpop.f32.mrb[17].mxu1 }
0x2c1c   :  { %v2212_v33 = vadd.f32 %v2210_v10, %v7507_v63  ;;  %v2221_v63 = vrot.slane %v2126_v19, 6  ;;  %v457_v10 = vld [vmem:[%s8025_s24 + $0x18] sm:$0xff] }
0x2c1d   :  { %v5929_v32 = vpack.c.bf16 %v457_v10, %v456_v30 }
0x2c1e   :  { %6258 = vtanh.f32 %v2212_v33  ;;  %v5077_v36 = vmul.f32 -1.442695, %v2212_v33 }
0x2c20   :  { %6260 = vpow2.f32 %v5077_v36 }
0x2c28   :  { %v6259_v34 = vpop.eup %6258 }
0x2c29   :  { %2225 = vrot.lane.b32.xlu1 %v6259_v34, %s7047_s4 }
0x2c2a   :  { %v6261_v37 = vpop.eup %6260 }
0x2c2b   :  { %v2216_v38 = vadd.f32 1.0, %v6261_v37 }
0x2c2d   :  { %6262 = vrcp.f32 %v2216_v38 }
0x2c37   :  { %v6263_v39 = vpop.eup %6262 }
0x2c38   :  { %v2223_v42 = vmul.f32 %v6263_v39, %v2221_v63 }
0x2c9b   :  { %v2226_v40 = vpop.permute.xlu1 %2225 }
0x2c9c   :  { %v2228_v41 = vmul.f32 %v6263_v39, %v2226_v40 }
0x2c9e   :  { %2230 = vrot.lane.b32.xlu0 %v2228_v41, %s7048_s11 }
0x2ca2   :  { %2247 = vrot.lane.b32.xlu0 %v7571_v29, %s7048_s11 }
0x2d10   :  { %v2231_v43 = vpop.permute.xlu0 %2230 }
0x2d11   :  { %v2233_v44 = vadd.f32 %v2231_v43, %v2223_v42 }
0x2d13   :  { %6264 = vtanh.f32 %v2233_v44 }
0x2d14   :  { %v2248_v59 = vpop.permute.xlu0 %2247 }
0x2d1d   :  { %v6265_v50 = vpop.eup %6264 }
0x2d1e   :  { %2236 = vrot.lane.b32.xlu1 %v6265_v50, %s7047_s4 }
0x2d22   :  { %2251 = vrot.lane.b32.xlu1 %v2250_v51, %s7047_s4 }
0x2d90   :  { %v2237_v57 = vpop.permute.xlu1 %2236 }
0x2d91   :  { %v2239_v18 = vmul.f32 %v6263_v39, %v2237_v57 }
0x2d93   :  { %v2245_v29 = vsel %vm1376_vm5, %v2244_v26, %v2239_v18  ;;  %v455_v26 = vld [vmem:[%s8025_s24 + $0x8] sm:$0xff] }
0x2d94   :  { %2256 = vrot.lane.b32.xlu0 %v2245_v29, %s7048_s11  ;;  %v2259_v58 = vrot.slane %v2245_v29, 2  ;;  %v2252_v35 = vpop.permute.xlu1 %2251  ;;  %v5926_v31 = vpack.c.bf16 %v455_v26, %v454_v23 }
0x2d95   :  { %v2254_v60 = vsel %vm630_vm2, %v2248_v59, %v2252_v35 }
0x2d96   :  { %2260 = vrot.lane.b32.xlu1 %v2259_v58, %s7047_s4  ;;  %v2265_v25 = vrot.slane %v2254_v60, 2  ;;  %5927 = vmatpush3.bf16.msra.mxu1 %v5926_v31 }
0x2d97   :  { %5928 = vmatprep.subr.bf16.mxu1 %v7049_v24 }
0x2d98   :  { %v2272_v3 = vsel %vm1372_vm3, %v2254_v60, %v2265_v25 }
0x2d9a   :  { %5930 = vmatpush3.bf16.msra.mxu1 %v5929_v32 }
0x2d9b   :  { %5931 = vmatprep.subr.bf16.mxu1 %v7049_v24 }
0x2e06   :  { %v2257_v61 = vpop.permute.xlu0 %2256 }
0x2e08   :  { %v2261_v62 = vpop.permute.xlu1 %2260 }
0x2e09   :  { %v2263_v0 = vsel %vm630_vm2, %v2257_v61, %v2261_v62 }
0x2e0a   :  { %v2268_v1 = vrot.slane %v2263_v0, 4  ;;  %v2270_v2 = vrot.slane %v2263_v0, 6 }
0x2e0c   :  { %v2273_v4 = vsel %vm1374_vm4, %v2272_v3, %v2268_v1 }
0x2e0d   :  { %v2274_v5 = vsel %vm1376_vm5, %v2273_v4, %v2270_v2 }
0x2e0e   :  { %5551 = vmatmul.mubr.msk.f32.vlgmr.msra.gmra.mrb[14].mxu0 %vm2281_vm6, %v2274_v5 }
0x2e0f   :  { %5583 = vmatprep.mubr.msk.f32.mxu0 %vm7050_vm1, %v7051_v27  ;;  %5939 = vmatpush3.bf16.msra.mxu0 %v5926_v31 }
0x2e10   :  { %5940 = vmatprep.subr.bf16.mxu0 %v7049_v24 }
0x2e13   :  { %5942 = vmatpush3.bf16.msra.mxu0 %v5929_v32 }
0x2e14   :  { %5949 = vmatprep.subr.bf16.mxu0 %v7049_v24 }
0x2ee1   :  { %v2351_v7 = vpop.f32.mrb[14].mxu0 }
0x2ee2   :  { %v7646_v9 = vadd.f32 %v5078_v6, %v2351_v7  ;;  %v5552_v11 = vpop.f32.mrb[15].mxu0 }
0x2ee4   :  { %6266 = vtanh.f32 %v7646_v9  ;;  %v5080_v13 = vmul.f32 -1.442695, %v7646_v9 }
0x2ee6   :  { %6268 = vpow2.f32 %v5080_v13 }
0x2eee   :  { %v6267_v12 = vpop.eup %6266 }
0x2eef   :  { %2364 = vrot.lane.b32.xlu0 %v6267_v12, %s7047_s4 }
0x2ef0   :  { %v6269_v14 = vpop.eup %6268 }
0x2ef1   :  { %v2358_v15 = vadd.f32 1.0, %v6269_v14 }
0x2ef3   :  { %6270 = vrcp.f32 %v2358_v15 }
0x2efd   :  { %v6271_v17 = vpop.eup %6270 }
0x2efe   :  { %v2362_v21 = vmul.f32 0.0, %v6271_v17 }
0x2f61   :  { %v2365_v19 = vpop.permute.xlu0 %2364 }
0x2f62   :  { %v2367_v20 = vmul.f32 %v6271_v17, %v2365_v19 }
0x2f64   :  { %2369 = vrot.lane.b32.xlu1 %v2367_v20, %s7048_s11 }
0x2fd6   :  { %v2370_v28 = vpop.permute.xlu1 %2369 }
0x2fd7   :  { %v2372_v22 = vadd.f32 %v2370_v28, %v2362_v21 }
0x2fd9   :  { %6272 = vtanh.f32 %v2372_v22  ;;  %v2466_v48 = vrot.slane %v2372_v22, 6 }
0x2fe3   :  { %v6273_v33 = vpop.eup %6272 }
0x2fe4   :  { %2375 = vrot.lane.b32.xlu0 %v6273_v33, %s7047_s4  ;;  %v460_v33 = vld [vmem:[#allocation15 + $0x8] sm:$0xff] }
0x3056   :  { %v2376_v34 = vpop.permute.xlu0 %2375 }
0x3057   :  { %v7661_v36 = vmul.f32 %v6271_v17, %v2376_v34  ;;  %v461_v34 = vld [vmem:[#allocation15 + $0x10] sm:$0xff] }
0x3059   :  { %2380 = vrot.lane.b32.xlu1 %v7661_v36, %s7048_s11 }
0x30cb   :  { %v2381_v37 = vpop.permute.xlu1 %2380 }
0x30cc   :  { %5562 = vmatmul.mubr.msk.f32.vlgmr.msra.gmra.mrb[18].mxu1 %vm630_vm2, %v2381_v37  ;;  %v462_v37 = vld [vmem:[#allocation15 + $0x18] sm:$0xff] }
0x30cd   :  { %5933 = vmatpush3.bf16.msra.mxu1 %v5926_v31  ;;  %5572 = vmatprep.mubr.msk.f32.mxu1 %vm7050_vm1, %v7051_v27 }
0x30ce   :  { %5934 = vmatprep.subr.bf16.mxu1 %v7049_v24 }
0x30d1   :  { %5936 = vmatpush3.bf16.msra.mxu1 %v5929_v32 }
0x30d2   :  { %5943 = vmatprep.subr.bf16.mxu1 %v7049_v24 }
0x319f   :  { %v2450_v38 = vpop.f32.mrb[18].mxu1 }
0x31a0   :  { %v2455_v39 = vrot.slane %v2450_v38, 6  ;;  %v5563_v40 = vpop.f32.mrb[19].mxu1  ;;  %v5947_v38 = vpack.c.bf16 %v462_v37, %v461_v34 }
0x31a2   :  { %v2457_v41 = vadd.f32 %v2455_v39, %v7646_v9 }
0x31a4   :  { %6274 = vtanh.f32 %v2457_v41  ;;  %v5082_v42 = vmul.f32 -1.442695, %v2457_v41 }
0x31a6   :  { %6276 = vpow2.f32 %v5082_v42 }
0x31ae   :  { %v6275_v63 = vpop.eup %6274 }
0x31af   :  { %2470 = vrot.lane.b32.xlu0 %v6275_v63, %s7047_s4 }
0x31b0   :  { %v6277_v43 = vpop.eup %6276 }
0x31b1   :  { %v2461_v44 = vadd.f32 1.0, %v6277_v43  ;;  %v5087_v43 = vld [vmem:[#allocation18] ss:$0 sm:$0xff] }
0x31b3   :  { %6278 = vrcp.f32 %v2461_v44 }
0x31bd   :  { %v6279_v45 = vpop.eup %6278 }
0x31be   :  { %v2468_v49 = vmul.f32 %v6279_v45, %v2466_v48 }
0x3221   :  { %v2471_v46 = vpop.permute.xlu0 %2470 }
0x3222   :  { %v2473_v47 = vmul.f32 %v6279_v45, %v2471_v46 }
0x3224   :  { %2475 = vrot.lane.b32.xlu1 %v2473_v47, %s7048_s11 }
0x3296   :  { %v2476_v8 = vpop.permute.xlu1 %2475 }
0x3297   :  { %v2478_v50 = vadd.f32 %v2476_v8, %v2468_v49 }
0x3299   :  { %6280 = vtanh.f32 %v2478_v50  ;;  %v2573_v62 = vrot.slane %v2478_v50, 6 }
0x32a3   :  { %v6281_v51 = vpop.eup %6280 }
0x32a4   :  { %2481 = vrot.lane.b32.xlu0 %v6281_v51, %s7047_s4 }
0x3316   :  { %v2482_v52 = vpop.permute.xlu0 %2481 }
0x3317   :  { %v2484_v53 = vmul.f32 %v6279_v45, %v2482_v52 }
0x3319   :  { %v2486_v16 = vrot.slane %v2484_v53, 2  ;;  %v2699_v6 = vsel %vm1372_vm3, %v7661_v36, %v2484_v53 }
0x331b   :  { %2487 = vrot.lane.b32.xlu1 %v2486_v16, %s7048_s11 }
0x338d   :  { %v2488_v54 = vpop.permute.xlu1 %2487 }
0x338e   :  { %5573 = vmatmul.mubr.msk.f32.vlgmr.msra.gmra.mrb[20].mxu1 %vm630_vm2, %v2488_v54 }
0x338f   :  { %5594 = vmatprep.mubr.msk.f32.mxu1 %vm7050_vm1, %v7051_v27 }
0x3461   :  { %v2557_v55 = vpop.f32.mrb[20].mxu1 }
0x3462   :  { %v2562_v56 = vrot.slane %v2557_v55, 4  ;;  %v5574_v57 = vpop.f32.mrb[21].mxu1  ;;  %v463_v55 = vld [vmem:[#allocation16] sm:$0xff] }
0x3463   :  { %v465_v57 = vld [vmem:[#allocation16 + $0x10] sm:$0xff] }
0x3464   :  { %v2564_v18 = vadd.f32 %v2562_v56, %v7646_v9  ;;  %v464_v56 = vld [vmem:[#allocation16 + $0x8] sm:$0xff] }
0x3466   :  { %6282 = vtanh.f32 %v2564_v18  ;;  %v5084_v58 = vmul.f32 -1.442695, %v2564_v18  ;;  %v5950_v18 = vpack.c.bf16 %v464_v56, %v463_v55 }
0x3468   :  { %6284 = vpow2.f32 %v5084_v58 }
0x3470   :  { %v6283_v29 = vpop.eup %6282 }
0x3471   :  { %2577 = vrot.lane.b32.xlu0 %v6283_v29, %s7047_s4  ;;  %v466_v29 = vld [vmem:[#allocation16 + $0x18] sm:$0xff] }
0x3472   :  { %v6285_v35 = vpop.eup %6284  ;;  %v5953_v58 = vpack.c.bf16 %v466_v29, %v465_v57 }
0x3473   :  { %v2568_v59 = vadd.f32 1.0, %v6285_v35 }
0x3475   :  { %6286 = vrcp.f32 %v2568_v59 }
0x347f   :  { %v6287_v60 = vpop.eup %6286 }
0x3480   :  { %v2575_v0 = vmul.f32 %v6287_v60, %v2573_v62 }
0x34e3   :  { %v2578_v25 = vpop.permute.xlu0 %2577 }
0x34e4   :  { %v2580_v61 = vmul.f32 %v6287_v60, %v2578_v25 }
0x34e6   :  { %2582 = vrot.lane.b32.xlu1 %v2580_v61, %s7048_s11 }
0x3558   :  { %v2583_v1 = vpop.permute.xlu1 %2582 }
0x3559   :  { %v2585_v2 = vadd.f32 %v2583_v1, %v2575_v0 }
0x355b   :  { %6288 = vtanh.f32 %v2585_v2  ;;  %v2680_v30 = vrot.slane %v2585_v2, 6 }
0x3565   :  { %v6289_v3 = vpop.eup %6288 }
0x3566   :  { %2588 = vrot.lane.b32.xlu0 %v6289_v3, %s7047_s4 }
0x35d8   :  { %v2589_v4 = vpop.permute.xlu0 %2588 }
0x35d9   :  { %v2591_v5 = vmul.f32 %v6287_v60, %v2589_v4 }
0x35db   :  { %v2593_v7 = vrot.slane %v2591_v5, 4  ;;  %v2700_v11 = vsel %vm1374_vm4, %v2699_v6, %v2591_v5 }
0x35dd   :  { %2594 = vrot.lane.b32.xlu1 %v2593_v7, %s7048_s11 }
0x364f   :  { %v2595_v12 = vpop.permute.xlu1 %2594 }
0x3650   :  { %5584 = vmatmul.mubr.msk.f32.vlgmr.msra.gmra.mrb[16].mxu0 %vm630_vm2, %v2595_v12 }
0x3651   :  { %5605 = vmatprep.mubr.msk.f32.mxu0 %vm7050_vm1, %v7051_v27  ;;  %5951 = vmatpush3.bf16.msra.mxu0 %v5950_v18 }
0x3652   :  { %5952 = vmatprep.subr.bf16.mxu0 %v7049_v24 }
0x3655   :  { %5954 = vmatpush3.bf16.msra.mxu0 %v5953_v58 }
0x3656   :  { %5961 = vmatprep.subr.bf16.mxu0 %v7049_v24 }
0x3723   :  { %v2664_v13 = vpop.f32.mrb[16].mxu0 }
0x3724   :  { %v2669_v14 = vrot.slane %v2664_v13, 2  ;;  %v5585_v15 = vpop.f32.mrb[17].mxu0 }
0x3726   :  { %v2671_v17 = vadd.f32 %v2669_v14, %v7646_v9  ;;  %v459_v9 = vld [vmem:[#allocation15] sm:$0xff] }
0x3727   :  { %v5944_v36 = vpack.c.bf16 %v460_v33, %v459_v9 }
0x3728   :  { %6290 = vtanh.f32 %v2671_v17  ;;  %v5086_v20 = vmul.f32 -1.442695, %v2671_v17 }
0x3729   :  { %5945 = vmatpush3.bf16.msra.mxu1 %v5944_v36 }
0x372a   :  { %6292 = vpow2.f32 %v5086_v20  ;;  %5946 = vmatprep.subr.bf16.mxu1 %v7049_v24 }
0x372d   :  { %5948 = vmatpush3.bf16.msra.mxu1 %v5947_v38 }
0x372e   :  { %5955 = vmatprep.subr.bf16.mxu1 %v7049_v24 }
0x3732   :  { %v6291_v19 = vpop.eup %6290 }
0x3733   :  { %2684 = vrot.lane.b32.xlu0 %v6291_v19, %s7047_s4 }
0x3734   :  { %v6293_v21 = vpop.eup %6292 }
0x3735   :  { %v2675_v28 = vadd.f32 1.0, %v6293_v21 }
0x3737   :  { %6294 = vrcp.f32 %v2675_v28 }
0x3741   :  { %v6295_v22 = vpop.eup %6294 }
0x3742   :  { %v2682_v31 = vmul.f32 %v6295_v22, %v2680_v30 }
0x37a5   :  { %v2685_v23 = vpop.permute.xlu0 %2684 }
0x37a6   :  { %v2687_v26 = vmul.f32 %v6295_v22, %v2685_v23 }
0x37a8   :  { %2689 = vrot.lane.b32.xlu1 %v2687_v26, %s7048_s11 }
0x381a   :  { %v2690_v10 = vpop.permute.xlu1 %2689 }
0x381b   :  { %v2692_v32 = vadd.f32 %v2690_v10, %v2682_v31 }
0x381d   :  { %6296 = vtanh.f32 %v2692_v32 }
0x3827   :  { %v6297_v39 = vpop.eup %6296 }
0x3828   :  { %2695 = vrot.lane.b32.xlu0 %v6297_v39, %s7047_s4 }
0x389a   :  { %v2696_v40 = vpop.permute.xlu0 %2695 }
0x389b   :  { %v2698_v41 = vmul.f32 %v6295_v22, %v2696_v40 }
0x389d   :  { %v2701_v63 = vsel %vm1376_vm5, %v2700_v11, %v2698_v41 }
0x389e   :  { %2709 = vrot.lane.b32.xlu1 %v2701_v63, %s7048_s11 }
0x3910   :  { %v2710_v42 = vpop.permute.xlu1 %2709 }
0x3911   :  { %5595 = vmatmul.mubr.msk.f32.vlgmr.msra.gmra.mrb[22].mxu1 %vm630_vm2, %v2710_v42 }
0x3912   :  { %5616 = vmatprep.mubr.msk.f32.mxu1 %vm7050_vm1, %v7051_v27  ;;  %5957 = vmatpush3.bf16.msra.mxu1 %v5950_v18 }
0x3913   :  { %5958 = vmatprep.subr.bf16.mxu1 %v7049_v24 }
0x3916   :  { %5960 = vmatpush3.bf16.msra.mxu1 %v5953_v58 }
0x3917   :  { %5967 = vmatprep.subr.bf16.mxu1 %v7049_v24 }
0x39e4   :  { %v2779_v44 = vpop.f32.mrb[22].mxu1 }
0x39e5   :  { %v7700_v45 = vadd.f32 %v5087_v43, %v2779_v44  ;;  %v5596_v46 = vpop.f32.mrb[23].mxu1 }
0x39e7   :  { %6298 = vtanh.f32 %v7700_v45  ;;  %v5089_v48 = vmul.f32 -1.442695, %v7700_v45 }
0x39e9   :  { %6300 = vpow2.f32 %v5089_v48 }
0x39f1   :  { %v6299_v47 = vpop.eup %6298 }
0x39f2   :  { %2792 = vrot.lane.b32.xlu0 %v6299_v47, %s7047_s4 }
0x39f3   :  { %v6301_v49 = vpop.eup %6300 }
0x39f4   :  { %v2786_v8 = vadd.f32 1.0, %v6301_v49 }
0x39f6   :  { %6302 = vrcp.f32 %v2786_v8 }
0x3a00   :  { %v6303_v50 = vpop.eup %6302 }
0x3a01   :  { %v2790_v53 = vmul.f32 0.0, %v6303_v50 }
0x3a64   :  { %v2793_v51 = vpop.permute.xlu0 %2792 }
0x3a65   :  { %v2795_v52 = vmul.f32 %v6303_v50, %v2793_v51 }
0x3a67   :  { %2797 = vrot.lane.b32.xlu1 %v2795_v52, %s7048_s11 }
0x3ad9   :  { %v2798_v16 = vpop.permute.xlu1 %2797 }
0x3ada   :  { %v2800_v54 = vadd.f32 %v2798_v16, %v2790_v53 }
0x3adc   :  { %6304 = vtanh.f32 %v2800_v54  ;;  %v2894_v12 = vrot.slane %v2800_v54, 6 }
0x3ae6   :  { %v6305_v35 = vpop.eup %6304 }
0x3ae7   :  { %2803 = vrot.lane.b32.xlu0 %v6305_v35, %s7047_s4  ;;  %v469_v35 = vld [vmem:[#allocation19 + $0x8] sm:$0xff] }
0x3b59   :  { %v2804_v59 = vpop.permute.xlu0 %2803 }
0x3b5a   :  { %v7711_v60 = vmul.f32 %v6303_v50, %v2804_v59  ;;  %v470_v59 = vld [vmem:[#allocation19 + $0x10] sm:$0xff] }
0x3b5c   :  { %2808 = vrot.lane.b32.xlu1 %v7711_v60, %s7048_s11 }
0x3bce   :  { %v2809_v25 = vpop.permute.xlu1 %2808 }
0x3bcf   :  { %5606 = vmatmul.mubr.msk.f32.vlgmr.msra.gmra.mrb[18].mxu0 %vm630_vm2, %v2809_v25  ;;  %v471_v25 = vld [vmem:[#allocation19 + $0x18] sm:$0xff] }
0x3bd0   :  { %5963 = vmatpush3.bf16.msra.mxu0 %v5950_v18  ;;  %5627 = vmatprep.mubr.msk.f32.mxu0 %vm7050_vm1, %v7051_v27 }
0x3bd1   :  { %5964 = vmatprep.subr.bf16.mxu0 %v7049_v24 }
0x3bd4   :  { %5966 = vmatpush3.bf16.msra.mxu0 %v5953_v58 }
0x3bd5   :  { %5973 = vmatprep.subr.bf16.mxu0 %v7049_v24 }
0x3ca2   :  { %v2878_v61 = vpop.f32.mrb[18].mxu0 }
0x3ca3   :  { %v2883_v62 = vrot.slane %v2878_v61, 6  ;;  %v5607_v0 = vpop.f32.mrb[19].mxu0  ;;  %v5971_v61 = vpack.c.bf16 %v471_v25, %v470_v59  ;;  %v3567_v25 = vstv %s5106_s15 }
0x3ca5   :  { %v2885_v1 = vadd.f32 %v2883_v62, %v7700_v45 }
0x3ca7   :  { %6306 = vtanh.f32 %v2885_v1  ;;  %v5091_v3 = vmul.f32 -1.442695, %v2885_v1 }
0x3ca9   :  { %6308 = vpow2.f32 %v5091_v3 }
0x3cb1   :  { %v6307_v2 = vpop.eup %6306 }
0x3cb2   :  { %2898 = vrot.lane.b32.xlu0 %v6307_v2, %s7047_s4 }
0x3cb3   :  { %v6309_v4 = vpop.eup %6308 }
0x3cb4   :  { %v2889_v5 = vadd.f32 1.0, %v6309_v4  ;;  %v5096_v4 = vld [vmem:[#allocation22] ss:$0 sm:$0xff] }
0x3cb6   :  { %6310 = vrcp.f32 %v2889_v5 }
0x3cc0   :  { %v6311_v6 = vpop.eup %6310 }
0x3cc1   :  { %v2896_v13 = vmul.f32 %v6311_v6, %v2894_v12 }
0x3d24   :  { %v2899_v7 = vpop.permute.xlu0 %2898 }
0x3d25   :  { %v2901_v11 = vmul.f32 %v6311_v6, %v2899_v7 }
0x3d27   :  { %2903 = vrot.lane.b32.xlu1 %v2901_v11, %s7048_s11 }
0x3d99   :  { %v2904_v14 = vpop.permute.xlu1 %2903 }
0x3d9a   :  { %v2906_v15 = vadd.f32 %v2904_v14, %v2896_v13 }
0x3d9c   :  { %6312 = vtanh.f32 %v2906_v15  ;;  %v3001_v37 = vrot.slane %v2906_v15, 6 }
0x3da6   :  { %v6313_v17 = vpop.eup %6312 }
0x3da7   :  { %2909 = vrot.lane.b32.xlu0 %v6313_v17, %s7047_s4 }
0x3e19   :  { %v2910_v19 = vpop.permute.xlu0 %2909 }
0x3e1a   :  { %v2912_v20 = vmul.f32 %v6311_v6, %v2910_v19 }
0x3e1c   :  { %v2914_v21 = vrot.slane %v2912_v20, 2  ;;  %v3127_v43 = vsel %vm1372_vm3, %v7711_v60, %v2912_v20 }
0x3e1e   :  { %2915 = vrot.lane.b32.xlu1 %v2914_v21, %s7048_s11 }
0x3e90   :  { %v2916_v28 = vpop.permute.xlu1 %2915 }
0x3e91   :  { %5617 = vmatmul.mubr.msk.f32.vlgmr.msra.gmra.mrb[24].mxu1 %vm630_vm2, %v2916_v28 }
0x3e92   :  { %5638 = vmatprep.mubr.msk.f32.mxu1 %vm7050_vm1, %v7051_v27 }
0x3f64   :  { %v2985_v22 = vpop.f32.mrb[24].mxu1 }
0x3f65   :  { %v2990_v23 = vrot.slane %v2985_v22, 4  ;;  %v5618_v26 = vpop.f32.mrb[25].mxu1  ;;  %v472_v22 = vld [vmem:[#allocation21] sm:$0xff] }
0x3f66   :  { %v474_v26 = vld [vmem:[#allocation21 + $0x10] sm:$0xff] }
0x3f67   :  { %v2992_v30 = vadd.f32 %v2990_v23, %v7700_v45  ;;  %v473_v23 = vld [vmem:[#allocation21 + $0x8] sm:$0xff] }
0x3f69   :  { %6314 = vtanh.f32 %v2992_v30  ;;  %v5093_v10 = vmul.f32 -1.442695, %v2992_v30  ;;  %v5974_v30 = vpack.c.bf16 %v473_v23, %v472_v22  ;;  %v3592_v22 = vstv %s5116_s25 }
0x3f6b   :  { %6316 = vpow2.f32 %v5093_v10 }
0x3f73   :  { %v6315_v31 = vpop.eup %6314 }
0x3f74   :  { %3005 = vrot.lane.b32.xlu0 %v6315_v31, %s7047_s4  ;;  %v475_v31 = vld [vmem:[#allocation21 + $0x18] sm:$0xff] }
0x3f75   :  { %v6317_v32 = vpop.eup %6316  ;;  %v5977_v10 = vpack.c.bf16 %v475_v31, %v474_v26 }
0x3f76   :  { %v2996_v9 = vadd.f32 1.0, %v6317_v32 }
0x3f78   :  { %6318 = vrcp.f32 %v2996_v9 }
0x3f82   :  { %v6319_v33 = vpop.eup %6318 }
0x3f83   :  { %v3003_v38 = vmul.f32 %v6319_v33, %v3001_v37 }
0x3fe6   :  { %v3006_v34 = vpop.permute.xlu0 %3005 }
0x3fe7   :  { %v3008_v36 = vmul.f32 %v6319_v33, %v3006_v34 }
0x3fe9   :  { %3010 = vrot.lane.b32.xlu1 %v3008_v36, %s7048_s11 }
0x405b   :  { %v3011_v39 = vpop.permute.xlu1 %3010 }
0x405c   :  { %v3013_v40 = vadd.f32 %v3011_v39, %v3003_v38 }
0x405e   :  { %6320 = vtanh.f32 %v3013_v40  ;;  %v3108_v57 = vrot.slane %v3013_v40, 6 }
0x4068   :  { %v6321_v41 = vpop.eup %6320 }
0x4069   :  { %3016 = vrot.lane.b32.xlu0 %v6321_v41, %s7047_s4 }
0x40db   :  { %v3017_v63 = vpop.permute.xlu0 %3016 }
0x40dc   :  { %v3019_v42 = vmul.f32 %v6319_v33, %v3017_v63 }
0x40de   :  { %v3021_v44 = vrot.slane %v3019_v42, 4  ;;  %v3128_v46 = vsel %vm1374_vm4, %v3127_v43, %v3019_v42 }
0x40e0   :  { %3022 = vrot.lane.b32.xlu1 %v3021_v44, %s7048_s11 }
0x4152   :  { %v3023_v47 = vpop.permute.xlu1 %3022 }
0x4153   :  { %5628 = vmatmul.mubr.msk.f32.vlgmr.msra.gmra.mrb[20].mxu0 %vm630_vm2, %v3023_v47 }
0x4154   :  { %5649 = vmatprep.mubr.msk.f32.mxu0 %vm7050_vm1, %v7051_v27  ;;  %5975 = vmatpush3.bf16.msra.mxu0 %v5974_v30 }
0x4155   :  { %5976 = vmatprep.subr.bf16.mxu0 %v7049_v24 }
0x4158   :  { %5978 = vmatpush3.bf16.msra.mxu0 %v5977_v10 }
0x4159   :  { %5985 = vmatprep.subr.bf16.mxu0 %v7049_v24 }
0x4226   :  { %v3092_v48 = vpop.f32.mrb[20].mxu0 }
0x4227   :  { %v3097_v49 = vrot.slane %v3092_v48, 2  ;;  %v5629_v8 = vpop.f32.mrb[21].mxu0 }
0x4229   :  { %v3099_v50 = vadd.f32 %v3097_v49, %v7700_v45  ;;  %v468_v45 = vld [vmem:[#allocation19] sm:$0xff] }
0x422a   :  { %v5968_v60 = vpack.c.bf16 %v469_v35, %v468_v45  ;;  %v3559_v35 = vlaneseq }
0x422b   :  { %6322 = vtanh.f32 %v3099_v50  ;;  %v5095_v52 = vmul.f32 -1.442695, %v3099_v50 }
0x422c   :  { %5969 = vmatpush3.bf16.msra.mxu1 %v5968_v60  ;;  %v3560_v59 = vand.u32 127, %v3559_v35  ;;  %v3562_v60 = vstv %s3561_s17 }
0x422d   :  { %6324 = vpow2.f32 %v5095_v52  ;;  %5970 = vmatprep.subr.bf16.mxu1 %v7049_v24 }
0x422e   :  { %vm3563_vm7 = vcmp.eq.s32.totalorder %v3560_v59, %v3562_v60  ;;  %vm3568_vm8 = vcmp.eq.s32.totalorder %v3560_v59, %v3567_v25 }
0x4230   :  { %5972 = vmatpush3.bf16.msra.mxu1 %v5971_v61 }
0x4231   :  { %5979 = vmatprep.subr.bf16.mxu1 %v7049_v24 }
0x4235   :  { %v6323_v51 = vpop.eup %6322 }
0x4236   :  { %3112 = vrot.lane.b32.xlu0 %v6323_v51, %s7047_s4 }
0x4237   :  { %v6325_v53 = vpop.eup %6324 }
0x4238   :  { %v3103_v16 = vadd.f32 1.0, %v6325_v53 }
0x423a   :  { %6326 = vrcp.f32 %v3103_v16 }
0x4244   :  { %v6327_v54 = vpop.eup %6326 }
0x4245   :  { %v3110_v18 = vmul.f32 %v6327_v54, %v3108_v57 }
0x42a8   :  { %v3113_v55 = vpop.permute.xlu0 %3112 }
0x42a9   :  { %v3115_v56 = vmul.f32 %v6327_v54, %v3113_v55 }
0x42ab   :  { %3117 = vrot.lane.b32.xlu1 %v3115_v56, %s7048_s11 }
0x431d   :  { %v3118_v29 = vpop.permute.xlu1 %3117 }
0x431e   :  { %v3120_v58 = vadd.f32 %v3118_v29, %v3110_v18 }
0x4320   :  { %6328 = vtanh.f32 %v3120_v58 }
0x432a   :  { %v6329_v62 = vpop.eup %6328 }
0x432b   :  { %3123 = vrot.lane.b32.xlu0 %v6329_v62, %s7047_s4  ;;  %v3572_v62 = vstv %s5108_s23 }
0x432c   :  { %vm3573_vm9 = vcmp.eq.s32.totalorder %v3560_v59, %v3572_v62 }
0x439d   :  { %v3124_v0 = vpop.permute.xlu0 %3123 }
0x439e   :  { %v3126_v1 = vmul.f32 %v6327_v54, %v3124_v0 }
0x43a0   :  { %v3129_v2 = vsel %vm1376_vm5, %v3128_v46, %v3126_v1 }
0x43a1   :  { %3137 = vrot.lane.b32.xlu1 %v3129_v2, %s7048_s11  ;;  %v5105_v2 = vsel %vm3563_vm7, 1.0, %v7051_v27 }
0x4413   :  { %v3138_v3 = vpop.permute.xlu1 %3137 }
0x4414   :  { %5639 = vmatmul.mubr.msk.f32.vlgmr.msra.gmra.mrb[26].mxu1 %vm630_vm2, %v3138_v3  ;;  %v5107_v3 = vsel %vm3568_vm8, 1.0, %v7051_v27  ;;  %vm3593_vm8 = vcmp.eq.s32.totalorder %v3560_v59, %v3592_v22 }
0x4415   :  { %5660 = vmatprep.mubr.msk.f32.mxu1 %vm7050_vm1, %v7051_v27  ;;  %5981 = vmatpush3.bf16.msra.mxu1 %v5974_v30  ;;  %v5117_v31 = vsel %vm3593_vm8, 1.0, %v7051_v27 }
0x4416   :  { %5982 = vmatprep.subr.bf16.mxu1 %v7049_v24 }
0x4419   :  { %5984 = vmatpush3.bf16.msra.mxu1 %v5977_v10 }
0x441a   :  { %5991 = vmatprep.subr.bf16.mxu1 %v7049_v24 }
0x44e7   :  { %v3207_v5 = vpop.f32.mrb[26].mxu1 }
0x44e8   :  { %v7750_v6 = vadd.f32 %v5096_v4, %v3207_v5  ;;  %v5640_v7 = vpop.f32.mrb[27].mxu1  ;;  %v3555_v4 = vld [vmem:[%s8026_s16] sm:$0xff]  ;;  %v3556_v5 = vld [vmem:[%s8026_s16 + $0x8] sm:$0xff] }
0x44e9   :  { %v3557_v7 = vld [vmem:[%s8026_s16 + $0x10] sm:$0xff] }
0x44ea   :  { %6330 = vtanh.f32 %v7750_v6  ;;  %v5098_v12 = vmul.f32 -1.442695, %v7750_v6 }
0x44ec   :  { %6332 = vpow2.f32 %v5098_v12  ;;  %v3558_v12 = vld [vmem:[%s8026_s16 + $0x18] sm:$0xf] }
0x44f4   :  { %v6331_v11 = vpop.eup %6330 }
0x44f5   :  { %3220 = vrot.lane.b32.xlu0 %v6331_v11, %s7047_s4  ;;  %v5992_v11 = vpack.c.bf16 %v3556_v5, %v3555_v4 }
0x44f6   :  { %v6333_v13 = vpop.eup %6332 }
0x44f7   :  { %v3214_v14 = vadd.f32 1.0, %v6333_v13  ;;  %v5109_v13 = vsel %vm3573_vm9, 1.0, %v7051_v27 }
0x44f9   :  { %6334 = vrcp.f32 %v3214_v14  ;;  %v3602_v14 = vsel %vm3601_vm10, %v5105_v2, %v5107_v3 }
0x4503   :  { %v6335_v15 = vpop.eup %6334 }
0x4504   :  { %v3218_v20 = vmul.f32 0.0, %v6335_v15 }
0x4567   :  { %v3221_v17 = vpop.permute.xlu0 %3220 }
0x4568   :  { %v3223_v19 = vmul.f32 %v6335_v15, %v3221_v17  ;;  %v3603_v17 = vsel %vm1372_vm3, %v3602_v14, %v5109_v13  ;;  %v483_v13 = vld [vmem:[#allocation25 + $0x10] sm:$0xff] }
0x456a   :  { %3225 = vrot.lane.b32.xlu1 %v3223_v19, %s7048_s11  ;;  %v3577_v19 = vstv %s5110_s29 }
0x456b   :  { %vm3578_vm14 = vcmp.eq.s32.totalorder %v3560_v59, %v3577_v19 }
0x45dc   :  { %v3226_v21 = vpop.permute.xlu1 %3225 }
0x45dd   :  { %v3228_v28 = vadd.f32 %v3226_v21, %v3218_v20  ;;  %v3582_v20 = vstv %s5112_s26  ;;  %v3587_v21 = vstv %s5114_s21 }
0x45de   :  { %vm3583_vm0 = vcmp.eq.s32.totalorder %v3560_v59, %v3582_v20  ;;  %vm3588_vm7 = vcmp.eq.s32.totalorder %v3560_v59, %v3587_v21 }
0x45df   :  { %6336 = vtanh.f32 %v3228_v28  ;;  %v3322_v47 = vrot.slane %v3228_v28, 6  ;;  %v5111_v28 = vsel %vm3578_vm14, 1.0, %v7051_v27  ;;  %v5113_v23 = vsel %vm3583_vm0, 1.0, %v7051_v27 }
0x45e0   :  { %v5115_v26 = vsel %vm3588_vm7, 1.0, %v7051_v27 }
0x45e9   :  { %v6337_v32 = vpop.eup %6336 }
0x45ea   :  { %3231 = vrot.lane.b32.xlu0 %v6337_v32, %s7047_s4 }
0x465c   :  { %v3232_v9 = vpop.permute.xlu0 %3231 }
0x465d   :  { %v7761_v33 = vmul.f32 %v6335_v15, %v3232_v9  ;;  %v5995_v15 = vpack.c.bf16 %v3558_v12, %v3557_v7  ;;  %v482_v12 = vld [vmem:[#allocation25 + $0x8] sm:$0xff] }
0x465f   :  { %3236 = vrot.lane.b32.xlu1 %v7761_v33, %s7048_s11 }
0x46d1   :  { %v3237_v34 = vpop.permute.xlu1 %3236 }
0x46d2   :  { %5650 = vmatmul.mubr.msk.f32.vlgmr.msra.gmra.mrb[22].mxu0 %vm630_vm2, %v3237_v34 }
0x46d3   :  { %5987 = vmatpush3.bf16.msra.mxu0 %v5974_v30  ;;  %5671 = vmatprep.mubr.msk.f32.mxu0 %vm7050_vm1, %v7051_v27  ;;  %v3597_v30 = vstv %s5118_s6 }
0x46d4   :  { %5988 = vmatprep.subr.bf16.mxu0 %v7049_v24  ;;  %vm3598_vm9 = vcmp.eq.s32.totalorder %v3560_v59, %v3597_v30 }
0x46d5   :  { %v5119_v32 = vsel %vm3598_vm9, 1.0, %v7051_v27 }
0x46d7   :  { %5990 = vmatpush3.bf16.msra.mxu0 %v5977_v10  ;;  %v3605_v10 = vsel %vm3604_vm13, %v3603_v17, %v5111_v28 }
0x46d8   :  { %5998 = vmatprep.subr.bf16.mxu0 %v7049_v24  ;;  %v3606_v9 = vsel %vm1374_vm4, %v3605_v10, %v5113_v23 }
0x46d9   :  { %v3608_v34 = vsel %vm3607_vm15, %v3606_v9, %v5115_v26 }
0x47a5   :  { %v3306_v36 = vpop.f32.mrb[22].mxu0 }
0x47a6   :  { %v3311_v37 = vrot.slane %v3306_v36, 6  ;;  %v5651_v38 = vpop.f32.mrb[23].mxu0  ;;  %v3609_v36 = vsel %vm1376_vm5, %v3608_v34, %v5117_v31 }
0x47a8   :  { %v3313_v39 = vadd.f32 %v3311_v37, %v7750_v6  ;;  %v3611_v37 = vsel %vm3610_vm11, %v3609_v36, %v5119_v32 }
0x47aa   :  { %6338 = vtanh.f32 %v3313_v39  ;;  %v5100_v41 = vmul.f32 -1.442695, %v3313_v39 }
0x47ac   :  { %6340 = vpow2.f32 %v5100_v41 }
0x47b4   :  { %v6339_v40 = vpop.eup %6338 }
0x47b5   :  { %3326 = vrot.lane.b32.xlu0 %v6339_v40, %s7047_s4 }
0x47b6   :  { %v6341_v63 = vpop.eup %6340 }
0x47b7   :  { %v3317_v42 = vadd.f32 1.0, %v6341_v63 }
0x47b9   :  { %6342 = vrcp.f32 %v3317_v42 }
0x47c3   :  { %v6343_v43 = vpop.eup %6342 }
0x47c4   :  { %v3324_v48 = vmul.f32 %v6343_v43, %v3322_v47 }
0x4827   :  { %v3327_v44 = vpop.permute.xlu0 %3326 }
0x4828   :  { %v3329_v46 = vmul.f32 %v6343_v43, %v3327_v44 }
0x482a   :  { %3331 = vrot.lane.b32.xlu1 %v3329_v46, %s7048_s11 }
0x489c   :  { %v3332_v49 = vpop.permute.xlu1 %3331 }
0x489d   :  { %v7773_v8 = vadd.f32 %v3332_v49, %v3324_v48 }
0x489f   :  { %6344 = vtanh.f32 %v7773_v8  ;;  %v3429_v38 = vrot.slane %v7773_v8, 6 }
0x48a9   :  { %v6345_v50 = vpop.eup %6344 }
0x48aa   :  { %3337 = vrot.lane.b32.xlu0 %v6345_v50, %s7047_s4 }
0x491c   :  { %v3338_v51 = vpop.permute.xlu0 %3337 }
0x491d   :  { %v7777_v52 = vmul.f32 %v6343_v43, %v3338_v51  ;;  %v477_v51 = vld [vmem:[#allocation24] sm:$0xff] }
0x491f   :  { %v3342_v53 = vrot.slane %v7777_v52, 2  ;;  %v4540_v44 = vrot.slane %v7777_v52, 1 }
0x4921   :  { %3343 = vrot.lane.b32.xlu1 %v3342_v53, %s7048_s11  ;;  %v4553_v8 = vsel %vm3601_vm10, %v7761_v33, %v4540_v44  ;;  %v478_v53 = vld [vmem:[#allocation24 + $0x8] sm:$0xff] }
0x4993   :  { %v3344_v16 = vpop.permute.xlu1 %3343 }
0x4994   :  { %5661 = vmatmul.mubr.msk.f32.vlgmr.msra.gmra.mrb[28].mxu1 %vm630_vm2, %v3344_v16  ;;  %v5999_v16 = vpack.c.bf16 %v478_v53, %v477_v51 }
0x4995   :  { %5682 = vmatprep.mubr.msk.f32.mxu1 %vm7050_vm1, %v7051_v27  ;;  %5993 = vmatpush3.bf16.msra.mxu1 %v5992_v11  ;;  %v481_v11 = vld [vmem:[#allocation25] sm:$0xff] }
0x4996   :  { %5994 = vmatprep.subr.bf16.mxu1 %v7049_v24  ;;  %v6005_v14 = vpack.c.bf16 %v482_v12, %v481_v11 }
0x4999   :  { %5997 = vmatpush3.bf16.msk.msra.mxu1 %vm5996_vm12, %v5995_v15  ;;  %vm3612_vm12 = vcmask 228352   ;;  %v484_v15 = vld [vmem:[#allocation25 + $0x18] sm:$0xff] }
0x499a   :  { %6004 = vmatprep.subr.bf16.mxu1 %v7049_v24  ;;  %v6008_v17 = vpack.c.bf16 %v484_v15, %v483_v13 }
0x499c   :  { %5683 = vmatmul.mubr.msk.f32.vlgmr.msra.gmra.mrb[30].mxu1 %vm3612_vm12, %v3611_v37 }
0x499d   :  { %5704 = vmatprep.mubr.msk.f32.mxu1 %vm7050_vm1, %v7051_v27  ;;  %6006 = vmatpush3.bf16.msra.mxu1 %v6005_v14 }
0x499e   :  { %6007 = vmatprep.subr.bf16.mxu1 %v7049_v24 }
0x49a1   :  { %6009 = vmatpush3.bf16.msra.mxu1 %v6008_v17 }
0x49a2   :  { %6016 = vmatprep.subr.bf16.mxu1 %v7049_v24 }
0x4a67   :  { %v3413_v54 = vpop.f32.mrb[28].mxu1 }
0x4a68   :  { %v3418_v55 = vrot.slane %v3413_v54, 4  ;;  %v5662_v56 = vpop.f32.mrb[29].mxu1  ;;  %v479_v54 = vld [vmem:[#allocation24 + $0x10] sm:$0xff] }
0x4a6a   :  { %v3420_v57 = vadd.f32 %v3418_v55, %v7750_v6  ;;  %v480_v55 = vld [vmem:[#allocation24 + $0x18] sm:$0xff] }
0x4a6c   :  { %6346 = vtanh.f32 %v3420_v57  ;;  %v5102_v29 = vmul.f32 -1.442695, %v3420_v57  ;;  %v6002_v57 = vpack.c.bf16 %v480_v55, %v479_v54 }
0x4a6e   :  { %6348 = vpow2.f32 %v5102_v29 }
0x4a6f   :  { %v3685_v42 = vpop.f32.mrb[30].mxu1 }
0x4a70   :  { %v5684_v43 = vpop.f32.mrb[31].mxu1 }
0x4a76   :  { %v6347_v18 = vpop.eup %6346 }
0x4a77   :  { %3433 = vrot.lane.b32.xlu0 %v6347_v18, %s7047_s4 }
0x4a78   :  { %v6349_v58 = vpop.eup %6348 }
0x4a79   :  { %v3424_v45 = vadd.f32 1.0, %v6349_v58  ;;  %v5122_v58 = vld [vmem:[#allocation27] ss:$0 sm:$0xff] }
0x4a7b   :  { %6350 = vrcp.f32 %v3424_v45 }
0x4a85   :  { %v7787_v61 = vpop.eup %6350 }
0x4a86   :  { %v3431_v39 = vmul.f32 %v7787_v61, %v3429_v38 }
0x4ae9   :  { %v3434_v0 = vpop.permute.xlu0 %3433 }
0x4aea   :  { %v3436_v1 = vmul.f32 %v7787_v61, %v3434_v0 }
0x4aec   :  { %3438 = vrot.lane.b32.xlu1 %v3436_v1, %s7048_s11 }
0x4b5e   :  { %v3439_v40 = vpop.permute.xlu1 %3438 }
0x4b5f   :  { %v7817_v41 = vadd.f32 %v3439_v40, %v3431_v39 }
0x4b61   :  { %6352 = vtanh.f32 %v7817_v41 }
0x4b6b   :  { %v6353_v63 = vpop.eup %6352 }
0x4b6c   :  { %3444 = vrot.lane.b32.xlu0 %v6353_v63, %s7047_s4 }
0x4bde   :  { %v3445_v46 = vpop.permute.xlu0 %3444 }
0x4bdf   :  { %v7823_v47 = vmul.f32 %v7787_v61, %v3445_v46 }
0x4be1   :  { %v3449_v48 = vrot.slane %v7823_v47, 4  ;;  %v4542_v49 = vrot.slane %v7823_v47, 2 }
0x4be3   :  { %3450 = vrot.lane.b32.xlu1 %v3449_v48, %s7048_s11  ;;  %v7831_v50 = vsel %vm1372_vm3, %v4553_v8, %v4542_v49 }
0x4c55   :  { %v3451_v56 = vpop.permute.xlu1 %3450 }
0x4c56   :  { %5672 = vmatmul.mubr.msk.f32.vlgmr.msra.gmra.mrb[24].mxu0 %vm630_vm2, %v3451_v56 }
0x4c57   :  { %6000 = vmatpush3.bf16.msra.mxu0 %v5999_v16  ;;  %5693 = vmatprep.mubr.msk.f32.mxu0 %vm7050_vm1, %v7051_v27 }
0x4c58   :  { %6001 = vmatprep.subr.bf16.mxu0 %v7049_v24 }
0x4c5b   :  { %6003 = vmatpush3.bf16.msra.mxu0 %v6002_v57 }
0x4c5c   :  { %6010 = vmatprep.subr.bf16.mxu0 %v7049_v24 }
0x4c5e   :  { %5694 = vmatmul.mubr.msk.f32.vlgmr.msra.gmra.mrb[26].mxu0 %vm630_vm2, %v3685_v42 }
0x4c5f   :  { %5715 = vmatprep.mubr.msk.f32.mxu0 %vm7050_vm1, %v7051_v27  ;;  %6012 = vmatpush3.bf16.msra.mxu0 %v6005_v14 }
0x4c60   :  { %6013 = vmatprep.subr.bf16.mxu0 %v7049_v24 }
0x4c63   :  { %6015 = vmatpush3.bf16.msra.mxu0 %v6008_v17 }
0x4c64   :  { %6022 = vmatprep.subr.bf16.mxu0 %v7049_v24 }
0x4d29   :  { %v7841_v18 = vpop.f32.mrb[24].mxu0 }
0x4d2a   :  { %v5673_v29 = vpop.f32.mrb[25].mxu0 }
0x4d31   :  { %v3764_v45 = vpop.f32.mrb[26].mxu0 }
0x4d32   :  { %v7843_v59 = vadd.f32 %v5122_v58, %v3764_v45  ;;  %v5695_v60 = vpop.f32.mrb[27].mxu0 }
0x4d34   :  { %6354 = vtanh.f32 %v7843_v59  ;;  %v5124_v61 = vmul.f32 -1.442695, %v7843_v59 }
0x4d36   :  { %6356 = vpow2.f32 %v5124_v61 }
0x4d3e   :  { %v6355_v25 = vpop.eup %6354 }
0x4d3f   :  { %3777 = vrot.lane.b32.xlu0 %v6355_v25, %s7047_s4 }
0x4d40   :  { %v6357_v62 = vpop.eup %6356 }
0x4d41   :  { %v3771_v0 = vadd.f32 1.0, %v6357_v62 }
0x4d43   :  { %6358 = vrcp.f32 %v3771_v0 }
0x4d4d   :  { %v6359_v1 = vpop.eup %6358 }
0x4d4e   :  { %v3775_v4 = vmul.f32 0.0, %v6359_v1 }
0x4db1   :  { %v3778_v2 = vpop.permute.xlu0 %3777 }
0x4db2   :  { %v3780_v3 = vmul.f32 %v6359_v1, %v3778_v2 }
0x4db4   :  { %3782 = vrot.lane.b32.xlu1 %v3780_v3, %s7048_s11 }
0x4e26   :  { %v3783_v5 = vpop.permute.xlu1 %3782 }
0x4e27   :  { %v3785_v7 = vadd.f32 %v3783_v5, %v3775_v4 }
0x4e29   :  { %6360 = vtanh.f32 %v3785_v7  ;;  %v3879_v38 = vrot.slane %v3785_v7, 6 }
0x4e33   :  { %v6361_v19 = vpop.eup %6360 }
0x4e34   :  { %3788 = vrot.lane.b32.xlu0 %v6361_v19, %s7047_s4 }
0x4ea6   :  { %v3789_v20 = vpop.permute.xlu0 %3788 }
0x4ea7   :  { %v7854_v21 = vmul.f32 %v6359_v1, %v3789_v20 }
0x4ea9   :  { %3793 = vrot.lane.b32.xlu1 %v7854_v21, %s7048_s11 }
0x4f1b   :  { %v3794_v28 = vpop.permute.xlu1 %3793 }
0x4f1c   :  { %5705 = vmatmul.mubr.msk.f32.vlgmr.msra.gmra.mrb[32].mxu1 %vm630_vm2, %v3794_v28 }
0x4f1d   :  { %6018 = vmatpush3.bf16.msra.mxu1 %v6005_v14  ;;  %5726 = vmatprep.mubr.msk.f32.mxu1 %vm7050_vm1, %v7051_v27 }
0x4f1e   :  { %6019 = vmatprep.subr.bf16.mxu1 %v7049_v24 }
0x4f21   :  { %6021 = vmatpush3.bf16.msra.mxu1 %v6008_v17 }
0x4f22   :  { %6028 = vmatprep.subr.bf16.mxu1 %v7049_v24 }
0x4fef   :  { %v3863_v22 = vpop.f32.mrb[32].mxu1 }
0x4ff0   :  { %v3868_v23 = vrot.slane %v3863_v22, 6  ;;  %v5706_v26 = vpop.f32.mrb[33].mxu1 }
0x4ff2   :  { %v3870_v30 = vadd.f32 %v3868_v23, %v7843_v59 }
0x4ff4   :  { %6362 = vtanh.f32 %v3870_v30  ;;  %v5126_v10 = vmul.f32 -1.442695, %v3870_v30 }
0x4ff6   :  { %6364 = vpow2.f32 %v5126_v10  ;;  %v488_v10 = vld [vmem:[#allocation28 + $0x10] sm:$0xff] }
0x4ffe   :  { %v6363_v31 = vpop.eup %6362 }
0x4fff   :  { %3883 = vrot.lane.b32.xlu0 %v6363_v31, %s7047_s4  ;;  %v487_v31 = vld [vmem:[#allocation28 + $0x8] sm:$0xff] }
0x5000   :  { %v6365_v32 = vpop.eup %6364 }
0x5001   :  { %v3874_v9 = vadd.f32 1.0, %v6365_v32 }
0x5003   :  { %6366 = vrcp.f32 %v3874_v9  ;;  %v489_v9 = vld [vmem:[#allocation28 + $0x18] sm:$0xff] }
0x500d   :  { %v6367_v34 = vpop.eup %6366 }
0x500e   :  { %v3881_v39 = vmul.f32 %v6367_v34, %v3879_v38 }
0x5071   :  { %v3884_v36 = vpop.permute.xlu0 %3883 }
0x5072   :  { %v3886_v37 = vmul.f32 %v6367_v34, %v3884_v36 }
0x5074   :  { %3888 = vrot.lane.b32.xlu1 %v3886_v37, %s7048_s11 }
0x50e6   :  { %v3889_v40 = vpop.permute.xlu1 %3888 }
0x50e7   :  { %v3891_v63 = vadd.f32 %v3889_v40, %v3881_v39 }
0x50e9   :  { %6368 = vtanh.f32 %v3891_v63  ;;  %v3986_v45 = vrot.slane %v3891_v63, 6  ;;  %v5131_v63 = vld [vmem:[#allocation31] ss:$0 sm:$0xff] }
0x50f3   :  { %v6369_v42 = vpop.eup %6368 }
0x50f4   :  { %3894 = vrot.lane.b32.xlu0 %v6369_v42, %s7047_s4 }
0x5166   :  { %v3895_v43 = vpop.permute.xlu0 %3894 }
0x5167   :  { %v3897_v44 = vmul.f32 %v6367_v34, %v3895_v43  ;;  %v6026_v34 = vpack.c.bf16 %v489_v9, %v488_v10 }
0x5169   :  { %v3899_v46 = vrot.slane %v3897_v44, 2  ;;  %v4112_v2 = vsel %vm1372_vm3, %v7854_v21, %v3897_v44 }
0x516b   :  { %3900 = vrot.lane.b32.xlu1 %v3899_v46, %s7048_s11 }
0x51dd   :  { %v3901_v48 = vpop.permute.xlu1 %3900 }
0x51de   :  { %5716 = vmatmul.mubr.msk.f32.vlgmr.msra.gmra.mrb[28].mxu0 %vm630_vm2, %v3901_v48 }
0x51df   :  { %5737 = vmatprep.mubr.msk.f32.mxu0 %vm7050_vm1, %v7051_v27 }
0x52b1   :  { %v3970_v49 = vpop.f32.mrb[28].mxu0 }
0x52b2   :  { %v3975_v8 = vrot.slane %v3970_v49, 4  ;;  %v5717_v51 = vpop.f32.mrb[29].mxu0 }
0x52b4   :  { %v3977_v53 = vadd.f32 %v3975_v8, %v7843_v59 }
0x52b6   :  { %6370 = vtanh.f32 %v3977_v53  ;;  %v5128_v54 = vmul.f32 -1.442695, %v3977_v53 }
0x52b8   :  { %6372 = vpow2.f32 %v5128_v54 }
0x52c0   :  { %v6371_v16 = vpop.eup %6370 }
0x52c1   :  { %3990 = vrot.lane.b32.xlu0 %v6371_v16, %s7047_s4 }
0x52c2   :  { %v6373_v55 = vpop.eup %6372 }
0x52c3   :  { %v3981_v56 = vadd.f32 1.0, %v6373_v55 }
0x52c5   :  { %6374 = vrcp.f32 %v3981_v56 }
0x52cf   :  { %v6375_v57 = vpop.eup %6374 }
0x52d0   :  { %v3988_v60 = vmul.f32 %v6375_v57, %v3986_v45 }
0x5333   :  { %v3991_v29 = vpop.permute.xlu0 %3990 }
0x5334   :  { %v3993_v58 = vmul.f32 %v6375_v57, %v3991_v29  ;;  %v491_v29 = vld [vmem:[#allocation30 + $0x8] sm:$0xff] }
0x5336   :  { %3995 = vrot.lane.b32.xlu1 %v3993_v58, %s7048_s11  ;;  %v492_v58 = vld [vmem:[#allocation30 + $0x10] sm:$0xff] }
0x53a8   :  { %v3996_v25 = vpop.permute.xlu1 %3995 }
0x53a9   :  { %v3998_v61 = vadd.f32 %v3996_v25, %v3988_v60  ;;  %v493_v60 = vld [vmem:[#allocation30 + $0x18] sm:$0xff] }
0x53aa   :  { %v6032_v25 = vpack.c.bf16 %v493_v60, %v492_v58 }
0x53ab   :  { %6376 = vtanh.f32 %v3998_v61  ;;  %v4093_v22 = vrot.slane %v3998_v61, 6 }
0x53b5   :  { %v6377_v62 = vpop.eup %6376 }
0x53b6   :  { %4001 = vrot.lane.b32.xlu0 %v6377_v62, %s7047_s4 }
0x5428   :  { %v4002_v0 = vpop.permute.xlu0 %4001 }
0x5429   :  { %v4004_v1 = vmul.f32 %v6375_v57, %v4002_v0  ;;  %v490_v57 = vld [vmem:[#allocation30] sm:$0xff] }
0x542a   :  { %v6029_v45 = vpack.c.bf16 %v491_v29, %v490_v57 }
0x542b   :  { %v4006_v3 = vrot.slane %v4004_v1, 4  ;;  %v4113_v4 = vsel %vm1374_vm4, %v4112_v2, %v4004_v1 }
0x542d   :  { %4007 = vrot.lane.b32.xlu1 %v4006_v3, %s7048_s11 }
0x549f   :  { %v4008_v5 = vpop.permute.xlu1 %4007 }
0x54a0   :  { %5727 = vmatmul.mubr.msk.f32.vlgmr.msra.gmra.mrb[34].mxu1 %vm630_vm2, %v4008_v5 }
0x54a1   :  { %5748 = vmatprep.mubr.msk.f32.mxu1 %vm7050_vm1, %v7051_v27  ;;  %6030 = vmatpush3.bf16.msra.mxu1 %v6029_v45 }
0x54a2   :  { %6031 = vmatprep.subr.bf16.mxu1 %v7049_v24 }
0x54a5   :  { %6033 = vmatpush3.bf16.msra.mxu1 %v6032_v25 }
0x54a6   :  { %6040 = vmatprep.subr.bf16.mxu1 %v7049_v24 }
0x5573   :  { %v4077_v7 = vpop.f32.mrb[34].mxu1 }
0x5574   :  { %v4082_v11 = vrot.slane %v4077_v7, 2  ;;  %v5728_v12 = vpop.f32.mrb[35].mxu1 }
0x5576   :  { %v4084_v13 = vadd.f32 %v4082_v11, %v7843_v59  ;;  %v486_v59 = vld [vmem:[#allocation28] sm:$0xff] }
0x5577   :  { %v6023_v32 = vpack.c.bf16 %v487_v31, %v486_v59 }
0x5578   :  { %6378 = vtanh.f32 %v4084_v13  ;;  %v5130_v15 = vmul.f32 -1.442695, %v4084_v13 }
0x5579   :  { %6024 = vmatpush3.bf16.msra.mxu0 %v6023_v32 }
0x557a   :  { %6380 = vpow2.f32 %v5130_v15  ;;  %6025 = vmatprep.subr.bf16.mxu0 %v7049_v24 }
0x557d   :  { %6027 = vmatpush3.bf16.msra.mxu0 %v6026_v34 }
0x557e   :  { %6034 = vmatprep.subr.bf16.mxu0 %v7049_v24 }
0x5582   :  { %v6379_v14 = vpop.eup %6378 }
0x5583   :  { %4097 = vrot.lane.b32.xlu0 %v6379_v14, %s7047_s4 }
0x5584   :  { %v6381_v17 = vpop.eup %6380 }
0x5585   :  { %v4088_v19 = vadd.f32 1.0, %v6381_v17 }
0x5587   :  { %6382 = vrcp.f32 %v4088_v19 }
0x5591   :  { %v6383_v20 = vpop.eup %6382 }
0x5592   :  { %v4095_v23 = vmul.f32 %v6383_v20, %v4093_v22 }
0x55f5   :  { %v4098_v21 = vpop.permute.xlu0 %4097 }
0x55f6   :  { %v4100_v28 = vmul.f32 %v6383_v20, %v4098_v21 }
0x55f8   :  { %4102 = vrot.lane.b32.xlu1 %v4100_v28, %s7048_s11 }
0x566a   :  { %v4103_v26 = vpop.permute.xlu1 %4102 }
0x566b   :  { %v4105_v30 = vadd.f32 %v4103_v26, %v4095_v23 }
0x566d   :  { %6384 = vtanh.f32 %v4105_v30 }
0x5677   :  { %v6385_v36 = vpop.eup %6384 }
0x5678   :  { %4108 = vrot.lane.b32.xlu0 %v6385_v36, %s7047_s4 }
0x56ea   :  { %v4109_v37 = vpop.permute.xlu0 %4108 }
0x56eb   :  { %v4111_v38 = vmul.f32 %v6383_v20, %v4109_v37 }
0x56ed   :  { %v4114_v39 = vsel %vm1376_vm5, %v4113_v4, %v4111_v38 }
0x56ee   :  { %4122 = vrot.lane.b32.xlu1 %v4114_v39, %s7048_s11 }
0x5760   :  { %v4123_v40 = vpop.permute.xlu1 %4122 }
0x5761   :  { %5738 = vmatmul.mubr.msk.f32.vlgmr.msra.gmra.mrb[30].mxu0 %vm630_vm2, %v4123_v40 }
0x5762   :  { %5759 = vmatprep.mubr.msk.f32.mxu0 %vm7050_vm1, %v7051_v27  ;;  %6036 = vmatpush3.bf16.msra.mxu0 %v6029_v45 }
0x5763   :  { %6037 = vmatprep.subr.bf16.mxu0 %v7049_v24 }
0x5766   :  { %6039 = vmatpush3.bf16.msra.mxu0 %v6032_v25 }
0x5767   :  { %6046 = vmatprep.subr.bf16.mxu0 %v7049_v24 }
0x5834   :  { %v4192_v42 = vpop.f32.mrb[30].mxu0 }
0x5835   :  { %v7893_v43 = vadd.f32 %v5131_v63, %v4192_v42  ;;  %v5739_v44 = vpop.f32.mrb[31].mxu0 }
0x5836   :  { %v3525_v44 = vrot.slane %v7841_v18, 2 }
0x5837   :  { %6386 = vtanh.f32 %v7893_v43  ;;  %v5133_v48 = vmul.f32 -1.442695, %v7893_v43 }
0x5839   :  { %6388 = vpow2.f32 %v5133_v48 }
0x5841   :  { %v6387_v46 = vpop.eup %6386 }
0x5842   :  { %4205 = vrot.lane.b32.xlu0 %v6387_v46, %s7047_s4 }
0x5843   :  { %v6389_v49 = vpop.eup %6388 }
0x5844   :  { %v4199_v8 = vadd.f32 1.0, %v6389_v49 }
0x5846   :  { %6390 = vrcp.f32 %v4199_v8  ;;  %v3527_v8 = vadd.f32 %v3525_v44, %v7750_v6 }
0x5850   :  { %v6391_v51 = vpop.eup %6390 }
0x5851   :  { %v4203_v54 = vmul.f32 0.0, %v6391_v51 }
0x58b4   :  { %v4206_v53 = vpop.permute.xlu0 %4205 }
0x58b5   :  { %v4208_v16 = vmul.f32 %v6391_v51, %v4206_v53 }
0x58b7   :  { %4210 = vrot.lane.b32.xlu1 %v4208_v16, %s7048_s11  ;;  %v5104_v16 = vmul.f32 -1.442695, %v3527_v8 }
0x5929   :  { %v4211_v55 = vpop.permute.xlu1 %4210 }
0x592a   :  { %v4213_v56 = vadd.f32 %v4211_v55, %v4203_v54 }
0x592c   :  { %6392 = vtanh.f32 %v4213_v56  ;;  %v4307_v19 = vrot.slane %v4213_v56, 6 }
0x5936   :  { %v6393_v61 = vpop.eup %6392 }
0x5937   :  { %4216 = vrot.lane.b32.xlu0 %v6393_v61, %s7047_s4 }
0x59a9   :  { %v4217_v62 = vpop.permute.xlu0 %4216 }
0x59aa   :  { %v7904_v0 = vmul.f32 %v6391_v51, %v4217_v62  ;;  %v3536_v62 = vrot.slane %v7817_v41, 6 }
0x59ac   :  { %4221 = vrot.lane.b32.xlu1 %v7904_v0, %s7048_s11 }
0x5a1e   :  { %v4222_v1 = vpop.permute.xlu1 %4221 }
0x5a1f   :  { %5749 = vmatmul.mubr.msk.f32.vlgmr.msra.gmra.mrb[36].mxu1 %vm630_vm2, %v4222_v1 }
0x5a20   :  { %6042 = vmatpush3.bf16.msra.mxu1 %v6029_v45  ;;  %5770 = vmatprep.mubr.msk.f32.mxu1 %vm7050_vm1, %v7051_v27 }
0x5a21   :  { %6043 = vmatprep.subr.bf16.mxu1 %v7049_v24 }
0x5a24   :  { %6045 = vmatpush3.bf16.msra.mxu1 %v6032_v25 }
0x5a25   :  { %6052 = vmatprep.subr.bf16.mxu1 %v7049_v24 }
0x5af2   :  { %v4291_v2 = vpop.f32.mrb[36].mxu1 }
0x5af3   :  { %v4296_v3 = vrot.slane %v4291_v2, 6  ;;  %v5750_v4 = vpop.f32.mrb[37].mxu1 }
0x5af5   :  { %v4298_v5 = vadd.f32 %v4296_v3, %v7893_v43 }
0x5af7   :  { %6394 = vtanh.f32 %v4298_v5  ;;  %v5135_v11 = vmul.f32 -1.442695, %v4298_v5 }
0x5af9   :  { %6396 = vpow2.f32 %v5135_v11  ;;  %v496_v11 = vld [vmem:[#allocation33 + $0x8] sm:$0xff] }
0x5b01   :  { %v6395_v7 = vpop.eup %6394 }
0x5b02   :  { %4311 = vrot.lane.b32.xlu0 %v6395_v7, %s7047_s4  ;;  %v495_v7 = vld [vmem:[#allocation33] sm:$0xff] }
0x5b03   :  { %v6397_v12 = vpop.eup %6396 }
0x5b04   :  { %v4302_v13 = vadd.f32 1.0, %v6397_v12  ;;  %v497_v12 = vld [vmem:[#allocation33 + $0x10] sm:$0xff] }
0x5b06   :  { %6398 = vrcp.f32 %v4302_v13  ;;  %v6047_v13 = vpack.c.bf16 %v496_v11, %v495_v7 }
0x5b10   :  { %v6399_v14 = vpop.eup %6398 }
0x5b11   :  { %v4309_v20 = vmul.f32 %v6399_v14, %v4307_v19 }
0x5b74   :  { %v4312_v15 = vpop.permute.xlu0 %4311 }
0x5b75   :  { %v4314_v17 = vmul.f32 %v6399_v14, %v4312_v15 }
0x5b77   :  { %4316 = vrot.lane.b32.xlu1 %v4314_v17, %s7048_s11 }
0x5be9   :  { %v4317_v21 = vpop.permute.xlu1 %4316 }
0x5bea   :  { %v4319_v28 = vadd.f32 %v4317_v21, %v4309_v20  ;;  %v4549_v20 = vrot.slane %v7777_v52, 6 }
0x5bec   :  { %6400 = vtanh.f32 %v4319_v28  ;;  %v4414_v42 = vrot.slane %v4319_v28, 6  ;;  %v4551_v28 = vrot.slane %v7823_v47, 7 }
0x5bf6   :  { %v6401_v22 = vpop.eup %6400 }
0x5bf7   :  { %4322 = vrot.lane.b32.xlu0 %v6401_v22, %s7047_s4 }
0x5c69   :  { %v4323_v23 = vpop.permute.xlu0 %4322 }
0x5c6a   :  { %v7917_v26 = vmul.f32 %v6399_v14, %v4323_v23  ;;  %v498_v14 = vld [vmem:[#allocation33 + $0x18] sm:$0xff] }
0x5c6b   :  { %v6050_v41 = vpack.c.bf16 %v498_v14, %v497_v12 }
0x5c6c   :  { %v4327_v30 = vrot.slane %v7917_v26, 2  ;;  %v4560_v18 = vrot.slane %v7917_v26, 1 }
0x5c6e   :  { %4328 = vrot.lane.b32.xlu1 %v4327_v30, %s7048_s11  ;;  %v4573_v45 = vsel %vm3601_vm10, %v7904_v0, %v4560_v18  ;;  %v506_v18 = vld [vmem:[#allocation37 + $0x10] sm:$0xff] }
0x5ce0   :  { %v4329_v59 = vpop.permute.xlu1 %4328 }
0x5ce1   :  { %5760 = vmatmul.mubr.msk.f32.vlgmr.msra.gmra.mrb[32].mxu0 %vm630_vm2, %v4329_v59 }
0x5ce2   :  { %5781 = vmatprep.mubr.msk.f32.mxu0 %vm7050_vm1, %v7051_v27  ;;  %6048 = vmatpush3.bf16.msra.mxu0 %v6047_v13  ;;  %v7053_v13 = vmov 1966171168  }
0x5ce3   :  { %6049 = vmatprep.subr.bf16.mxu0 %v7049_v24  ;;  %v4733_v14 = vunpack.c.l.s4 %v7053_v13 }
0x5ce6   :  { %6051 = vmatpush3.bf16.msra.mxu0 %v6050_v41  ;;  %v4734_v41 = vunpack.c.0.s8 %v4733_v14 }
0x5db4   :  { %v4398_v31 = vpop.f32.mrb[32].mxu0 }
0x5db5   :  { %v4403_v10 = vrot.slane %v4398_v31, 4  ;;  %v5761_v32 = vpop.f32.mrb[33].mxu0 }
0x5db7   :  { %v4405_v9 = vadd.f32 %v4403_v10, %v7893_v43 }
0x5db9   :  { %6402 = vtanh.f32 %v4405_v9  ;;  %v5137_v36 = vmul.f32 -1.442695, %v4405_v9 }
0x5dbb   :  { %6404 = vpow2.f32 %v5137_v36 }
0x5dc3   :  { %v6403_v34 = vpop.eup %6402 }
0x5dc4   :  { %4418 = vrot.lane.b32.xlu0 %v6403_v34, %s7047_s4 }
0x5dc5   :  { %v6405_v37 = vpop.eup %6404 }
0x5dc6   :  { %v4409_v38 = vadd.f32 1.0, %v6405_v37 }
0x5dc8   :  { %6406 = vrcp.f32 %v4409_v38 }
0x5dd2   :  { %v6407_v39 = vpop.eup %6406 }
0x5dd3   :  { %v4416_v46 = vmul.f32 %v6407_v39, %v4414_v42 }
0x5e36   :  { %v4419_v40 = vpop.permute.xlu0 %4418 }
0x5e37   :  { %v4421_v63 = vmul.f32 %v6407_v39, %v4419_v40 }
0x5e39   :  { %4423 = vrot.lane.b32.xlu1 %v4421_v63, %s7048_s11 }
0x5eab   :  { %v4424_v48 = vpop.permute.xlu1 %4423 }
0x5eac   :  { %v7928_v49 = vadd.f32 %v4424_v48, %v4416_v46  ;;  %v499_v46 = vld [vmem:[#allocation34] sm:$0xff]  ;;  %v500_v48 = vld [vmem:[#allocation34 + $0x8] sm:$0xff] }
0x5eae   :  { %6408 = vtanh.f32 %v7928_v49 }
0x5eaf   :  { %6410 = vtanh.f32 %v3527_v8  ;;  %v501_v8 = vld [vmem:[#allocation34 + $0x10] sm:$0xff] }
0x5eb0   :  { %6412 = vpow2.f32 %v5104_v16 }
0x5eb8   :  { %v6409_v51 = vpop.eup %6408 }
0x5eb9   :  { %4429 = vrot.lane.b32.xlu0 %v6409_v51, %s7047_s4  ;;  %v6411_v53 = vpop.eup %6410  ;;  %v6053_v51 = vpack.c.bf16 %v500_v48, %v499_v46 }
0x5eba   :  { %v6413_v54 = vpop.eup %6412 }
0x5ebb   :  { %v3531_v55 = vadd.f32 1.0, %v6413_v54 }
0x5ebd   :  { %3540 = vrot.lane.b32.xlu0 %v6411_v53, %s7047_s4  ;;  %6414 = vrcp.f32 %v3531_v55  ;;  %v502_v53 = vld [vmem:[#allocation34 + $0x18] sm:$0xff]  ;;  %v505_v55 = vld [vmem:[#allocation37 + $0x8] sm:$0xff] }
0x5ebe   :  { %v6056_v54 = vpack.c.bf16 %v502_v53, %v501_v8 }
0x5ec7   :  { %v6415_v58 = vpop.eup %6414 }
0x5ec8   :  { %v3538_v2 = vmul.f32 %v6415_v58, %v3536_v62  ;;  %v4569_v62 = vrot.slane %v7917_v26, 6  ;;  %v509_v26 = vld [vmem:[#allocation37 + $0x28] sm:$0xff] }
0x5f2b   :  { %v4430_v56 = vpop.permute.xlu0 %4429 }
0x5f2c   :  { %v7935_v57 = vmul.f32 %v6407_v39, %v4430_v56  ;;  %v4521_v39 = vrot.slane %v7928_v49, 6  ;;  %v504_v49 = vld [vmem:[#allocation37] sm:$0xff] }
0x5f2d   :  { %v6058_v56 = vpack.c.bf16 %v505_v55, %v504_v49 }
0x5f2e   :  { %v4434_v6 = vrot.slane %v7935_v57, 4  ;;  %v4562_v29 = vrot.slane %v7935_v57, 2 }
0x5f2f   :  { %v3541_v60 = vpop.permute.xlu0 %3540  ;;  %6059 = vmatprep.subr.bf16.mxu0 %v6058_v56 }
0x5f30   :  { %v3543_v25 = vmul.f32 %v6415_v58, %v3541_v60  ;;  %4435 = vrot.lane.b32.xlu1 %v4434_v6, %s7048_s11  ;;  %v7943_v61 = vsel %vm1372_vm3, %v4573_v45, %v4562_v29  ;;  %v507_v6 = vld [vmem:[#allocation37 + $0x18] sm:$0xff] }
0x5f31   :  { %v6062_v29 = vpack.c.bf16 %v507_v6, %v506_v18 }
0x5f32   :  { %3545 = vrot.lane.b32.xlu0 %v3543_v25, %s7048_s11  ;;  %v4567_v25 = vrot.slane %v7904_v0, 5  ;;  %v508_v0 = vld [vmem:[#allocation37 + $0x20] sm:$0xff] }
0x5f33   :  { %v6066_v11 = vpack.c.bf16 %v509_v26, %v508_v0  ;;  %v5143_v26 = vld [vmem:[#allocation39] ss:$0 sm:$0xff] }
0x5fa2   :  { %v4436_v1 = vpop.permute.xlu1 %4435 }
0x5fa3   :  { %5771 = vmatmul.mubr.msk.f32.vlgmr.msra.gmra.mrb[38].mxu1 %vm630_vm2, %v4436_v1  ;;  %v4571_v1 = vrot.slane %v7935_v57, 7  ;;  %v511_v57 = vld [vmem:[#allocation37 + $0x38] sm:$0xff] }
0x5fa4   :  { %v3546_v3 = vpop.permute.xlu0 %3545  ;;  %5792 = vmatprep.mubr.msk.f32.mxu1 %vm7050_vm1, %v7051_v27  ;;  %v4547_v27 = vrot.slane %v7761_v33, 5  ;;  %6054 = vmatpush3.bf16.msra.mxu1 %v6053_v51 }
0x5fa5   :  { %v3548_v4 = vadd.f32 %v3546_v3, %v3538_v2  ;;  %6055 = vmatprep.subr.bf16.mxu1 %v7049_v24 }
0x5fa7   :  { %6416 = vtanh.f32 %v3548_v4 }
0x5fa8   :  { %6057 = vmatpush3.bf16.msra.mxu1 %v6056_v54 }
0x5fb1   :  { %v6417_v5 = vpop.eup %6416 }
0x5fb2   :  { %3551 = vrot.lane.b32.xlu0 %v6417_v5, %s7047_s4 }
0x6024   :  { %v3552_v15 = vpop.permute.xlu0 %3551 }
0x6025   :  { %v3554_v17 = vmul.f32 %v6415_v58, %v3552_v15  ;;  %v4736_v15 = vshrl.u32 %v3559_v35, 7 }
0x6027   :  { %v4545_v19 = vrot.slane %v3554_v17, 3 }
0x6029   :  { %v4555_v21 = vsel %vm3604_vm13, %v7831_v50, %v4545_v19 }
0x602a   :  { %v4556_v22 = vsel %vm1374_vm4, %v4555_v21, %v4547_v27 }
0x602b   :  { %v4557_v23 = vsel %vm3607_vm15, %v4556_v22, %v4549_v20 }
0x602c   :  { %v4558_v30 = vsel %vm1376_vm5, %v4557_v23, %v4551_v28 }
0x602d   :  { %v4559_v59 = vsel %vm3610_vm11, %v4558_v30, %v3554_v17  ;;  %v4737_v17 = vsub.s32 %v4734_v41, %v4736_v15 }
0x602e   :  { %4581 = vrot.lane.b32.xlu0 %v4559_v59, %s7048_s11 }
0x6076   :  { %v4505_v31 = vpop.f32.mrb[38].mxu1 }
0x6077   :  { %v4510_v10 = vrot.slane %v4505_v31, 2  ;;  %v5772_v33 = vpop.f32.mrb[39].mxu1 }
0x6079   :  { %v4512_v52 = vadd.f32 %v4510_v10, %v7893_v43  ;;  %v4785_v10 = vsub.s32 0, %v4736_v15 }
0x607b   :  { %6418 = vtanh.f32 %v4512_v52  ;;  %v5139_v50 = vmul.f32 -1.442695, %v4512_v52 }
0x607d   :  { %6420 = vpow2.f32 %v5139_v50 }
0x6085   :  { %v6419_v32 = vpop.eup %6418 }
0x6086   :  { %4525 = vrot.lane.b32.xlu1 %v6419_v32, %s7047_s4 }
0x6087   :  { %v6421_v9 = vpop.eup %6420 }
0x6088   :  { %v4516_v34 = vadd.f32 1.0, %v6421_v9 }
0x608a   :  { %6422 = vrcp.f32 %v4516_v34 }
0x6094   :  { %v6423_v36 = vpop.eup %6422 }
0x6095   :  { %v4523_v43 = vmul.f32 %v6423_v36, %v4521_v39 }
0x60a0   :  { %v4582_v47 = vpop.permute.xlu0 %4581 }
0x60a1   :  { %5782 = vmatmul.mubr.msk.f32.vlgmr.msra.gmra.mrb[34].mxu0 %vm630_vm2, %v4582_v47 }
0x60a2   :  { %6061 = vmatpush3.bf16.msra.mxu0 %v6058_v56 }
0x60a3   :  { %6063 = vmatprep.subr.bf16.mxu0 %v6062_v29 }
0x60a6   :  { %6065 = vmatpush3.bf16.msra.mxu0 %v6062_v29 }
0x60a7   :  { %6067 = vmatprep.subr.bf16.mxu0 %v6066_v11 }
0x60aa   :  { %6069 = vmatpush3.bf16.msra.mxu0 %v6066_v11 }
0x60f8   :  { %v4526_v37 = vpop.permute.xlu1 %4525 }
0x60f9   :  { %v4528_v38 = vmul.f32 %v6423_v36, %v4526_v37 }
0x60fb   :  { %4530 = vrot.lane.b32.xlu1 %v4528_v38, %s7048_s11 }
0x616d   :  { %v4531_v40 = vpop.permute.xlu1 %4530 }
0x616e   :  { %v4533_v63 = vadd.f32 %v4531_v40, %v4523_v43 }
0x6170   :  { %6424 = vtanh.f32 %v4533_v63 }
0x6174   :  { %v4651_v42 = vpop.f32.mrb[34].mxu0 }
0x6175   :  { %v5783_v44 = vpop.f32.mrb[35].mxu0  ;;  %v4731_v19 = vcombine.high %v4651_v42, %v4651_v42  ;;  %v4738_v27 = vrot.slane %v4651_v42, %v4737_v17 }
0x6177   :  { %v4745_v20 = vrot.slane %v4731_v19, %v4737_v17  ;;  %v4746_v21 = vcombine.high %v4738_v27, %v4738_v27  ;;  %v4754_v22 = vrot.slane %v4738_v27, %v4737_v17 }
0x6179   :  { %v4747_v28 = vcombine.high %v4745_v20, %v4745_v20  ;;  %v4768_v23 = vrot.slane %v4746_v21, %v4737_v17  ;;  %v4761_v30 = vrot.slane %v4745_v20, %v4737_v17  ;;  %v4776_v31 = vcombine.high %v4754_v22, %v4754_v22 }
0x617a   :  { %v6425_v16 = vpop.eup %6424  ;;  %v4786_v47 = vrot.slane %v4754_v22, %v4785_v10 }
0x617b   :  { %4536 = vrot.lane.b32.xlu1 %v6425_v16, %s7047_s4  ;;  %v4775_v59 = vrot.slane %v4747_v28, %v4737_v17  ;;  %v4778_v33 = vcombine.high %v4768_v23, %v4768_v23  ;;  %v4777_v52 = vcombine.high %v4761_v30, %v4761_v30  ;;  %v4790_v50 = vrot.slane %v4768_v23, %v4785_v10 }
0x617c   :  { %v4794_v9 = vrot.slane %v4776_v31, %v4785_v10  ;;  %v4802_v35 = vrot.slane %v4761_v30, %v4785_v10 }
0x617d   :  { %v4779_v32 = vcombine.high %v4775_v59, %v4775_v59  ;;  %v4798_v34 = vrot.slane %v4778_v33, %v4785_v10  ;;  %v4806_v42 = vrot.slane %v4775_v59, %v4785_v10  ;;  %v4810_v44 = vrot.slane %v4777_v52, %v4785_v10 }
0x617f   :  { %v4814_v46 = vrot.slane %v4779_v32, %v4785_v10 }
0x61ed   :  { %v4537_v58 = vpop.permute.xlu1 %4536 }
0x61ee   :  { %v4539_v45 = vmul.f32 %v6423_v36, %v4537_v58  ;;  %v5142_v36 = vld [vmem:[#allocation36] ss:$0 sm:$0xff] }
0x61f0   :  { %v4565_v60 = vrot.slane %v4539_v45, 3 }
0x61f2   :  { %v4575_v24 = vsel %vm3604_vm13, %v7943_v61, %v4565_v60  ;;  %v510_v61 = vld [vmem:[#allocation37 + $0x30] sm:$0xff] }
0x61f3   :  { %v4576_v2 = vsel %vm1374_vm4, %v4575_v24, %v4567_v25  ;;  %v6070_v12 = vpack.c.bf16 %v511_v57, %v510_v61 }
0x61f4   :  { %v4577_v3 = vsel %vm3607_vm15, %v4576_v2, %v4569_v62 }
0x61f5   :  { %v4578_v4 = vsel %vm1376_vm5, %v4577_v3, %v4571_v1  ;;  %6071 = vmatprep.subr.bf16.mxu0 %v6070_v12 }
0x61f6   :  { %v4579_v5 = vsel %vm3610_vm11, %v4578_v4, %v4539_v45  ;;  %6073 = vmatpush3.bf16.msra.mxu0 %v6070_v12 }
0x61f7   :  { %4656 = vrot.lane.b32.xlu1 %v4579_v5, %s7048_s11 }
0x6269   :  { %v4657_v7 = vpop.permute.xlu1 %4656 }
0x626a   :  { %5793 = vmatmul.mubr.msk.f32.vlgmr.msra.gmra.mrb[40].mxu1 %vm630_vm2, %v4657_v7 }
0x633d   :  { %v4726_v37 = vpop.f32.mrb[40].mxu1 }
0x633e   :  { %v4781_v38 = vcombine.high %v4726_v37, %v4726_v37  ;;  %v4823_v39 = vadd.f32 %v4786_v47, %v4726_v37  ;;  %v4824_v43 = vadd.f32 %v4790_v50, %v4726_v37  ;;  %v4825_v40 = vadd.f32 %v4794_v9, %v4726_v37  ;;  %v5794_v63 = vpop.f32.mrb[41].mxu1 }
0x633f   :  { %v4826_v48 = vadd.f32 %v4798_v34, %v4726_v37 }
0x6340   :  { %v4839_v8 = vadd.f32 %v5142_v36, %v4825_v40  ;;  %v4837_v51 = vadd.f32 %v5142_v36, %v4823_v39  ;;  %v4838_v53 = vadd.f32 %v5142_v36, %v4824_v43  ;;  %v4827_v16 = vadd.f32 %v4802_v35, %v4781_v38 }
0x6341   :  { %v4840_v54 = vadd.f32 %v5142_v36, %v4826_v48  ;;  %v4828_v49 = vadd.f32 %v4806_v42, %v4781_v38  ;;  %v4829_v55 = vadd.f32 %v4810_v44, %v4781_v38  ;;  %v4830_v18 = vadd.f32 %v4814_v46, %v4781_v38 }
0x6342   :  { %v4847_v56 = vmax.f32 %v4839_v8, 0.0  ;;  %v4845_v6 = vmax.f32 %v4837_v51, 0.0  ;;  %v4846_v29 = vmax.f32 %v4838_v53, 0.0  ;;  %v4841_v58 = vadd.f32 %v5142_v36, %v4827_v16 }
0x6343   :  { %v4848_v45 = vmax.f32 %v4840_v54, 0.0  ;;  %v4842_v60 = vadd.f32 %v5142_v36, %v4828_v49  ;;  %v4843_v25 = vadd.f32 %v5142_v36, %v4829_v55  ;;  %v4844_v62 = vadd.f32 %v5142_v36, %v4830_v18 }
0x6344   :  { %v4867_v24 = vcombine.low %v4845_v6, %v4846_v29  ;;  %v4849_v1 = vmax.f32 %v4841_v58, 0.0 }
0x6345   :  { %v4868_v2 = vcombine.low %v4847_v56, %v4848_v45  ;;  %v4850_v3 = vmax.f32 %v4842_v60, 0.0  ;;  %v4851_v4 = vmax.f32 %v4843_v25, 0.0  ;;  %v4852_v5 = vmax.f32 %v4844_v62, 0.0 }
0x6346   :  { %5811 = vmatprep.mubr.msk.f32.mxu0 %vm2281_vm6, %v4867_v24 }
0x6347   :  { %5812 = vmatmul.mubr.msk.f32.vlgmr.msra.gmra.mrb[36].mxu0 %vm2281_vm6, %v4868_v2  ;;  %v4869_v7 = vcombine.low %v4849_v1, %v4850_v3  ;;  %v4870_v0 = vcombine.low %v4851_v4, %v4852_v5 }
0x6349   :  { %5814 = vmatprep.mubr.msk.f32.mxu0 %vm2281_vm6, %v4869_v7 }
0x634b   :  { %5815 = vmatmul.mubr.msk.f32.gmra.mrb[38].mxu0 %vm2281_vm6, %v4870_v0 }
0x641a   :  { %v5813_v11 = vpop.f32.mrb[36].mxu0 }
0x641b   :  { %v4951_v61 = vadd.f32 %v5813_v11, %v5143_v26  ;;  %v4945_v57 = vpop.f32.mrb[37].mxu0 }
0x641c   :  { %v4946_v12 = vadd.f32 %v5143_v26, %v4945_v57 }
0x641d   :  { %v4969_v13 = vcombine.high %v4951_v61, %v4951_v61  ;;  %4978 = vst [vmem:[#allocation40 + $0x8] sm:$0xf] %v4951_v61 }
0x641e   :  { %v4968_v14 = vcombine.high %v4946_v12, %v4946_v12  ;;  %4976 = vst [vmem:[#allocation40] sm:$0xf] %v4946_v12  ;;  %v5816_v41 = vpop.f32.mrb[38].mxu0 }
0x641f   :  { %4979 = vst [vmem:[#allocation40 + $0xc] sm:$0xf] %v4969_v13  ;;  %v4961_v15 = vadd.f32 %v5816_v41, %v5143_v26  ;;  %v4955_v17 = vpop.f32.mrb[39].mxu0 }
0x6420   :  { %4977 = vst [vmem:[#allocation40 + $0x4] sm:$0xf] %v4968_v14  ;;  %v4956_v19 = vadd.f32 %v5143_v26, %v4955_v17 }
0x6421   :  { %v4971_v27 = vcombine.high %v4961_v15, %v4961_v15  ;;  %4982 = vst [vmem:[#allocation40 + $0x18] sm:$0xf] %v4961_v15 }
0x6422   :  { %v4970_v20 = vcombine.high %v4956_v19, %v4956_v19  ;;  %4980 = vst [vmem:[#allocation40 + $0x10] sm:$0xf] %v4956_v19 }
0x6423   :  { %4983 = vst [vmem:[#allocation40 + $0x1c] sm:$0xf] %v4971_v27 }
0x6424   :  { %4981 = vst [vmem:[#allocation40 + $0x14] sm:$0xf] %v4970_v20 }
0x6425   :  { %6953 = shalt.err (!%p6950_p9)
}
0x6426   :  { %s6954_s1 = scalar_lea.hbm %s7209_s30, 512 }
0x6427   :  { %p6955_p10 = scmp.ne.s32.totalorder %s7209_s30, %s6954_s1  ;;  %p6958_p11 = scmp.lt.u32.totalorder %s6954_s1, %s7209_s30 }
0x6429   :  { %p6960_p12 = pnand %p6958_p11, %p6955_p10 }
0x642b   :  { %6963 = shalt.err (!%p6960_p12)
}
0x642c   :  { %s7055_s2 = smov 4  }
0x642d   :  { %4995 = dma.vmem_to_hbm [thread:$0]  %s4990_s8, 512, %s7209_s30, [#allocation4], %s7047_s4, %s7047_s4, %s7055_s2  }
0x642e   :  { %6990 = dma.done.wait [#allocation4], 512  }
0x642f   :  { %6991 = vsyncadd [#allocation4], 4294966784 }
0x6430   :  { %4999 = vsyncpa [#allocation3], 1 }
0x6431   :  { %5000 = vsyncpa [#allocation8], 1 }
0x6432   :  { %5001 = vsyncpa [#allocation11], 1 }
0x6433   :  { %5002 = vsyncpa [#allocation14], 1 }
0x6434   :  { %5003 = vsyncpa [#allocation17], 1 }
0x6435   :  { %5004 = vsyncpa [#allocation20], 1 }
0x6436   :  { %5005 = vsyncpa [#allocation23], 1 }
0x6437   :  { %5006 = vsyncpa [#allocation26], 1 }
0x6438   :  { %5007 = vsyncpa [#allocation29], 1 }
0x6439   :  { %5008 = vsyncpa [#allocation32], 1 }
0x643a   :  { %5009 = vsyncpa [#allocation35], 1 }
0x643b   :  { %5010 = vsyncpa [#allocation38], 1 }
0x643c   :  { %5011 = vsyncpa [#allocation4], 1 }
0x643d   :  { %5012 = vsyncpa [#allocation5], 1 }

</bundles_post_ra>
